<compile_context>
chip_gen: v7x
topology: tpu7x:2x2x1
jax: 0.10.0
libtpu: 0.0.40
codegen_flags: <defaults>
</compile_context>

<pallas_src>
import functools
import math

import jax
import jax.numpy as jnp
from jax.experimental import pallas as pl
from jax.experimental.pallas import tpu as pltpu

# ---- KNRM hyper-parameters (mirrors what the torch __init__ derives from mlp_dict) ----
KERNEL_NUM = 21           # = mlp_dict['0.weight'].shape[1]
OUT_LAYERS = [10, 5]      # hidden dims of the MLP, then a final Linear(-> 1)
SIGMA = 0.1
EXACT_SIGMA = 0.001
LANE = 128                # lane width: doc tiles / partial sums / output slab
MASK_BIAS = -3.0          # pushes padded doc positions outside every kernel's support
VMEM_LIMIT = 48 * 1024 * 1024         # explicit scoped-VMEM limit (safe on v5e/v6e/v7x)
VMEM_TILE_BUDGET = 28 * 1024 * 1024   # budget for the streamed d tiles + elementwise temps


def _mu_sigma_list(kernel_num, sigma, exact_sigma):
    step = 2.0 / (kernel_num - 1)
    min_value = step / 2.0 - 1.0
    out = []
    for idx in range(kernel_num):
        mu = min(min_value + step * idx, 1.0)
        s = sigma if mu < 1.0 else exact_sigma
        out.append((float(mu), float(s)))
    return out


MU_SIGMA = _mu_sigma_list(KERNEL_NUM, SIGMA, EXACT_SIGMA)   # static (mu, sigma) pairs
STEP = 2.0 / (KERNEL_NUM - 1)

SOFT_IDX = [k for k, (_, s) in enumerate(MU_SIGMA) if s == SIGMA]     # 20 shared-sigma kernels
EXACT_IDX = [k for k, (_, s) in enumerate(MU_SIGMA) if s != SIGMA]    # exact-match kernel (mu=1)

# Centered-anchor groups of 10 for the EUP factoring:
#   g_k = g_anchor * r^(k-a) * c_k,  r = exp(STEP*mm/SIGMA^2),
#   c_k = exp(-(mu_k^2 - mu_a^2)/(2 SIGMA^2))  (Python float, applied post-reduction)
GROUP_SIZE = 10
SOFT_GROUPS = [SOFT_IDX[i:i + GROUP_SIZE] for i in range(0, len(SOFT_IDX), GROUP_SIZE)]

NEG_HALF_INV_SIG = -0.5 / (SIGMA * SIGMA)                 # -50
NEG_HALF_INV_EXACT = -0.5 / (EXACT_SIGMA * EXACT_SIGMA)
R_COEF = STEP / (SIGMA * SIGMA)                           # 10


def _anchor_local(group):
    return (len(group) - 1) // 2                          # centered anchor (offsets -4..+5)


C_FINAL = [1.0] * KERNEL_NUM                              # post-reduction per-kernel constants
for _g in SOFT_GROUPS:
    _mu_a = MU_SIGMA[_g[_anchor_local(_g)]][0]
    for _k in _g:
        _mu_k = MU_SIGMA[_k][0]
        C_FINAL[_k] = math.exp((_mu_k * _mu_k - _mu_a * _mu_a) * NEG_HALF_INV_SIG)


# layout: embedded tokens are [2B, L, D] (both arms fused, D on the lane axis); MLP
# weights are pre-transposed [in, out]; output is a lane-dense [1, bb, 128] slab.
def _knrm_kernel(q_ref, d_ref, w1_ref, b1_ref, w2_ref, b2_ref, w3_ref, b3_ref,
                 out_ref, acc_ref, qn_ref, *, bb, ld_t, ld_real, needs_mask):
    j = pl.program_id(1)
    n_chunks = ld_t // LANE

    def l2_normalize(x):
        # torch.nn.functional.normalize(x, dim=-1): x / max(||x||_2, 1e-12)
        ss = jnp.sum(x * x, axis=-1, keepdims=True)
        return x * jax.lax.rsqrt(jnp.maximum(ss, 1e-24))   # rsqrt (EUP) + mul, no divide

    @pl.when(j == 0)
    def _init():
        qn_ref[...] = l2_normalize(q_ref[...].astype(jnp.float32))   # [2bb, Lq, D]
        acc_ref[...] = jnp.zeros_like(acc_ref)                       # [K, 2bb, Lq, LANE]

    dn = l2_normalize(d_ref[...].astype(jnp.float32))                # [2bb, ld_t, D]

    # cosine matching matrix for the current document block (both arms at once)
    mm = jnp.einsum('bqd,bkd->bqk', qn_ref[...], dn,
                    preferred_element_type=jnp.float32)              # [2bb, Lq, ld_t]
    if needs_mask:
        # padded doc positions: shift mm by -3 so every kernel (incl. exact) sees ~0
        pos = jax.lax.broadcasted_iota(jnp.int32, (1, 1, ld_t), 2) + j * ld_t
        mm = mm + jnp.where(pos < ld_real, 0.0, MASK_BIAS)

    def accumulate(k, g):
        # 128-lane partial sums on the VPU; the XLU cross-lane reduce is deferred
        # to finalize (inner doc loop stays EUP/VPU only).
        p = g[..., 0:LANE]
        for c in range(1, n_chunks):
            p = p + g[..., c * LANE:(c + 1) * LANE]
        acc_ref[k] += p

    # Gaussian kernel pooling: 2 anchor exps + r1 exp + exact exp + 1 approx vrcp.
    r1 = jnp.exp(mm * R_COEF)                            # exp(10*mm): shift by one mu step
    r_inv = pl.reciprocal(r1, approx=True)               # ~exp(-10*mm), EUP vrcp
    for group in SOFT_GROUPS:                            # static Python loops
        a = _anchor_local(group)
        mu_a = MU_SIGMA[group[a]][0]
        da = mm - mu_a
        g_a = jnp.exp(da * da * NEG_HALF_INV_SIG)        # anchor kernel: its own exp
        accumulate(group[a], g_a)
        t = g_a
        for k in group[a + 1:]:                          # ascending offsets (running product)
            t = t * r1
            accumulate(k, t)
        t = g_a
        for k in reversed(group[:a]):                    # descending offsets
            t = t * r_inv
            accumulate(k, t)
    for k in EXACT_IDX:                                  # exact-match kernel (mu=1)
        de = mm - MU_SIGMA[k][0]
        accumulate(k, jnp.exp(de * de * NEG_HALF_INV_EXACT))

    @pl.when(j == pl.num_programs(1) - 1)
    def _finalize():
        # 21 lane reduces + per-kernel constant + log1p + phi + MLP, once per batch block
        feats = []
        for k in range(KERNEL_NUM):
            s = C_FINAL[k] * jnp.sum(acc_ref[k], axis=-1, keepdims=True)  # [2bb, Lq, 1]
            feats.append(jnp.sum(jnp.log1p(s), axis=1))                   # [2bb, 1]
        phi = jnp.concatenate(feats, axis=-1)                             # [2bb, K]
        h = jnp.maximum(
            jnp.dot(phi, w1_ref[...], preferred_element_type=jnp.float32)
            + b1_ref[...], 0.0)
        h = jnp.maximum(
            jnp.dot(h, w2_ref[...], preferred_element_type=jnp.float32)
            + b2_ref[...], 0.0)
        logits = (jnp.dot(h, w3_ref[...], preferred_element_type=jnp.float32)
                  + b3_ref[...])                                          # [2bb, 1]
        diff = logits[:bb] - logits[bb:]                                  # arm1 - arm2
        sig = 1.0 / (1.0 + jnp.exp(-diff))                                # [bb, 1]
        out_ref[...] = jnp.broadcast_to(sig[None], out_ref.shape)        # lane-dense store


def _pick_batch_block(b):
    # keep >=2 "parallel" grid blocks when possible so both v7x TensorCores get work
    if b <= 1:
        return 1
    for bb in (8, 4, 2, 1):
        if b % bb == 0 and b // bb >= 2:
            return bb
    return 1


def _pick_doc_block(ld_pad, bb2, lq, d):
    # VMEM-aware, always lane-dense: 2 pipeline buffers of the d stream + ~6 mm-sized temps
    for ld_t in (512, 256, 128):
        if ld_pad % ld_t != 0:
            continue
        stream = 2 * bb2 * ld_t * d * 4
        temps = 6 * bb2 * lq * ld_t * 4
        if stream + temps <= VMEM_TILE_BUDGET:
            return ld_t
    return 128


def knrm_forward(params, input_1, input_2):
    """Full KNRM forward: sigmoid(predict(input_1) - predict(input_2)) -> [B, 1]."""
    emb = params['embedding']                              # [V, D], row 0 = padding
    q1_ids, d1_ids = input_1['query'], input_1['document']
    q2_ids, d2_ids = input_2['query'], input_2['document']
    B, Lq = q1_ids.shape
    Ld = d1_ids.shape[1]
    D = emb.shape[1]

    bb = _pick_batch_block(B)                              # megacore-parallel batch block
    ld_pad = ((Ld + LANE - 1) // LANE) * LANE              # lane-align the doc axis
    ld_t = _pick_doc_block(ld_pad, 2 * bb, Lq, D)          # streamed ("arbitrary") doc block
    needs_mask = ld_pad != Ld
    grid = (B // bb, ld_pad // ld_t)

    def fuse(a, b):
        # both arms share one predict() pass: fused batch block i holds
        # [arm-1 rows i*bb:(i+1)*bb ; arm-2 same rows]  (ids only -> cheap shuffle)
        a = a.reshape(B // bb, bb, a.shape[-1])
        b = b.reshape(B // bb, bb, b.shape[-1])
        return jnp.concatenate([a, b], axis=1).reshape(2 * B, a.shape[-1])

    q_ids = fuse(q1_ids, q2_ids)
    d_ids = fuse(d1_ids, d2_ids)
    if needs_mask:
        d_ids = jnp.pad(d_ids, ((0, 0), (0, ld_pad - Ld)))

    # TODO(synk): move the embedding gather in-kernel (scalar-prefetch token ids +
    # row gather / manual DMA) to avoid the HBM round trip of the embedded tokens.
    q = jnp.take(emb, q_ids, axis=0).astype(jnp.float32)   # [2B, Lq, D]
    d = jnp.take(emb, d_ids, axis=0).astype(jnp.float32)   # [2B, ld_pad, D]

    def full_spec(arr):
        return pl.BlockSpec(arr.shape, lambda i, j: (0,) * arr.ndim)

    weights = (params['w1'], params['b1'], params['w2'], params['b2'],
               params['w3'], params['b3'])
    in_specs = ([pl.BlockSpec((2 * bb, Lq, D), lambda i, j: (i, 0, 0)),
                 pl.BlockSpec((2 * bb, ld_t, D), lambda i, j: (i, j, 0))]
                + [full_spec(w) for w in weights])

    kernel = functools.partial(_knrm_kernel, bb=bb, ld_t=ld_t,
                               ld_real=Ld, needs_mask=needs_mask)

    out = pl.pallas_call(
        kernel,
        out_shape=jax.ShapeDtypeStruct((B // bb, bb, LANE), jnp.float32),
        grid_spec=pltpu.PrefetchScalarGridSpec(
            num_scalar_prefetch=0,
            grid=grid,
            in_specs=in_specs,
            out_specs=pl.BlockSpec((1, bb, LANE), lambda i, j: (i, 0, 0)),
            scratch_shapes=[
                pltpu.VMEM((KERNEL_NUM, 2 * bb, Lq, LANE), jnp.float32),  # 128-lane partials
                pltpu.VMEM((2 * bb, Lq, D), jnp.float32),                 # cached normalized q
            ]),
        compiler_params=pltpu.CompilerParams(
            dimension_semantics=("parallel", "arbitrary"),
            vmem_limit_bytes=VMEM_LIMIT),
    )(q, d, *weights)
    return out.reshape(B, LANE)[:, :1]


# -------------------- pure-JAX reference (for correctness check) --------------------
def _predict_ref(params, inputs):
    emb = params['embedding']
    q = jnp.take(emb, inputs['query'], axis=0).astype(jnp.float32)
    d = jnp.take(emb, inputs['document'], axis=0).astype(jnp.float32)

    def norm(x):
        n = jnp.sqrt(jnp.sum(x * x, axis=-1, keepdims=True))
        return x / jnp.maximum(n, 1e-12)

    mm = jnp.einsum('bqd,bkd->bqk', norm(q), norm(d))
    feats = []
    for mu, sg in MU_SIGMA:
        g = jnp.exp(-(mm - mu) ** 2 / 2.0 / (sg ** 2))
        feats.append(jnp.sum(jnp.log1p(jnp.sum(g, axis=-1)), axis=-1, keepdims=True))
    phi = jnp.concatenate(feats, axis=1)
    h = jnp.maximum(phi @ params['w1'] + params['b1'], 0.0)
    h = jnp.maximum(h @ params['w2'] + params['b2'], 0.0)
    return h @ params['w3'] + params['b3']


def knrm_forward_ref(params, input_1, input_2):
    diff = _predict_ref(params, input_1) - _predict_ref(params, input_2)
    return 1.0 / (1.0 + jnp.exp(-diff))


# ------------------------------------- main -------------------------------------
if __name__ == "__main__":
    key = jax.random.PRNGKey(0)
    V, D = 50, 32            # vocab size, embedding dim
    B, Lq, Ld = 2, 8, 8      # batch, query length, document length

    ks = jax.random.split(key, 10)
    emb = jax.random.normal(ks[0], (V, D), jnp.float32) * 0.5
    emb = emb.at[0].set(0.0)  # padding_idx=0

    H1, H2 = OUT_LAYERS
    params = {
        'embedding': emb,
        # torch Linear stores weight as [out, in]; we pass [in, out] (pre-transposed)
        'w1': 0.1 * jax.random.normal(ks[1], (KERNEL_NUM, H1), jnp.float32),
        'b1': 0.1 * jax.random.normal(ks[2], (1, H1), jnp.float32),
        'w2': 0.1 * jax.random.normal(ks[3], (H1, H2), jnp.float32),
        'b2': 0.1 * jax.random.normal(ks[4], (1, H2), jnp.float32),
        'w3': 0.1 * jax.random.normal(ks[5], (H2, 1), jnp.float32),
        'b3': 0.1 * jax.random.normal(ks[6], (1, 1), jnp.float32),
    }

    q1 = jax.random.randint(ks[7], (B, Lq), 0, V, dtype=jnp.int32)
    d1 = jax.random.randint(ks[8], (B, Ld), 0, V, dtype=jnp.int32)
    d2 = jax.random.randint(ks[9], (B, Ld), 0, V, dtype=jnp.int32)
    q1 = q1.at[:, -1].set(0)  # exercise padding tokens (zero embedding rows)

    input_1 = {'query': q1, 'document': d1}
    input_2 = {'query': q1, 'document': d2}

    out = knrm_forward(params, input_1, input_2)
    jax.block_until_ready(out)

    ref = knrm_forward_ref(params, input_1, input_2)
    assert out.shape == (B, 1), out.shape
    assert jnp.allclose(out, ref, atol=2e-3), (out, ref)
    print("KERNEL_OK")
</pallas_src>

<mosaic_0001>
module attributes {stable_mosaic.version = 11 : i64} {
  func.func @_knrm_kernel(%arg0: i32, %arg1: i32, %arg2: memref<2x8x32xf32, #tpu.memory_space<vmem>>, %arg3: memref<2x128x32xf32, #tpu.memory_space<vmem>>, %arg4: memref<21x10xf32, #tpu.memory_space<vmem>>, %arg5: memref<1x10xf32, #tpu.memory_space<vmem>>, %arg6: memref<10x5xf32, #tpu.memory_space<vmem>>, %arg7: memref<1x5xf32, #tpu.memory_space<vmem>>, %arg8: memref<5x1xf32, #tpu.memory_space<vmem>>, %arg9: memref<1x1xf32, #tpu.memory_space<vmem>>, %arg10: memref<1x1x128xf32, #tpu.memory_space<vmem>>, %arg11: memref<21x2x8x128xf32, #tpu.memory_space<vmem>>, %arg12: memref<2x8x32xf32, #tpu.memory_space<vmem>>) attributes {dimension_semantics = [#tpu.dimension_semantics<parallel>, #tpu.dimension_semantics<arbitrary>], iteration_bounds = array<i64: 2, 1>, scalar_prefetch = 0 : i64, scratch_operands = 2 : i64, tpu.core_type = #tpu.core_type<tc>, window_params = [{transform_indices = @transform_0, window_bounds = array<i64: 2, 8, 32>}, {transform_indices = @transform_1, window_bounds = array<i64: 2, 128, 32>}, {pipeline_mode = #tpu.pipeline_mode<synchronous>, transform_indices = @transform_2, window_bounds = array<i64: 21, 10>}, {pipeline_mode = #tpu.pipeline_mode<synchronous>, transform_indices = @transform_3, window_bounds = array<i64: 1, 10>}, {pipeline_mode = #tpu.pipeline_mode<synchronous>, transform_indices = @transform_4, window_bounds = array<i64: 10, 5>}, {pipeline_mode = #tpu.pipeline_mode<synchronous>, transform_indices = @transform_5, window_bounds = array<i64: 1, 5>}, {pipeline_mode = #tpu.pipeline_mode<synchronous>, transform_indices = @transform_6, window_bounds = array<i64: 5, 1>}, {pipeline_mode = #tpu.pipeline_mode<synchronous>, transform_indices = @transform_7, window_bounds = array<i64: 1, 1>}, {transform_indices = @transform_8, window_bounds = array<i64: 1, 1, 128>}]} {
    %c0_i32 = arith.constant 0 : i32
    %0 = arith.cmpi eq, %arg1, %c0_i32 : i32
    %1 = arith.extui %0 : i1 to i32
    %c0_i32_0 = arith.constant 0 : i32
    %2 = arith.cmpi ne, %1, %c0_i32_0 : i32
    scf.if %2 {
      %c0_167 = arith.constant 0 : index
      %c0_168 = arith.constant 0 : index
      %c0_169 = arith.constant 0 : index
      %194 = vector.load %arg2[%c0_167, %c0_168, %c0_169] : memref<2x8x32xf32, #tpu.memory_space<vmem>>, vector<2x8x32xf32>
      %195 = arith.mulf %194, %194 : vector<2x8x32xf32>
      %cst_170 = arith.constant dense<0.000000e+00> : vector<2x8xf32>
      %196 = vector.multi_reduction <add>, %195, %cst_170 [2] : vector<2x8x32xf32> to vector<2x8xf32>
      %197 = vector.shape_cast %196 : vector<2x8xf32> to vector<2x8x1xf32>
      %cst_171 = arith.constant 1.000000e-24 : f32
      %198 = vector.broadcast %cst_171 : f32 to vector<2x8x1xf32>
      %199 = arith.maximumf %197, %198 : vector<2x8x1xf32>
      %200 = math.rsqrt %199 : vector<2x8x1xf32>
      %201 = vector.broadcast %200 : vector<2x8x1xf32> to vector<2x8x32xf32>
      %202 = arith.mulf %194, %201 : vector<2x8x32xf32>
      %c0_172 = arith.constant 0 : index
      %c0_173 = arith.constant 0 : index
      %c0_174 = arith.constant 0 : index
      %203 = vector.load %arg12[%c0_172, %c0_173, %c0_174] : memref<2x8x32xf32, #tpu.memory_space<vmem>>, vector<2x8x32xf32>
      tpu.vector_store %arg12[%c0_172, %c0_173, %c0_174], %202 {strides = array<i32>} : memref<2x8x32xf32, #tpu.memory_space<vmem>>, vector<2x8x32xf32>,
      %cst_175 = arith.constant 0.000000e+00 : f32
      %204 = vector.broadcast %cst_175 : f32 to vector<21x2x8x128xf32>
      %c0_176 = arith.constant 0 : index
      %c0_177 = arith.constant 0 : index
      %c0_178 = arith.constant 0 : index
      %c0_179 = arith.constant 0 : index
      %205 = vector.load %arg11[%c0_176, %c0_177, %c0_178, %c0_179] : memref<21x2x8x128xf32, #tpu.memory_space<vmem>>, vector<21x2x8x128xf32>
      tpu.vector_store %arg11[%c0_176, %c0_177, %c0_178, %c0_179], %204 {strides = array<i32>} : memref<21x2x8x128xf32, #tpu.memory_space<vmem>>, vector<21x2x8x128xf32>,
    } else {
    }
    %c0 = arith.constant 0 : index
    %c0_1 = arith.constant 0 : index
    %c0_2 = arith.constant 0 : index
    %3 = vector.load %arg3[%c0, %c0_1, %c0_2] : memref<2x128x32xf32, #tpu.memory_space<vmem>>, vector<2x128x32xf32>
    %4 = arith.mulf %3, %3 : vector<2x128x32xf32>
    %cst = arith.constant dense<0.000000e+00> : vector<2x128xf32>
    %5 = vector.multi_reduction <add>, %4, %cst [2] : vector<2x128x32xf32> to vector<2x128xf32>
    %6 = vector.shape_cast %5 : vector<2x128xf32> to vector<2x128x1xf32>
    %cst_3 = arith.constant 1.000000e-24 : f32
    %7 = vector.broadcast %cst_3 : f32 to vector<2x128x1xf32>
    %8 = arith.maximumf %6, %7 : vector<2x128x1xf32>
    %9 = math.rsqrt %8 : vector<2x128x1xf32>
    %10 = vector.broadcast %9 : vector<2x128x1xf32> to vector<2x128x32xf32>
    %11 = arith.mulf %3, %10 : vector<2x128x32xf32>
    %c0_4 = arith.constant 0 : index
    %c0_5 = arith.constant 0 : index
    %c0_6 = arith.constant 0 : index
    %12 = vector.load %arg12[%c0_4, %c0_5, %c0_6] : memref<2x8x32xf32, #tpu.memory_space<vmem>>, vector<2x8x32xf32>
    "tpu.trace_start"() <{level = 10 : i32, message = "bqd,bkd->bqk"}> : () -> ()
    %cst_7 = arith.constant dense<0.000000e+00> : vector<2x8x128xf32>
    %13 = tpu.matmul %12, %11, %cst_7 {dimension_numbers = #tpu.dot_dimension_numbers<[2], [2], [1], [1], [0, 0, 0, 1, 1, 1], [0], [0]>} : vector<2x8x32xf32>, vector<2x128x32xf32>, vector<2x8x128xf32> -> vector<2x8x128xf32>
    "tpu.trace_stop"() : () -> ()
    %14 = tpu.iota {dimensions = array<i32: 2>} : vector<1x1x128xi32>
    %c128_i32 = arith.constant 128 : i32
    %15 = arith.muli %arg1, %c128_i32 : i32
    %16 = vector.broadcast %15 : i32 to vector<1x1x128xi32>
    %17 = arith.addi %14, %16 : vector<1x1x128xi32>
    %c8_i32 = arith.constant 8 : i32
    %18 = vector.broadcast %c8_i32 : i32 to vector<1x1x128xi32>
    %19 = arith.cmpi slt, %17, %18 : vector<1x1x128xi32>
    %cst_8 = arith.constant 0.000000e+00 : f32
    %cst_9 = arith.constant -3.000000e+00 : f32
    %20 = vector.broadcast %cst_8 : f32 to vector<1x1x128xf32>
    %21 = vector.broadcast %cst_9 : f32 to vector<1x1x128xf32>
    %22 = arith.select %19, %20, %21 : vector<1x1x128xi1>, vector<1x1x128xf32>
    %23 = vector.broadcast %22 : vector<1x1x128xf32> to vector<2x8x128xf32>
    %24 = arith.addf %13, %23 : vector<2x8x128xf32>
    %cst_10 = arith.constant 1.000000e+01 : f32
    %25 = vector.broadcast %cst_10 : f32 to vector<2x8x128xf32>
    %26 = arith.mulf %24, %25 : vector<2x8x128xf32>
    %27 = math.exp %26 : vector<2x8x128xf32>
    %28 = tpu.reciprocal %27 {approx = true} : vector<2x8x128xf32> -> vector<2x8x128xf32>
    %cst_11 = arith.constant -5.500000e-01 : f32
    %29 = vector.broadcast %cst_11 : f32 to vector<2x8x128xf32>
    %30 = arith.subf %24, %29 : vector<2x8x128xf32>
    %31 = arith.mulf %30, %30 : vector<2x8x128xf32>
    %cst_12 = arith.constant -5.000000e+01 : f32
    %32 = vector.broadcast %cst_12 : f32 to vector<2x8x128xf32>
    %33 = arith.mulf %31, %32 : vector<2x8x128xf32>
    %34 = math.exp %33 : vector<2x8x128xf32>
    %c4 = arith.constant 4 : index
    %c0_13 = arith.constant 0 : index
    %c0_14 = arith.constant 0 : index
    %c0_15 = arith.constant 0 : index
    %35 = vector.load %arg11[%c4, %c0_13, %c0_14, %c0_15] : memref<21x2x8x128xf32, #tpu.memory_space<vmem>>, vector<1x2x8x128xf32>
    %36 = vector.shape_cast %35 : vector<1x2x8x128xf32> to vector<2x8x128xf32>
    %37 = arith.addf %36, %34 : vector<2x8x128xf32>
    %c4_16 = arith.constant 4 : index
    %c0_17 = arith.constant 0 : index
    %c0_18 = arith.constant 0 : index
    %c0_19 = arith.constant 0 : index
    %38 = vector.load %arg11[%c4_16, %c0_17, %c0_18, %c0_19] : memref<21x2x8x128xf32, #tpu.memory_space<vmem>>, vector<1x2x8x128xf32>
    %39 = vector.shape_cast %38 : vector<1x2x8x128xf32> to vector<2x8x128xf32>
    %40 = vector.shape_cast %37 : vector<2x8x128xf32> to vector<1x2x8x128xf32>
    tpu.vector_store %arg11[%c4_16, %c0_17, %c0_18, %c0_19], %40 {strides = array<i32>} : memref<21x2x8x128xf32, #tpu.memory_space<vmem>>, vector<1x2x8x128xf32>,
    %41 = arith.mulf %34, %27 : vector<2x8x128xf32>
    %c5 = arith.constant 5 : index
    %c0_20 = arith.constant 0 : index
    %c0_21 = arith.constant 0 : index
    %c0_22 = arith.constant 0 : index
    %42 = vector.load %arg11[%c5, %c0_20, %c0_21, %c0_22] : memref<21x2x8x128xf32, #tpu.memory_space<vmem>>, vector<1x2x8x128xf32>
    %43 = vector.shape_cast %42 : vector<1x2x8x128xf32> to vector<2x8x128xf32>
    %44 = arith.addf %43, %41 : vector<2x8x128xf32>
    %c5_23 = arith.constant 5 : index
    %c0_24 = arith.constant 0 : index
    %c0_25 = arith.constant 0 : index
    %c0_26 = arith.constant 0 : index
    %45 = vector.load %arg11[%c5_23, %c0_24, %c0_25, %c0_26] : memref<21x2x8x128xf32, #tpu.memory_space<vmem>>, vector<1x2x8x128xf32>
    %46 = vector.shape_cast %45 : vector<1x2x8x128xf32> to vector<2x8x128xf32>
    %47 = vector.shape_cast %44 : vector<2x8x128xf32> to vector<1x2x8x128xf32>
    tpu.vector_store %arg11[%c5_23, %c0_24, %c0_25, %c0_26], %47 {strides = array<i32>} : memref<21x2x8x128xf32, #tpu.memory_space<vmem>>, vector<1x2x8x128xf32>,
    %48 = arith.mulf %41, %27 : vector<2x8x128xf32>
    %c6 = arith.constant 6 : index
    %c0_27 = arith.constant 0 : index
    %c0_28 = arith.constant 0 : index
    %c0_29 = arith.constant 0 : index
    %49 = vector.load %arg11[%c6, %c0_27, %c0_28, %c0_29] : memref<21x2x8x128xf32, #tpu.memory_space<vmem>>, vector<1x2x8x128xf32>
    %50 = vector.shape_cast %49 : vector<1x2x8x128xf32> to vector<2x8x128xf32>
    %51 = arith.addf %50, %48 : vector<2x8x128xf32>
    %c6_30 = arith.constant 6 : index
    %c0_31 = arith.constant 0 : index
    %c0_32 = arith.constant 0 : index
    %c0_33 = arith.constant 0 : index
    %52 = vector.load %arg11[%c6_30, %c0_31, %c0_32, %c0_33] : memref<21x2x8x128xf32, #tpu.memory_space<vmem>>, vector<1x2x8x128xf32>
    %53 = vector.shape_cast %52 : vector<1x2x8x128xf32> to vector<2x8x128xf32>
    %54 = vector.shape_cast %51 : vector<2x8x128xf32> to vector<1x2x8x128xf32>
    tpu.vector_store %arg11[%c6_30, %c0_31, %c0_32, %c0_33], %54 {strides = array<i32>} : memref<21x2x8x128xf32, #tpu.memory_space<vmem>>, vector<1x2x8x128xf32>,
    %55 = arith.mulf %48, %27 : vector<2x8x128xf32>
    %c7 = arith.constant 7 : index
    %c0_34 = arith.constant 0 : index
    %c0_35 = arith.constant 0 : index
    %c0_36 = arith.constant 0 : index
    %56 = vector.load %arg11[%c7, %c0_34, %c0_35, %c0_36] : memref<21x2x8x128xf32, #tpu.memory_space<vmem>>, vector<1x2x8x128xf32>
    %57 = vector.shape_cast %56 : vector<1x2x8x128xf32> to vector<2x8x128xf32>
    %58 = arith.addf %57, %55 : vector<2x8x128xf32>
    %c7_37 = arith.constant 7 : index
    %c0_38 = arith.constant 0 : index
    %c0_39 = arith.constant 0 : index
    %c0_40 = arith.constant 0 : index
    %59 = vector.load %arg11[%c7_37, %c0_38, %c0_39, %c0_40] : memref<21x2x8x128xf32, #tpu.memory_space<vmem>>, vector<1x2x8x128xf32>
    %60 = vector.shape_cast %59 : vector<1x2x8x128xf32> to vector<2x8x128xf32>
    %61 = vector.shape_cast %58 : vector<2x8x128xf32> to vector<1x2x8x128xf32>
    tpu.vector_store %arg11[%c7_37, %c0_38, %c0_39, %c0_40], %61 {strides = array<i32>} : memref<21x2x8x128xf32, #tpu.memory_space<vmem>>, vector<1x2x8x128xf32>,
    %62 = arith.mulf %55, %27 : vector<2x8x128xf32>
    %c8 = arith.constant 8 : index
    %c0_41 = arith.constant 0 : index
    %c0_42 = arith.constant 0 : index
    %c0_43 = arith.constant 0 : index
    %63 = vector.load %arg11[%c8, %c0_41, %c0_42, %c0_43] : memref<21x2x8x128xf32, #tpu.memory_space<vmem>>, vector<1x2x8x128xf32>
    %64 = vector.shape_cast %63 : vector<1x2x8x128xf32> to vector<2x8x128xf32>
    %65 = arith.addf %64, %62 : vector<2x8x128xf32>
    %c8_44 = arith.constant 8 : index
    %c0_45 = arith.constant 0 : index
    %c0_46 = arith.constant 0 : index
    %c0_47 = arith.constant 0 : index
    %66 = vector.load %arg11[%c8_44, %c0_45, %c0_46, %c0_47] : memref<21x2x8x128xf32, #tpu.memory_space<vmem>>, vector<1x2x8x128xf32>
    %67 = vector.shape_cast %66 : vector<1x2x8x128xf32> to vector<2x8x128xf32>
    %68 = vector.shape_cast %65 : vector<2x8x128xf32> to vector<1x2x8x128xf32>
    tpu.vector_store %arg11[%c8_44, %c0_45, %c0_46, %c0_47], %68 {strides = array<i32>} : memref<21x2x8x128xf32, #tpu.memory_space<vmem>>, vector<1x2x8x128xf32>,
    %69 = arith.mulf %62, %27 : vector<2x8x128xf32>
    %c9 = arith.constant 9 : index
    %c0_48 = arith.constant 0 : index
    %c0_49 = arith.constant 0 : index
    %c0_50 = arith.constant 0 : index
    %70 = vector.load %arg11[%c9, %c0_48, %c0_49, %c0_50] : memref<21x2x8x128xf32, #tpu.memory_space<vmem>>, vector<1x2x8x128xf32>
    %71 = vector.shape_cast %70 : vector<1x2x8x128xf32> to vector<2x8x128xf32>
    %72 = arith.addf %71, %69 : vector<2x8x128xf32>
    %c9_51 = arith.constant 9 : index
    %c0_52 = arith.constant 0 : index
    %c0_53 = arith.constant 0 : index
    %c0_54 = arith.constant 0 : index
    %73 = vector.load %arg11[%c9_51, %c0_52, %c0_53, %c0_54] : memref<21x2x8x128xf32, #tpu.memory_space<vmem>>, vector<1x2x8x128xf32>
    %74 = vector.shape_cast %73 : vector<1x2x8x128xf32> to vector<2x8x128xf32>
    %75 = vector.shape_cast %72 : vector<2x8x128xf32> to vector<1x2x8x128xf32>
    tpu.vector_store %arg11[%c9_51, %c0_52, %c0_53, %c0_54], %75 {strides = array<i32>} : memref<21x2x8x128xf32, #tpu.memory_space<vmem>>, vector<1x2x8x128xf32>,
    %76 = arith.mulf %34, %28 : vector<2x8x128xf32>
    %c3 = arith.constant 3 : index
    %c0_55 = arith.constant 0 : index
    %c0_56 = arith.constant 0 : index
    %c0_57 = arith.constant 0 : index
    %77 = vector.load %arg11[%c3, %c0_55, %c0_56, %c0_57] : memref<21x2x8x128xf32, #tpu.memory_space<vmem>>, vector<1x2x8x128xf32>
    %78 = vector.shape_cast %77 : vector<1x2x8x128xf32> to vector<2x8x128xf32>
    %79 = arith.addf %78, %76 : vector<2x8x128xf32>
    %c3_58 = arith.constant 3 : index
    %c0_59 = arith.constant 0 : index
    %c0_60 = arith.constant 0 : index
    %c0_61 = arith.constant 0 : index
    %80 = vector.load %arg11[%c3_58, %c0_59, %c0_60, %c0_61] : memref<21x2x8x128xf32, #tpu.memory_space<vmem>>, vector<1x2x8x128xf32>
    %81 = vector.shape_cast %80 : vector<1x2x8x128xf32> to vector<2x8x128xf32>
    %82 = vector.shape_cast %79 : vector<2x8x128xf32> to vector<1x2x8x128xf32>
    tpu.vector_store %arg11[%c3_58, %c0_59, %c0_60, %c0_61], %82 {strides = array<i32>} : memref<21x2x8x128xf32, #tpu.memory_space<vmem>>, vector<1x2x8x128xf32>,
    %83 = arith.mulf %76, %28 : vector<2x8x128xf32>
    %c2 = arith.constant 2 : index
    %c0_62 = arith.constant 0 : index
    %c0_63 = arith.constant 0 : index
    %c0_64 = arith.constant 0 : index
    %84 = vector.load %arg11[%c2, %c0_62, %c0_63, %c0_64] : memref<21x2x8x128xf32, #tpu.memory_space<vmem>>, vector<1x2x8x128xf32>
    %85 = vector.shape_cast %84 : vector<1x2x8x128xf32> to vector<2x8x128xf32>
    %86 = arith.addf %85, %83 : vector<2x8x128xf32>
    %c2_65 = arith.constant 2 : index
    %c0_66 = arith.constant 0 : index
    %c0_67 = arith.constant 0 : index
    %c0_68 = arith.constant 0 : index
    %87 = vector.load %arg11[%c2_65, %c0_66, %c0_67, %c0_68] : memref<21x2x8x128xf32, #tpu.memory_space<vmem>>, vector<1x2x8x128xf32>
    %88 = vector.shape_cast %87 : vector<1x2x8x128xf32> to vector<2x8x128xf32>
    %89 = vector.shape_cast %86 : vector<2x8x128xf32> to vector<1x2x8x128xf32>
    tpu.vector_store %arg11[%c2_65, %c0_66, %c0_67, %c0_68], %89 {strides = array<i32>} : memref<21x2x8x128xf32, #tpu.memory_space<vmem>>, vector<1x2x8x128xf32>,
    %90 = arith.mulf %83, %28 : vector<2x8x128xf32>
    %c1 = arith.constant 1 : index
    %c0_69 = arith.constant 0 : index
    %c0_70 = arith.constant 0 : index
    %c0_71 = arith.constant 0 : index
    %91 = vector.load %arg11[%c1, %c0_69, %c0_70, %c0_71] : memref<21x2x8x128xf32, #tpu.memory_space<vmem>>, vector<1x2x8x128xf32>
    %92 = vector.shape_cast %91 : vector<1x2x8x128xf32> to vector<2x8x128xf32>
    %93 = arith.addf %92, %90 : vector<2x8x128xf32>
    %c1_72 = arith.constant 1 : index
    %c0_73 = arith.constant 0 : index
    %c0_74 = arith.constant 0 : index
    %c0_75 = arith.constant 0 : index
    %94 = vector.load %arg11[%c1_72, %c0_73, %c0_74, %c0_75] : memref<21x2x8x128xf32, #tpu.memory_space<vmem>>, vector<1x2x8x128xf32>
    %95 = vector.shape_cast %94 : vector<1x2x8x128xf32> to vector<2x8x128xf32>
    %96 = vector.shape_cast %93 : vector<2x8x128xf32> to vector<1x2x8x128xf32>
    tpu.vector_store %arg11[%c1_72, %c0_73, %c0_74, %c0_75], %96 {strides = array<i32>} : memref<21x2x8x128xf32, #tpu.memory_space<vmem>>, vector<1x2x8x128xf32>,
    %97 = arith.mulf %90, %28 : vector<2x8x128xf32>
    %c0_76 = arith.constant 0 : index
    %c0_77 = arith.constant 0 : index
    %c0_78 = arith.constant 0 : index
    %c0_79 = arith.constant 0 : index
    %98 = vector.load %arg11[%c0_76, %c0_77, %c0_78, %c0_79] : memref<21x2x8x128xf32, #tpu.memory_space<vmem>>, vector<1x2x8x128xf32>
    %99 = vector.shape_cast %98 : vector<1x2x8x128xf32> to vector<2x8x128xf32>
    %100 = arith.addf %99, %97 : vector<2x8x128xf32>
    %c0_80 = arith.constant 0 : index
    %c0_81 = arith.constant 0 : index
    %c0_82 = arith.constant 0 : index
    %c0_83 = arith.constant 0 : index
    %101 = vector.load %arg11[%c0_80, %c0_81, %c0_82, %c0_83] : memref<21x2x8x128xf32, #tpu.memory_space<vmem>>, vector<1x2x8x128xf32>
    %102 = vector.shape_cast %101 : vector<1x2x8x128xf32> to vector<2x8x128xf32>
    %103 = vector.shape_cast %100 : vector<2x8x128xf32> to vector<1x2x8x128xf32>
    tpu.vector_store %arg11[%c0_80, %c0_81, %c0_82, %c0_83], %103 {strides = array<i32>} : memref<21x2x8x128xf32, #tpu.memory_space<vmem>>, vector<1x2x8x128xf32>,
    %cst_84 = arith.constant 4.500000e-01 : f32
    %104 = vector.broadcast %cst_84 : f32 to vector<2x8x128xf32>
    %105 = arith.subf %24, %104 : vector<2x8x128xf32>
    %106 = arith.mulf %105, %105 : vector<2x8x128xf32>
    %cst_85 = arith.constant -5.000000e+01 : f32
    %107 = vector.broadcast %cst_85 : f32 to vector<2x8x128xf32>
    %108 = arith.mulf %106, %107 : vector<2x8x128xf32>
    %109 = math.exp %108 : vector<2x8x128xf32>
    %c14 = arith.constant 14 : index
    %c0_86 = arith.constant 0 : index
    %c0_87 = arith.constant 0 : index
    %c0_88 = arith.constant 0 : index
    %110 = vector.load %arg11[%c14, %c0_86, %c0_87, %c0_88] : memref<21x2x8x128xf32, #tpu.memory_space<vmem>>, vector<1x2x8x128xf32>
    %111 = vector.shape_cast %110 : vector<1x2x8x128xf32> to vector<2x8x128xf32>
    %112 = arith.addf %111, %109 : vector<2x8x128xf32>
    %c14_89 = arith.constant 14 : index
    %c0_90 = arith.constant 0 : index
    %c0_91 = arith.constant 0 : index
    %c0_92 = arith.constant 0 : index
    %113 = vector.load %arg11[%c14_89, %c0_90, %c0_91, %c0_92] : memref<21x2x8x128xf32, #tpu.memory_space<vmem>>, vector<1x2x8x128xf32>
    %114 = vector.shape_cast %113 : vector<1x2x8x128xf32> to vector<2x8x128xf32>
    %115 = vector.shape_cast %112 : vector<2x8x128xf32> to vector<1x2x8x128xf32>
    tpu.vector_store %arg11[%c14_89, %c0_90, %c0_91, %c0_92], %115 {strides = array<i32>} : memref<21x2x8x128xf32, #tpu.memory_space<vmem>>, vector<1x2x8x128xf32>,
    %116 = arith.mulf %109, %27 : vector<2x8x128xf32>
    %c15 = arith.constant 15 : index
    %c0_93 = arith.constant 0 : index
    %c0_94 = arith.constant 0 : index
    %c0_95 = arith.constant 0 : index
    %117 = vector.load %arg11[%c15, %c0_93, %c0_94, %c0_95] : memref<21x2x8x128xf32, #tpu.memory_space<vmem>>, vector<1x2x8x128xf32>
    %118 = vector.shape_cast %117 : vector<1x2x8x128xf32> to vector<2x8x128xf32>
    %119 = arith.addf %118, %116 : vector<2x8x128xf32>
    %c15_96 = arith.constant 15 : index
    %c0_97 = arith.constant 0 : index
    %c0_98 = arith.constant 0 : index
    %c0_99 = arith.constant 0 : index
    %120 = vector.load %arg11[%c15_96, %c0_97, %c0_98, %c0_99] : memref<21x2x8x128xf32, #tpu.memory_space<vmem>>, vector<1x2x8x128xf32>
    %121 = vector.shape_cast %120 : vector<1x2x8x128xf32> to vector<2x8x128xf32>
    %122 = vector.shape_cast %119 : vector<2x8x128xf32> to vector<1x2x8x128xf32>
    tpu.vector_store %arg11[%c15_96, %c0_97, %c0_98, %c0_99], %122 {strides = array<i32>} : memref<21x2x8x128xf32, #tpu.memory_space<vmem>>, vector<1x2x8x128xf32>,
    %123 = arith.mulf %116, %27 : vector<2x8x128xf32>
    %c16 = arith.constant 16 : index
    %c0_100 = arith.constant 0 : index
    %c0_101 = arith.constant 0 : index
    %c0_102 = arith.constant 0 : index
    %124 = vector.load %arg11[%c16, %c0_100, %c0_101, %c0_102] : memref<21x2x8x128xf32, #tpu.memory_space<vmem>>, vector<1x2x8x128xf32>
    %125 = vector.shape_cast %124 : vector<1x2x8x128xf32> to vector<2x8x128xf32>
    %126 = arith.addf %125, %123 : vector<2x8x128xf32>
    %c16_103 = arith.constant 16 : index
    %c0_104 = arith.constant 0 : index
    %c0_105 = arith.constant 0 : index
    %c0_106 = arith.constant 0 : index
    %127 = vector.load %arg11[%c16_103, %c0_104, %c0_105, %c0_106] : memref<21x2x8x128xf32, #tpu.memory_space<vmem>>, vector<1x2x8x128xf32>
    %128 = vector.shape_cast %127 : vector<1x2x8x128xf32> to vector<2x8x128xf32>
    %129 = vector.shape_cast %126 : vector<2x8x128xf32> to vector<1x2x8x128xf32>
    tpu.vector_store %arg11[%c16_103, %c0_104, %c0_105, %c0_106], %129 {strides = array<i32>} : memref<21x2x8x128xf32, #tpu.memory_space<vmem>>, vector<1x2x8x128xf32>,
    %130 = arith.mulf %123, %27 : vector<2x8x128xf32>
    %c17 = arith.constant 17 : index
    %c0_107 = arith.constant 0 : index
    %c0_108 = arith.constant 0 : index
    %c0_109 = arith.constant 0 : index
    %131 = vector.load %arg11[%c17, %c0_107, %c0_108, %c0_109] : memref<21x2x8x128xf32, #tpu.memory_space<vmem>>, vector<1x2x8x128xf32>
    %132 = vector.shape_cast %131 : vector<1x2x8x128xf32> to vector<2x8x128xf32>
    %133 = arith.addf %132, %130 : vector<2x8x128xf32>
    %c17_110 = arith.constant 17 : index
    %c0_111 = arith.constant 0 : index
    %c0_112 = arith.constant 0 : index
    %c0_113 = arith.constant 0 : index
    %134 = vector.load %arg11[%c17_110, %c0_111, %c0_112, %c0_113] : memref<21x2x8x128xf32, #tpu.memory_space<vmem>>, vector<1x2x8x128xf32>
    %135 = vector.shape_cast %134 : vector<1x2x8x128xf32> to vector<2x8x128xf32>
    %136 = vector.shape_cast %133 : vector<2x8x128xf32> to vector<1x2x8x128xf32>
    tpu.vector_store %arg11[%c17_110, %c0_111, %c0_112, %c0_113], %136 {strides = array<i32>} : memref<21x2x8x128xf32, #tpu.memory_space<vmem>>, vector<1x2x8x128xf32>,
    %137 = arith.mulf %130, %27 : vector<2x8x128xf32>
    %c18 = arith.constant 18 : index
    %c0_114 = arith.constant 0 : index
    %c0_115 = arith.constant 0 : index
    %c0_116 = arith.constant 0 : index
    %138 = vector.load %arg11[%c18, %c0_114, %c0_115, %c0_116] : memref<21x2x8x128xf32, #tpu.memory_space<vmem>>, vector<1x2x8x128xf32>
    %139 = vector.shape_cast %138 : vector<1x2x8x128xf32> to vector<2x8x128xf32>
    %140 = arith.addf %139, %137 : vector<2x8x128xf32>
    %c18_117 = arith.constant 18 : index
    %c0_118 = arith.constant 0 : index
    %c0_119 = arith.constant 0 : index
    %c0_120 = arith.constant 0 : index
    %141 = vector.load %arg11[%c18_117, %c0_118, %c0_119, %c0_120] : memref<21x2x8x128xf32, #tpu.memory_space<vmem>>, vector<1x2x8x128xf32>
    %142 = vector.shape_cast %141 : vector<1x2x8x128xf32> to vector<2x8x128xf32>
    %143 = vector.shape_cast %140 : vector<2x8x128xf32> to vector<1x2x8x128xf32>
    tpu.vector_store %arg11[%c18_117, %c0_118, %c0_119, %c0_120], %143 {strides = array<i32>} : memref<21x2x8x128xf32, #tpu.memory_space<vmem>>, vector<1x2x8x128xf32>,
    %144 = arith.mulf %137, %27 : vector<2x8x128xf32>
    %c19 = arith.constant 19 : index
    %c0_121 = arith.constant 0 : index
    %c0_122 = arith.constant 0 : index
    %c0_123 = arith.constant 0 : index
    %145 = vector.load %arg11[%c19, %c0_121, %c0_122, %c0_123] : memref<21x2x8x128xf32, #tpu.memory_space<vmem>>, vector<1x2x8x128xf32>
    %146 = vector.shape_cast %145 : vector<1x2x8x128xf32> to vector<2x8x128xf32>
    %147 = arith.addf %146, %144 : vector<2x8x128xf32>
    %c19_124 = arith.constant 19 : index
    %c0_125 = arith.constant 0 : index
    %c0_126 = arith.constant 0 : index
    %c0_127 = arith.constant 0 : index
    %148 = vector.load %arg11[%c19_124, %c0_125, %c0_126, %c0_127] : memref<21x2x8x128xf32, #tpu.memory_space<vmem>>, vector<1x2x8x128xf32>
    %149 = vector.shape_cast %148 : vector<1x2x8x128xf32> to vector<2x8x128xf32>
    %150 = vector.shape_cast %147 : vector<2x8x128xf32> to vector<1x2x8x128xf32>
    tpu.vector_store %arg11[%c19_124, %c0_125, %c0_126, %c0_127], %150 {strides = array<i32>} : memref<21x2x8x128xf32, #tpu.memory_space<vmem>>, vector<1x2x8x128xf32>,
    %151 = arith.mulf %109, %28 : vector<2x8x128xf32>
    %c13 = arith.constant 13 : index
    %c0_128 = arith.constant 0 : index
    %c0_129 = arith.constant 0 : index
    %c0_130 = arith.constant 0 : index
    %152 = vector.load %arg11[%c13, %c0_128, %c0_129, %c0_130] : memref<21x2x8x128xf32, #tpu.memory_space<vmem>>, vector<1x2x8x128xf32>
    %153 = vector.shape_cast %152 : vector<1x2x8x128xf32> to vector<2x8x128xf32>
    %154 = arith.addf %153, %151 : vector<2x8x128xf32>
    %c13_131 = arith.constant 13 : index
    %c0_132 = arith.constant 0 : index
    %c0_133 = arith.constant 0 : index
    %c0_134 = arith.constant 0 : index
    %155 = vector.load %arg11[%c13_131, %c0_132, %c0_133, %c0_134] : memref<21x2x8x128xf32, #tpu.memory_space<vmem>>, vector<1x2x8x128xf32>
    %156 = vector.shape_cast %155 : vector<1x2x8x128xf32> to vector<2x8x128xf32>
    %157 = vector.shape_cast %154 : vector<2x8x128xf32> to vector<1x2x8x128xf32>
    tpu.vector_store %arg11[%c13_131, %c0_132, %c0_133, %c0_134], %157 {strides = array<i32>} : memref<21x2x8x128xf32, #tpu.memory_space<vmem>>, vector<1x2x8x128xf32>,
    %158 = arith.mulf %151, %28 : vector<2x8x128xf32>
    %c12 = arith.constant 12 : index
    %c0_135 = arith.constant 0 : index
    %c0_136 = arith.constant 0 : index
    %c0_137 = arith.constant 0 : index
    %159 = vector.load %arg11[%c12, %c0_135, %c0_136, %c0_137] : memref<21x2x8x128xf32, #tpu.memory_space<vmem>>, vector<1x2x8x128xf32>
    %160 = vector.shape_cast %159 : vector<1x2x8x128xf32> to vector<2x8x128xf32>
    %161 = arith.addf %160, %158 : vector<2x8x128xf32>
    %c12_138 = arith.constant 12 : index
    %c0_139 = arith.constant 0 : index
    %c0_140 = arith.constant 0 : index
    %c0_141 = arith.constant 0 : index
    %162 = vector.load %arg11[%c12_138, %c0_139, %c0_140, %c0_141] : memref<21x2x8x128xf32, #tpu.memory_space<vmem>>, vector<1x2x8x128xf32>
    %163 = vector.shape_cast %162 : vector<1x2x8x128xf32> to vector<2x8x128xf32>
    %164 = vector.shape_cast %161 : vector<2x8x128xf32> to vector<1x2x8x128xf32>
    tpu.vector_store %arg11[%c12_138, %c0_139, %c0_140, %c0_141], %164 {strides = array<i32>} : memref<21x2x8x128xf32, #tpu.memory_space<vmem>>, vector<1x2x8x128xf32>,
    %165 = arith.mulf %158, %28 : vector<2x8x128xf32>
    %c11 = arith.constant 11 : index
    %c0_142 = arith.constant 0 : index
    %c0_143 = arith.constant 0 : index
    %c0_144 = arith.constant 0 : index
    %166 = vector.load %arg11[%c11, %c0_142, %c0_143, %c0_144] : memref<21x2x8x128xf32, #tpu.memory_space<vmem>>, vector<1x2x8x128xf32>
    %167 = vector.shape_cast %166 : vector<1x2x8x128xf32> to vector<2x8x128xf32>
    %168 = arith.addf %167, %165 : vector<2x8x128xf32>
    %c11_145 = arith.constant 11 : index
    %c0_146 = arith.constant 0 : index
    %c0_147 = arith.constant 0 : index
    %c0_148 = arith.constant 0 : index
    %169 = vector.load %arg11[%c11_145, %c0_146, %c0_147, %c0_148] : memref<21x2x8x128xf32, #tpu.memory_space<vmem>>, vector<1x2x8x128xf32>
    %170 = vector.shape_cast %169 : vector<1x2x8x128xf32> to vector<2x8x128xf32>
    %171 = vector.shape_cast %168 : vector<2x8x128xf32> to vector<1x2x8x128xf32>
    tpu.vector_store %arg11[%c11_145, %c0_146, %c0_147, %c0_148], %171 {strides = array<i32>} : memref<21x2x8x128xf32, #tpu.memory_space<vmem>>, vector<1x2x8x128xf32>,
    %172 = arith.mulf %165, %28 : vector<2x8x128xf32>
    %c10 = arith.constant 10 : index
    %c0_149 = arith.constant 0 : index
    %c0_150 = arith.constant 0 : index
    %c0_151 = arith.constant 0 : index
    %173 = vector.load %arg11[%c10, %c0_149, %c0_150, %c0_151] : memref<21x2x8x128xf32, #tpu.memory_space<vmem>>, vector<1x2x8x128xf32>
    %174 = vector.shape_cast %173 : vector<1x2x8x128xf32> to vector<2x8x128xf32>
    %175 = arith.addf %174, %172 : vector<2x8x128xf32>
    %c10_152 = arith.constant 10 : index
    %c0_153 = arith.constant 0 : index
    %c0_154 = arith.constant 0 : index
    %c0_155 = arith.constant 0 : index
    %176 = vector.load %arg11[%c10_152, %c0_153, %c0_154, %c0_155] : memref<21x2x8x128xf32, #tpu.memory_space<vmem>>, vector<1x2x8x128xf32>
    %177 = vector.shape_cast %176 : vector<1x2x8x128xf32> to vector<2x8x128xf32>
    %178 = vector.shape_cast %175 : vector<2x8x128xf32> to vector<1x2x8x128xf32>
    tpu.vector_store %arg11[%c10_152, %c0_153, %c0_154, %c0_155], %178 {strides = array<i32>} : memref<21x2x8x128xf32, #tpu.memory_space<vmem>>, vector<1x2x8x128xf32>,
    %cst_156 = arith.constant 1.000000e+00 : f32
    %179 = vector.broadcast %cst_156 : f32 to vector<2x8x128xf32>
    %180 = arith.subf %24, %179 : vector<2x8x128xf32>
    %181 = arith.mulf %180, %180 : vector<2x8x128xf32>
    %cst_157 = arith.constant -5.000000e+05 : f32
    %182 = vector.broadcast %cst_157 : f32 to vector<2x8x128xf32>
    %183 = arith.mulf %181, %182 : vector<2x8x128xf32>
    %184 = math.exp %183 : vector<2x8x128xf32>
    %c20 = arith.constant 20 : index
    %c0_158 = arith.constant 0 : index
    %c0_159 = arith.constant 0 : index
    %c0_160 = arith.constant 0 : index
    %185 = vector.load %arg11[%c20, %c0_158, %c0_159, %c0_160] : memref<21x2x8x128xf32, #tpu.memory_space<vmem>>, vector<1x2x8x128xf32>
    %186 = vector.shape_cast %185 : vector<1x2x8x128xf32> to vector<2x8x128xf32>
    %187 = arith.addf %186, %184 : vector<2x8x128xf32>
    %c20_161 = arith.constant 20 : index
    %c0_162 = arith.constant 0 : index
    %c0_163 = arith.constant 0 : index
    %c0_164 = arith.constant 0 : index
    %188 = vector.load %arg11[%c20_161, %c0_162, %c0_163, %c0_164] : memref<21x2x8x128xf32, #tpu.memory_space<vmem>>, vector<1x2x8x128xf32>
    %189 = vector.shape_cast %188 : vector<1x2x8x128xf32> to vector<2x8x128xf32>
    %190 = vector.shape_cast %187 : vector<2x8x128xf32> to vector<1x2x8x128xf32>
    tpu.vector_store %arg11[%c20_161, %c0_162, %c0_163, %c0_164], %190 {strides = array<i32>} : memref<21x2x8x128xf32, #tpu.memory_space<vmem>>, vector<1x2x8x128xf32>,
    %c0_i32_165 = arith.constant 0 : i32
    %191 = arith.cmpi eq, %arg1, %c0_i32_165 : i32
    %192 = arith.extui %191 : i1 to i32
    %c0_i32_166 = arith.constant 0 : i32
    %193 = arith.cmpi ne, %192, %c0_i32_166 : i32
    scf.if %193 {
      %c0_167 = arith.constant 0 : index
      %c0_168 = arith.constant 0 : index
      %c0_169 = arith.constant 0 : index
      %c0_170 = arith.constant 0 : index
      %194 = vector.load %arg11[%c0_167, %c0_168, %c0_169, %c0_170] : memref<21x2x8x128xf32, #tpu.memory_space<vmem>>, vector<1x2x8x128xf32>
      %195 = vector.shape_cast %194 : vector<1x2x8x128xf32> to vector<2x8x128xf32>
      %cst_171 = arith.constant dense<0.000000e+00> : vector<2x8xf32>
      %196 = vector.multi_reduction <add>, %195, %cst_171 [2] : vector<2x8x128xf32> to vector<2x8xf32>
      %197 = vector.shape_cast %196 : vector<2x8xf32> to vector<2x8x1xf32>
      %cst_172 = arith.constant 9.35762291E-14 : f32
      %198 = vector.broadcast %cst_172 : f32 to vector<2x8x1xf32>
      %199 = arith.mulf %198, %197 : vector<2x8x1xf32>
      %200 = math.log1p %199 : vector<2x8x1xf32>
      %cst_173 = arith.constant dense<0.000000e+00> : vector<2x1xf32>
      %201 = vector.multi_reduction <add>, %200, %cst_173 [1] : vector<2x8x1xf32> to vector<2x1xf32>
      %c1_174 = arith.constant 1 : index
      %c0_175 = arith.constant 0 : index
      %c0_176 = arith.constant 0 : index
      %c0_177 = arith.constant 0 : index
      %202 = vector.load %arg11[%c1_174, %c0_175, %c0_176, %c0_177] : memref<21x2x8x128xf32, #tpu.memory_space<vmem>>, vector<1x2x8x128xf32>
      %203 = vector.shape_cast %202 : vector<1x2x8x128xf32> to vector<2x8x128xf32>
      %cst_178 = arith.constant dense<0.000000e+00> : vector<2x8xf32>
      %204 = vector.multi_reduction <add>, %203, %cst_178 [2] : vector<2x8x128xf32> to vector<2x8xf32>
      %205 = vector.shape_cast %204 : vector<2x8xf32> to vector<2x8x1xf32>
      %cst_179 = arith.constant 7.58256069E-10 : f32
      %206 = vector.broadcast %cst_179 : f32 to vector<2x8x1xf32>
      %207 = arith.mulf %206, %205 : vector<2x8x1xf32>
      %208 = math.log1p %207 : vector<2x8x1xf32>
      %cst_180 = arith.constant dense<0.000000e+00> : vector<2x1xf32>
      %209 = vector.multi_reduction <add>, %208, %cst_180 [1] : vector<2x8x1xf32> to vector<2x1xf32>
      %c2_181 = arith.constant 2 : index
      %c0_182 = arith.constant 0 : index
      %c0_183 = arith.constant 0 : index
      %c0_184 = arith.constant 0 : index
      %210 = vector.load %arg11[%c2_181, %c0_182, %c0_183, %c0_184] : memref<21x2x8x128xf32, #tpu.memory_space<vmem>>, vector<1x2x8x128xf32>
      %211 = vector.shape_cast %210 : vector<1x2x8x128xf32> to vector<2x8x128xf32>
      %cst_185 = arith.constant dense<0.000000e+00> : vector<2x8xf32>
      %212 = vector.multi_reduction <add>, %211, %cst_185 [2] : vector<2x8x128xf32> to vector<2x8xf32>
      %213 = vector.shape_cast %212 : vector<2x8xf32> to vector<2x8x1xf32>
      %cst_186 = arith.constant 2.26032944E-6 : f32
      %214 = vector.broadcast %cst_186 : f32 to vector<2x8x1xf32>
      %215 = arith.mulf %214, %213 : vector<2x8x1xf32>
      %216 = math.log1p %215 : vector<2x8x1xf32>
      %cst_187 = arith.constant dense<0.000000e+00> : vector<2x1xf32>
      %217 = vector.multi_reduction <add>, %216, %cst_187 [1] : vector<2x8x1xf32> to vector<2x1xf32>
      %c3_188 = arith.constant 3 : index
      %c0_189 = arith.constant 0 : index
      %c0_190 = arith.constant 0 : index
      %c0_191 = arith.constant 0 : index
      %218 = vector.load %arg11[%c3_188, %c0_189, %c0_190, %c0_191] : memref<21x2x8x128xf32, #tpu.memory_space<vmem>>, vector<1x2x8x128xf32>
      %219 = vector.shape_cast %218 : vector<1x2x8x128xf32> to vector<2x8x128xf32>
      %cst_192 = arith.constant dense<0.000000e+00> : vector<2x8xf32>
      %220 = vector.multi_reduction <add>, %219, %cst_192 [2] : vector<2x8x128xf32> to vector<2x8xf32>
      %221 = vector.shape_cast %220 : vector<2x8xf32> to vector<2x8x1xf32>
      %cst_193 = arith.constant 0.00247875229 : f32
      %222 = vector.broadcast %cst_193 : f32 to vector<2x8x1xf32>
      %223 = arith.mulf %222, %221 : vector<2x8x1xf32>
      %224 = math.log1p %223 : vector<2x8x1xf32>
      %cst_194 = arith.constant dense<0.000000e+00> : vector<2x1xf32>
      %225 = vector.multi_reduction <add>, %224, %cst_194 [1] : vector<2x8x1xf32> to vector<2x1xf32>
      %c4_195 = arith.constant 4 : index
      %c0_196 = arith.constant 0 : index
      %c0_197 = arith.constant 0 : index
      %c0_198 = arith.constant 0 : index
      %226 = vector.load %arg11[%c4_195, %c0_196, %c0_197, %c0_198] : memref<21x2x8x128xf32, #tpu.memory_space<vmem>>, vector<1x2x8x128xf32>
      %227 = vector.shape_cast %226 : vector<1x2x8x128xf32> to vector<2x8x128xf32>
      %cst_199 = arith.constant dense<0.000000e+00> : vector<2x8xf32>
      %228 = vector.multi_reduction <add>, %227, %cst_199 [2] : vector<2x8x128xf32> to vector<2x8xf32>
      %229 = vector.shape_cast %228 : vector<2x8xf32> to vector<2x8x1xf32>
      %cst_200 = arith.constant 1.000000e+00 : f32
      %230 = vector.broadcast %cst_200 : f32 to vector<2x8x1xf32>
      %231 = arith.mulf %230, %229 : vector<2x8x1xf32>
      %232 = math.log1p %231 : vector<2x8x1xf32>
      %cst_201 = arith.constant dense<0.000000e+00> : vector<2x1xf32>
      %233 = vector.multi_reduction <add>, %232, %cst_201 [1] : vector<2x8x1xf32> to vector<2x1xf32>
      %c5_202 = arith.constant 5 : index
      %c0_203 = arith.constant 0 : index
      %c0_204 = arith.constant 0 : index
      %c0_205 = arith.constant 0 : index
      %234 = vector.load %arg11[%c5_202, %c0_203, %c0_204, %c0_205] : memref<21x2x8x128xf32, #tpu.memory_space<vmem>>, vector<1x2x8x128xf32>
      %235 = vector.shape_cast %234 : vector<1x2x8x128xf32> to vector<2x8x128xf32>
      %cst_206 = arith.constant dense<0.000000e+00> : vector<2x8xf32>
      %236 = vector.multi_reduction <add>, %235, %cst_206 [2] : vector<2x8x128xf32> to vector<2x8xf32>
      %237 = vector.shape_cast %236 : vector<2x8xf32> to vector<2x8x1xf32>
      %cst_207 = arith.constant 148.413162 : f32
      %238 = vector.broadcast %cst_207 : f32 to vector<2x8x1xf32>
      %239 = arith.mulf %238, %237 : vector<2x8x1xf32>
      %240 = math.log1p %239 : vector<2x8x1xf32>
      %cst_208 = arith.constant dense<0.000000e+00> : vector<2x1xf32>
      %241 = vector.multi_reduction <add>, %240, %cst_208 [1] : vector<2x8x1xf32> to vector<2x1xf32>
      %c6_209 = arith.constant 6 : index
      %c0_210 = arith.constant 0 : index
      %c0_211 = arith.constant 0 : index
      %c0_212 = arith.constant 0 : index
      %242 = vector.load %arg11[%c6_209, %c0_210, %c0_211, %c0_212] : memref<21x2x8x128xf32, #tpu.memory_space<vmem>>, vector<1x2x8x128xf32>
      %243 = vector.shape_cast %242 : vector<1x2x8x128xf32> to vector<2x8x128xf32>
      %cst_213 = arith.constant dense<0.000000e+00> : vector<2x8xf32>
      %244 = vector.multi_reduction <add>, %243, %cst_213 [2] : vector<2x8x128xf32> to vector<2x8xf32>
      %245 = vector.shape_cast %244 : vector<2x8xf32> to vector<2x8x1xf32>
      %cst_214 = arith.constant 8103.08398 : f32
      %246 = vector.broadcast %cst_214 : f32 to vector<2x8x1xf32>
      %247 = arith.mulf %246, %245 : vector<2x8x1xf32>
      %248 = math.log1p %247 : vector<2x8x1xf32>
      %cst_215 = arith.constant dense<0.000000e+00> : vector<2x1xf32>
      %249 = vector.multi_reduction <add>, %248, %cst_215 [1] : vector<2x8x1xf32> to vector<2x1xf32>
      %c7_216 = arith.constant 7 : index
      %c0_217 = arith.constant 0 : index
      %c0_218 = arith.constant 0 : index
      %c0_219 = arith.constant 0 : index
      %250 = vector.load %arg11[%c7_216, %c0_217, %c0_218, %c0_219] : memref<21x2x8x128xf32, #tpu.memory_space<vmem>>, vector<1x2x8x128xf32>
      %251 = vector.shape_cast %250 : vector<1x2x8x128xf32> to vector<2x8x128xf32>
      %cst_220 = arith.constant dense<0.000000e+00> : vector<2x8xf32>
      %252 = vector.multi_reduction <add>, %251, %cst_220 [2] : vector<2x8x128xf32> to vector<2x8xf32>
      %253 = vector.shape_cast %252 : vector<2x8xf32> to vector<2x8x1xf32>
      %cst_221 = arith.constant 162754.797 : f32
      %254 = vector.broadcast %cst_221 : f32 to vector<2x8x1xf32>
      %255 = arith.mulf %254, %253 : vector<2x8x1xf32>
      %256 = math.log1p %255 : vector<2x8x1xf32>
      %cst_222 = arith.constant dense<0.000000e+00> : vector<2x1xf32>
      %257 = vector.multi_reduction <add>, %256, %cst_222 [1] : vector<2x8x1xf32> to vector<2x1xf32>
      %c8_223 = arith.constant 8 : index
      %c0_224 = arith.constant 0 : index
      %c0_225 = arith.constant 0 : index
      %c0_226 = arith.constant 0 : index
      %258 = vector.load %arg11[%c8_223, %c0_224, %c0_225, %c0_226] : memref<21x2x8x128xf32, #tpu.memory_space<vmem>>, vector<1x2x8x128xf32>
      %259 = vector.shape_cast %258 : vector<1x2x8x128xf32> to vector<2x8x128xf32>
      %cst_227 = arith.constant dense<0.000000e+00> : vector<2x8xf32>
      %260 = vector.multi_reduction <add>, %259, %cst_227 [2] : vector<2x8x128xf32> to vector<2x8xf32>
      %261 = vector.shape_cast %260 : vector<2x8xf32> to vector<2x8x1xf32>
      %cst_228 = arith.constant 1202604.25 : f32
      %262 = vector.broadcast %cst_228 : f32 to vector<2x8x1xf32>
      %263 = arith.mulf %262, %261 : vector<2x8x1xf32>
      %264 = math.log1p %263 : vector<2x8x1xf32>
      %cst_229 = arith.constant dense<0.000000e+00> : vector<2x1xf32>
      %265 = vector.multi_reduction <add>, %264, %cst_229 [1] : vector<2x8x1xf32> to vector<2x1xf32>
      %c9_230 = arith.constant 9 : index
      %c0_231 = arith.constant 0 : index
      %c0_232 = arith.constant 0 : index
      %c0_233 = arith.constant 0 : index
      %266 = vector.load %arg11[%c9_230, %c0_231, %c0_232, %c0_233] : memref<21x2x8x128xf32, #tpu.memory_space<vmem>>, vector<1x2x8x128xf32>
      %267 = vector.shape_cast %266 : vector<1x2x8x128xf32> to vector<2x8x128xf32>
      %cst_234 = arith.constant dense<0.000000e+00> : vector<2x8xf32>
      %268 = vector.multi_reduction <add>, %267, %cst_234 [2] : vector<2x8x128xf32> to vector<2x8xf32>
      %269 = vector.shape_cast %268 : vector<2x8xf32> to vector<2x8x1xf32>
      %cst_235 = arith.constant 3269017.25 : f32
      %270 = vector.broadcast %cst_235 : f32 to vector<2x8x1xf32>
      %271 = arith.mulf %270, %269 : vector<2x8x1xf32>
      %272 = math.log1p %271 : vector<2x8x1xf32>
      %cst_236 = arith.constant dense<0.000000e+00> : vector<2x1xf32>
      %273 = vector.multi_reduction <add>, %272, %cst_236 [1] : vector<2x8x1xf32> to vector<2x1xf32>
      %c10_237 = arith.constant 10 : index
      %c0_238 = arith.constant 0 : index
      %c0_239 = arith.constant 0 : index
      %c0_240 = arith.constant 0 : index
      %274 = vector.load %arg11[%c10_237, %c0_238, %c0_239, %c0_240] : memref<21x2x8x128xf32, #tpu.memory_space<vmem>>, vector<1x2x8x128xf32>
      %275 = vector.shape_cast %274 : vector<1x2x8x128xf32> to vector<2x8x128xf32>
      %cst_241 = arith.constant dense<0.000000e+00> : vector<2x8xf32>
      %276 = vector.multi_reduction <add>, %275, %cst_241 [2] : vector<2x8x128xf32> to vector<2x8xf32>
      %277 = vector.shape_cast %276 : vector<2x8xf32> to vector<2x8x1xf32>
      %cst_242 = arith.constant 22026.4648 : f32
      %278 = vector.broadcast %cst_242 : f32 to vector<2x8x1xf32>
      %279 = arith.mulf %278, %277 : vector<2x8x1xf32>
      %280 = math.log1p %279 : vector<2x8x1xf32>
      %cst_243 = arith.constant dense<0.000000e+00> : vector<2x1xf32>
      %281 = vector.multi_reduction <add>, %280, %cst_243 [1] : vector<2x8x1xf32> to vector<2x1xf32>
      %c11_244 = arith.constant 11 : index
      %c0_245 = arith.constant 0 : index
      %c0_246 = arith.constant 0 : index
      %c0_247 = arith.constant 0 : index
      %282 = vector.load %arg11[%c11_244, %c0_245, %c0_246, %c0_247] : memref<21x2x8x128xf32, #tpu.memory_space<vmem>>, vector<1x2x8x128xf32>
      %283 = vector.shape_cast %282 : vector<1x2x8x128xf32> to vector<2x8x128xf32>
      %cst_248 = arith.constant dense<0.000000e+00> : vector<2x8xf32>
      %284 = vector.multi_reduction <add>, %283, %cst_248 [2] : vector<2x8x128xf32> to vector<2x8xf32>
      %285 = vector.shape_cast %284 : vector<2x8xf32> to vector<2x8x1xf32>
      %cst_249 = arith.constant 8103.08398 : f32
      %286 = vector.broadcast %cst_249 : f32 to vector<2x8x1xf32>
      %287 = arith.mulf %286, %285 : vector<2x8x1xf32>
      %288 = math.log1p %287 : vector<2x8x1xf32>
      %cst_250 = arith.constant dense<0.000000e+00> : vector<2x1xf32>
      %289 = vector.multi_reduction <add>, %288, %cst_250 [1] : vector<2x8x1xf32> to vector<2x1xf32>
      %c12_251 = arith.constant 12 : index
      %c0_252 = arith.constant 0 : index
      %c0_253 = arith.constant 0 : index
      %c0_254 = arith.constant 0 : index
      %290 = vector.load %arg11[%c12_251, %c0_252, %c0_253, %c0_254] : memref<21x2x8x128xf32, #tpu.memory_space<vmem>>, vector<1x2x8x128xf32>
      %291 = vector.shape_cast %290 : vector<1x2x8x128xf32> to vector<2x8x128xf32>
      %cst_255 = arith.constant dense<0.000000e+00> : vector<2x8xf32>
      %292 = vector.multi_reduction <add>, %291, %cst_255 [2] : vector<2x8x128xf32> to vector<2x8xf32>
      %293 = vector.shape_cast %292 : vector<2x8xf32> to vector<2x8x1xf32>
      %cst_256 = arith.constant 1096.63318 : f32
      %294 = vector.broadcast %cst_256 : f32 to vector<2x8x1xf32>
      %295 = arith.mulf %294, %293 : vector<2x8x1xf32>
      %296 = math.log1p %295 : vector<2x8x1xf32>
      %cst_257 = arith.constant dense<0.000000e+00> : vector<2x1xf32>
      %297 = vector.multi_reduction <add>, %296, %cst_257 [1] : vector<2x8x1xf32> to vector<2x1xf32>
      %c13_258 = arith.constant 13 : index
      %c0_259 = arith.constant 0 : index
      %c0_260 = arith.constant 0 : index
      %c0_261 = arith.constant 0 : index
      %298 = vector.load %arg11[%c13_258, %c0_259, %c0_260, %c0_261] : memref<21x2x8x128xf32, #tpu.memory_space<vmem>>, vector<1x2x8x128xf32>
      %299 = vector.shape_cast %298 : vector<1x2x8x128xf32> to vector<2x8x128xf32>
      %cst_262 = arith.constant dense<0.000000e+00> : vector<2x8xf32>
      %300 = vector.multi_reduction <add>, %299, %cst_262 [2] : vector<2x8x128xf32> to vector<2x8xf32>
      %301 = vector.shape_cast %300 : vector<2x8xf32> to vector<2x8x1xf32>
      %cst_263 = arith.constant 54.5981483 : f32
      %302 = vector.broadcast %cst_263 : f32 to vector<2x8x1xf32>
      %303 = arith.mulf %302, %301 : vector<2x8x1xf32>
      %304 = math.log1p %303 : vector<2x8x1xf32>
      %cst_264 = arith.constant dense<0.000000e+00> : vector<2x1xf32>
      %305 = vector.multi_reduction <add>, %304, %cst_264 [1] : vector<2x8x1xf32> to vector<2x1xf32>
      %c14_265 = arith.constant 14 : index
      %c0_266 = arith.constant 0 : index
      %c0_267 = arith.constant 0 : index
      %c0_268 = arith.constant 0 : index
      %306 = vector.load %arg11[%c14_265, %c0_266, %c0_267, %c0_268] : memref<21x2x8x128xf32, #tpu.memory_space<vmem>>, vector<1x2x8x128xf32>
      %307 = vector.shape_cast %306 : vector<1x2x8x128xf32> to vector<2x8x128xf32>
      %cst_269 = arith.constant dense<0.000000e+00> : vector<2x8xf32>
      %308 = vector.multi_reduction <add>, %307, %cst_269 [2] : vector<2x8x128xf32> to vector<2x8xf32>
      %309 = vector.shape_cast %308 : vector<2x8xf32> to vector<2x8x1xf32>
      %cst_270 = arith.constant 1.000000e+00 : f32
      %310 = vector.broadcast %cst_270 : f32 to vector<2x8x1xf32>
      %311 = arith.mulf %310, %309 : vector<2x8x1xf32>
      %312 = math.log1p %311 : vector<2x8x1xf32>
      %cst_271 = arith.constant dense<0.000000e+00> : vector<2x1xf32>
      %313 = vector.multi_reduction <add>, %312, %cst_271 [1] : vector<2x8x1xf32> to vector<2x1xf32>
      %c15_272 = arith.constant 15 : index
      %c0_273 = arith.constant 0 : index
      %c0_274 = arith.constant 0 : index
      %c0_275 = arith.constant 0 : index
      %314 = vector.load %arg11[%c15_272, %c0_273, %c0_274, %c0_275] : memref<21x2x8x128xf32, #tpu.memory_space<vmem>>, vector<1x2x8x128xf32>
      %315 = vector.shape_cast %314 : vector<1x2x8x128xf32> to vector<2x8x128xf32>
      %cst_276 = arith.constant dense<0.000000e+00> : vector<2x8xf32>
      %316 = vector.multi_reduction <add>, %315, %cst_276 [2] : vector<2x8x128xf32> to vector<2x8xf32>
      %317 = vector.shape_cast %316 : vector<2x8xf32> to vector<2x8x1xf32>
      %cst_277 = arith.constant 0.006737947 : f32
      %318 = vector.broadcast %cst_277 : f32 to vector<2x8x1xf32>
      %319 = arith.mulf %318, %317 : vector<2x8x1xf32>
      %320 = math.log1p %319 : vector<2x8x1xf32>
      %cst_278 = arith.constant dense<0.000000e+00> : vector<2x1xf32>
      %321 = vector.multi_reduction <add>, %320, %cst_278 [1] : vector<2x8x1xf32> to vector<2x1xf32>
      %c16_279 = arith.constant 16 : index
      %c0_280 = arith.constant 0 : index
      %c0_281 = arith.constant 0 : index
      %c0_282 = arith.constant 0 : index
      %322 = vector.load %arg11[%c16_279, %c0_280, %c0_281, %c0_282] : memref<21x2x8x128xf32, #tpu.memory_space<vmem>>, vector<1x2x8x128xf32>
      %323 = vector.shape_cast %322 : vector<1x2x8x128xf32> to vector<2x8x128xf32>
      %cst_283 = arith.constant dense<0.000000e+00> : vector<2x8xf32>
      %324 = vector.multi_reduction <add>, %323, %cst_283 [2] : vector<2x8x128xf32> to vector<2x8xf32>
      %325 = vector.shape_cast %324 : vector<2x8xf32> to vector<2x8x1xf32>
      %cst_284 = arith.constant 1.670170e-05 : f32
      %326 = vector.broadcast %cst_284 : f32 to vector<2x8x1xf32>
      %327 = arith.mulf %326, %325 : vector<2x8x1xf32>
      %328 = math.log1p %327 : vector<2x8x1xf32>
      %cst_285 = arith.constant dense<0.000000e+00> : vector<2x1xf32>
      %329 = vector.multi_reduction <add>, %328, %cst_285 [1] : vector<2x8x1xf32> to vector<2x1xf32>
      %c17_286 = arith.constant 17 : index
      %c0_287 = arith.constant 0 : index
      %c0_288 = arith.constant 0 : index
      %c0_289 = arith.constant 0 : index
      %330 = vector.load %arg11[%c17_286, %c0_287, %c0_288, %c0_289] : memref<21x2x8x128xf32, #tpu.memory_space<vmem>>, vector<1x2x8x128xf32>
      %331 = vector.shape_cast %330 : vector<1x2x8x128xf32> to vector<2x8x128xf32>
      %cst_290 = arith.constant dense<0.000000e+00> : vector<2x8xf32>
      %332 = vector.multi_reduction <add>, %331, %cst_290 [2] : vector<2x8x128xf32> to vector<2x8xf32>
      %333 = vector.shape_cast %332 : vector<2x8xf32> to vector<2x8x1xf32>
      %cst_291 = arith.constant 1.52299791E-8 : f32
      %334 = vector.broadcast %cst_291 : f32 to vector<2x8x1xf32>
      %335 = arith.mulf %334, %333 : vector<2x8x1xf32>
      %336 = math.log1p %335 : vector<2x8x1xf32>
      %cst_292 = arith.constant dense<0.000000e+00> : vector<2x1xf32>
      %337 = vector.multi_reduction <add>, %336, %cst_292 [1] : vector<2x8x1xf32> to vector<2x1xf32>
      %c18_293 = arith.constant 18 : index
      %c0_294 = arith.constant 0 : index
      %c0_295 = arith.constant 0 : index
      %c0_296 = arith.constant 0 : index
      %338 = vector.load %arg11[%c18_293, %c0_294, %c0_295, %c0_296] : memref<21x2x8x128xf32, #tpu.memory_space<vmem>>, vector<1x2x8x128xf32>
      %339 = vector.shape_cast %338 : vector<1x2x8x128xf32> to vector<2x8x128xf32>
      %cst_297 = arith.constant dense<0.000000e+00> : vector<2x8xf32>
      %340 = vector.multi_reduction <add>, %339, %cst_297 [2] : vector<2x8x128xf32> to vector<2x8xf32>
      %341 = vector.shape_cast %340 : vector<2x8xf32> to vector<2x8x1xf32>
      %cst_298 = arith.constant 5.10908893E-12 : f32
      %342 = vector.broadcast %cst_298 : f32 to vector<2x8x1xf32>
      %343 = arith.mulf %342, %341 : vector<2x8x1xf32>
      %344 = math.log1p %343 : vector<2x8x1xf32>
      %cst_299 = arith.constant dense<0.000000e+00> : vector<2x1xf32>
      %345 = vector.multi_reduction <add>, %344, %cst_299 [1] : vector<2x8x1xf32> to vector<2x1xf32>
      %c19_300 = arith.constant 19 : index
      %c0_301 = arith.constant 0 : index
      %c0_302 = arith.constant 0 : index
      %c0_303 = arith.constant 0 : index
      %346 = vector.load %arg11[%c19_300, %c0_301, %c0_302, %c0_303] : memref<21x2x8x128xf32, #tpu.memory_space<vmem>>, vector<1x2x8x128xf32>
      %347 = vector.shape_cast %346 : vector<1x2x8x128xf32> to vector<2x8x128xf32>
      %cst_304 = arith.constant dense<0.000000e+00> : vector<2x8xf32>
      %348 = vector.multi_reduction <add>, %347, %cst_304 [2] : vector<2x8x128xf32> to vector<2x8xf32>
      %349 = vector.shape_cast %348 : vector<2x8xf32> to vector<2x8x1xf32>
      %cst_305 = arith.constant 6.30511685E-16 : f32
      %350 = vector.broadcast %cst_305 : f32 to vector<2x8x1xf32>
      %351 = arith.mulf %350, %349 : vector<2x8x1xf32>
      %352 = math.log1p %351 : vector<2x8x1xf32>
      %cst_306 = arith.constant dense<0.000000e+00> : vector<2x1xf32>
      %353 = vector.multi_reduction <add>, %352, %cst_306 [1] : vector<2x8x1xf32> to vector<2x1xf32>
      %c20_307 = arith.constant 20 : index
      %c0_308 = arith.constant 0 : index
      %c0_309 = arith.constant 0 : index
      %c0_310 = arith.constant 0 : index
      %354 = vector.load %arg11[%c20_307, %c0_308, %c0_309, %c0_310] : memref<21x2x8x128xf32, #tpu.memory_space<vmem>>, vector<1x2x8x128xf32>
      %355 = vector.shape_cast %354 : vector<1x2x8x128xf32> to vector<2x8x128xf32>
      %cst_311 = arith.constant dense<0.000000e+00> : vector<2x8xf32>
      %356 = vector.multi_reduction <add>, %355, %cst_311 [2] : vector<2x8x128xf32> to vector<2x8xf32>
      %357 = vector.shape_cast %356 : vector<2x8xf32> to vector<2x8x1xf32>
      %cst_312 = arith.constant 1.000000e+00 : f32
      %358 = vector.broadcast %cst_312 : f32 to vector<2x8x1xf32>
      %359 = arith.mulf %358, %357 : vector<2x8x1xf32>
      %360 = math.log1p %359 : vector<2x8x1xf32>
      %cst_313 = arith.constant dense<0.000000e+00> : vector<2x1xf32>
      %361 = vector.multi_reduction <add>, %360, %cst_313 [1] : vector<2x8x1xf32> to vector<2x1xf32>
      %362 = tpu.concatenate %201, %209, %217, %225, %233, %241, %249, %257, %265, %273, %281, %289, %297, %305, %313, %321 in 1 : vector<2x1xf32>, vector<2x1xf32>, vector<2x1xf32>, vector<2x1xf32>, vector<2x1xf32>, vector<2x1xf32>, vector<2x1xf32>, vector<2x1xf32>, vector<2x1xf32>, vector<2x1xf32>, vector<2x1xf32>, vector<2x1xf32>, vector<2x1xf32>, vector<2x1xf32>, vector<2x1xf32>, vector<2x1xf32> -> vector<2x16xf32>
      %363 = tpu.concatenate %329, %337, %345, %353, %361 in 1 : vector<2x1xf32>, vector<2x1xf32>, vector<2x1xf32>, vector<2x1xf32>, vector<2x1xf32> -> vector<2x5xf32>
      %364 = tpu.concatenate %362, %363 in 1 : vector<2x16xf32>, vector<2x5xf32> -> vector<2x21xf32>
      %c0_314 = arith.constant 0 : index
      %c0_315 = arith.constant 0 : index
      %365 = vector.load %arg4[%c0_314, %c0_315] : memref<21x10xf32, #tpu.memory_space<vmem>>, vector<21x10xf32>
      %cst_316 = arith.constant dense<0.000000e+00> : vector<2x10xf32>
      %366 = tpu.matmul %364, %365, %cst_316 {dimension_numbers = #tpu.dot_dimension_numbers<[1], [0], [0], [1], [0, 0, 1, 1], [], []>} : vector<2x21xf32>, vector<21x10xf32>, vector<2x10xf32> -> vector<2x10xf32>
      %c0_317 = arith.constant 0 : index
      %c0_318 = arith.constant 0 : index
      %367 = vector.load %arg5[%c0_317, %c0_318] : memref<1x10xf32, #tpu.memory_space<vmem>>, vector<1x10xf32>
      %368 = vector.broadcast %367 : vector<1x10xf32> to vector<2x10xf32>
      %369 = arith.addf %366, %368 : vector<2x10xf32>
      %cst_319 = arith.constant 0.000000e+00 : f32
      %370 = vector.broadcast %cst_319 : f32 to vector<2x10xf32>
      %371 = arith.maximumf %369, %370 : vector<2x10xf32>
      %c0_320 = arith.constant 0 : index
      %c0_321 = arith.constant 0 : index
      %372 = vector.load %arg6[%c0_320, %c0_321] : memref<10x5xf32, #tpu.memory_space<vmem>>, vector<10x5xf32>
      %cst_322 = arith.constant dense<0.000000e+00> : vector<2x5xf32>
      %373 = tpu.matmul %371, %372, %cst_322 {dimension_numbers = #tpu.dot_dimension_numbers<[1], [0], [0], [1], [0, 0, 1, 1], [], []>} : vector<2x10xf32>, vector<10x5xf32>, vector<2x5xf32> -> vector<2x5xf32>
      %c0_323 = arith.constant 0 : index
      %c0_324 = arith.constant 0 : index
      %374 = vector.load %arg7[%c0_323, %c0_324] : memref<1x5xf32, #tpu.memory_space<vmem>>, vector<1x5xf32>
      %375 = vector.broadcast %374 : vector<1x5xf32> to vector<2x5xf32>
      %376 = arith.addf %373, %375 : vector<2x5xf32>
      %cst_325 = arith.constant 0.000000e+00 : f32
      %377 = vector.broadcast %cst_325 : f32 to vector<2x5xf32>
      %378 = arith.maximumf %376, %377 : vector<2x5xf32>
      %c0_326 = arith.constant 0 : index
      %c0_327 = arith.constant 0 : index
      %379 = vector.load %arg8[%c0_326, %c0_327] : memref<5x1xf32, #tpu.memory_space<vmem>>, vector<5x1xf32>
      %cst_328 = arith.constant dense<0.000000e+00> : vector<2x1xf32>
      %380 = tpu.matmul %378, %379, %cst_328 {dimension_numbers = #tpu.dot_dimension_numbers<[1], [0], [0], [1], [0, 0, 1, 1], [], []>} : vector<2x5xf32>, vector<5x1xf32>, vector<2x1xf32> -> vector<2x1xf32>
      %c0_329 = arith.constant 0 : index
      %c0_330 = arith.constant 0 : index
      %381 = vector.load %arg9[%c0_329, %c0_330] : memref<1x1xf32, #tpu.memory_space<vmem>>, vector<1x1xf32>
      %382 = vector.broadcast %381 : vector<1x1xf32> to vector<2x1xf32>
      %383 = arith.addf %380, %382 : vector<2x1xf32>
      %384 = vector.extract_strided_slice %383 {offsets = [0, 0], sizes = [1, 1], strides = [1, 1]} : vector<2x1xf32> to vector<1x1xf32>
      %385 = vector.extract_strided_slice %383 {offsets = [1, 0], sizes = [1, 1], strides = [1, 1]} : vector<2x1xf32> to vector<1x1xf32>
      %386 = arith.subf %384, %385 : vector<1x1xf32>
      %cst_331 = arith.constant 0.000000e+00 : f32
      %387 = vector.broadcast %cst_331 : f32 to vector<1x1xf32>
      %388 = arith.subf %387, %386 : vector<1x1xf32>
      %389 = math.exp %388 : vector<1x1xf32>
      %cst_332 = arith.constant 1.000000e+00 : f32
      %390 = vector.broadcast %cst_332 : f32 to vector<1x1xf32>
      %391 = arith.addf %390, %389 : vector<1x1xf32>
      %cst_333 = arith.constant 1.000000e+00 : f32
      %392 = vector.broadcast %cst_333 : f32 to vector<1x1xf32>
      %393 = arith.divf %392, %391 : vector<1x1xf32>
      %394 = vector.shape_cast %393 : vector<1x1xf32> to vector<1x1x1xf32>
      %395 = vector.shape_cast %394 : vector<1x1x1xf32> to vector<1x1x1xf32>
      %396 = vector.broadcast %395 : vector<1x1x1xf32> to vector<1x1x128xf32>
      %c0_334 = arith.constant 0 : index
      %c0_335 = arith.constant 0 : index
      %c0_336 = arith.constant 0 : index
      %397 = vector.load %arg10[%c0_334, %c0_335, %c0_336] : memref<1x1x128xf32, #tpu.memory_space<vmem>>, vector<1x1x128xf32>
      tpu.vector_store %arg10[%c0_334, %c0_335, %c0_336], %396 {strides = array<i32>} : memref<1x1x128xf32, #tpu.memory_space<vmem>>, vector<1x1x128xf32>,
    } else {
    }
    return
  }
  func.func @transform_0(%arg0: i32, %arg1: i32) -> (i32, i32, i32) {
    %c0_i32 = arith.constant 0 : i32
    %c0_i32_0 = arith.constant 0 : i32
    %c0_i32_1 = arith.constant 0 : i32
    return %arg0, %c0_i32, %c0_i32_0 : i32, i32, i32
  }
  func.func @transform_1(%arg0: i32, %arg1: i32) -> (i32, i32, i32) {
    %c0_i32 = arith.constant 0 : i32
    %c0_i32_0 = arith.constant 0 : i32
    return %arg0, %arg1, %c0_i32 : i32, i32, i32
  }
  func.func @transform_2(%arg0: i32, %arg1: i32) -> (i32, i32) {
    %c0_i32 = arith.constant 0 : i32
    %c0_i32_0 = arith.constant 0 : i32
    %c0_i32_1 = arith.constant 0 : i32
    return %c0_i32, %c0_i32_0 : i32, i32
  }
  func.func @transform_3(%arg0: i32, %arg1: i32) -> (i32, i32) {
    %c0_i32 = arith.constant 0 : i32
    %c0_i32_0 = arith.constant 0 : i32
    %c0_i32_1 = arith.constant 0 : i32
    return %c0_i32, %c0_i32_0 : i32, i32
  }
  func.func @transform_4(%arg0: i32, %arg1: i32) -> (i32, i32) {
    %c0_i32 = arith.constant 0 : i32
    %c0_i32_0 = arith.constant 0 : i32
    %c0_i32_1 = arith.constant 0 : i32
    return %c0_i32, %c0_i32_0 : i32, i32
  }
  func.func @transform_5(%arg0: i32, %arg1: i32) -> (i32, i32) {
    %c0_i32 = arith.constant 0 : i32
    %c0_i32_0 = arith.constant 0 : i32
    %c0_i32_1 = arith.constant 0 : i32
    return %c0_i32, %c0_i32_0 : i32, i32
  }
  func.func @transform_6(%arg0: i32, %arg1: i32) -> (i32, i32) {
    %c0_i32 = arith.constant 0 : i32
    %c0_i32_0 = arith.constant 0 : i32
    %c0_i32_1 = arith.constant 0 : i32
    return %c0_i32, %c0_i32_0 : i32, i32
  }
  func.func @transform_7(%arg0: i32, %arg1: i32) -> (i32, i32) {
    %c0_i32 = arith.constant 0 : i32
    %c0_i32_0 = arith.constant 0 : i32
    %c0_i32_1 = arith.constant 0 : i32
    return %c0_i32, %c0_i32_0 : i32, i32
  }
  func.func @transform_8(%arg0: i32, %arg1: i32) -> (i32, i32, i32) {
    %c0_i32 = arith.constant 0 : i32
    %c0_i32_0 = arith.constant 0 : i32
    %c0_i32_1 = arith.constant 0 : i32
    return %arg0, %c0_i32, %c0_i32_0 : i32, i32, i32
  }
}

</mosaic_0001>

<bundles_post_ra>
// kernel: tpu_custom_call.1
= control target key start
LH: loop header
LB: loop body
LE: loop exit
PB: predicated region body
PF: predicated region fallthrough
CT: control target
= control target key end

     0   :  { %s4116_s0 = inlined_call_operand.vmem [shape: f32[4,8,32], index: 0, kind: input, shape index: {}]   ;;  %s4117_s1 = inlined_call_operand.vmem [shape: f32[4,128,32], index: 1, kind: input, shape index: {}]   ;;  %s4118_s2 = inlined_call_operand.vmem [shape: f32[21,10], index: 2, kind: input, shape index: {}]   ;;  %s4119_s3 = inlined_call_operand.vmem [shape: f32[1,10], index: 3, kind: input, shape index: {}]   ;;  %s4120_s4 = inlined_call_operand.vmem [shape: f32[10,5], index: 4, kind: input, shape index: {}]   ;;  %s4121_s5 = inlined_call_operand.vmem [shape: f32[1,5], index: 5, kind: input, shape index: {}]   ;;  %s4122_s6 = inlined_call_operand.vmem [shape: f32[5,1], index: 6, kind: input, shape index: {}]   ;;  %s4123_s7 = inlined_call_operand.<no memory space> [shape: f32[1,1], index: 7, kind: input, shape index: {}]   ;;  %s4124_s8 = inlined_call_operand.hbm [shape: f32[2,1,128], index: 8, kind: output, shape index: {}]  }
   0x1   :  { %v13_v0 = vstv %s4123_s7 }
   0x2   :  { %14 = vst [vmem:[#allocation4] sm:$0x1] %v13_v0 }
   0x3   :  { %15 = vsyncpa [#allocation6], 0 }
   0x4   :  { %17 = vsyncpa [#allocation6 + $0x1], 0  ;;  %s3087_s29 = smov 0   ;;  %s3089_s30 = smov 0  }
   0x5   :  { %s3091_s9 = smov 0   ;;  %s3093_s10 = smov 0  }
   0x6   :  { %s3095_s11 = smov 0   ;;  %s3097_s12 = smov 0  }
   0x7 LB: > { %s2443_s7 = sadd.s32 4294967295, %s3029_s12   ;;  %s2444_s13 = sadd.s32 4294967294, %s3029_s12   ;;  %s3029_s12 = sphi %s3097_s12, %s23_s12   ;;  %s3025_s11 = sphi %s3095_s11, %s4149_s11   ;;  %s3021_s10 = sphi %s3093_s10, %s4148_s10   ;;  %s3017_s9 = sphi %s3091_s9, %s4147_s9   ;;  %s3013_s30 = sphi %s3089_s30, %s4146_s30   ;;  %s3009_s29 = sphi %s3087_s29, %s4145_s29  }
   0x8   : > { %s35_s14 = sadd.s32 1, %s3025_s11  ;;  %s222_s15 = sadd.s32 1, %s3017_s9 }
   0x9   : > { %p37_p0 = scmp.ge.s32.totalorder %s35_s14, 2  ;;  %p232_p1 = scmp.ne.s32.totalorder %s3017_s9, %s3013_s30 }
   0xa   : > { %p233_p2 = scmp.eq.s32.totalorder %s2443_s7, 1  ;;  %p238_p3 = scmp.ne.s32.totalorder %s3013_s30, %s3009_s29 }
   0xb   : > { %s4151_s14 = smov (%p37_p0, %s35_s14), 0  ;;  %p239_p5 = scmp.eq.s32.totalorder %s2444_s13, 1 }
   0xc   : > { %p3127_p4 = por %p233_p2, %p232_p1  ;;  %s219_s17 = ssub.s32 %s3025_s11, %s4151_s14 }
   0xd   : > { %p2447_p6 = scmp.ge.s32.totalorder %s3029_s12, 1  ;;  %p220_p7 = scmp.eq.s32.totalorder %s219_s17, 0 }
   0xe   : > { %p3134_p8 = por %p239_p5, %p238_p3  ;;  %p299_p9 = scmp.lt.s32.totalorder %s3029_s12, 3 }
   0xf   : > { %s3140_s19 = scalar_select %p220_p7, %s3017_s9, %s222_s15  }
  0x10   : > { %p300_p10 = pnand %p2447_p6, %p299_p9 }
  0x11   : > { %s2448_s20 = sshll.u32 (!%p300_p10), %s3021_s10, 1  ;;  %vm368_vm0 = vcmask (!%p300_p10), 261120   ;;  %vm3032_vm1 = vmmov (!%p300_p10), 0   ;;  %vm1950_vm6 = vcmask (!%p300_p10), 1041409   ;;  %s3035_s7 = smov (!%p300_p10), 16  }
  0x12   : > { %303 = sbr.rel (%p300_p10) target bundleno = 1666 (0x682), region = 52  ;;  %p343_p11 = scmp.lt.s32.totalorder (!%p300_p10), %s2448_s20, 3  ;;  %vm3369_vm2 = vmpackc.low (!%p300_p10), %vm368_vm0, %vm368_vm0 }
  0x13   : > { %s2502_s23 = sshll.u32 (!%p300_p10), %s3021_s10, 4 }
  0x14   : > { %s4071_s26 = scalar_lea.hbm (!%p300_p10), %s4124_s8, %s2502_s23 }
  0x19   : > { %s4153_s20 = smov (!%p343_p11, %s2448_s20), 3 }
  0x1a   : > { %s2505_s21 = sshll.u32 %s4153_s20, 7  ;;  %s2449_s25 = sshll.u32 %s4153_s20, 3 }
  0x1b   : > { %s3149_s24 = scalar_lea.vmem %s4117_s1, %s2505_s21  ;;  %s346_s28 = scalar_lea.vmem %s4116_s0, %s2449_s25 }
  0x1c   : > { %v3152_v1 = vld [vmem:[%s3149_s24 + $0x80] sm:$0xff]  ;;  %v3158_v3 = vld [vmem:[%s3149_s24 + $0x88] sm:$0xff]  ;;  %v3172_v9 = vld [vmem:[%s3149_s24 + $0x18] sm:$0xff]  ;;  %s340_s20 = sand.u32 1, %s3013_s30  }
  0x1d   : > { %v3155_v2 = vld [vmem:[%s3149_s24] sm:$0xff]  ;;  %v473_v4 = vmul.f32 %v3152_v1, %v3152_v1  ;;  %v474_v6 = vmul.f32 %v3158_v3, %v3158_v3  ;;  %v3167_v7 = vld [vmem:[%s3149_s24 + $0x8] sm:$0xff]  ;;  %v3175_v10 = vld [vmem:[%s3149_s24 + $0x10] sm:$0xff]  ;;  %v460_v15 = vmul.f32 %v3172_v9, %v3172_v9  ;;  %s341_s21 = scalar_lea.vmem [#allocation5], %s340_s20  ;;  %s2350_s27 = scalar_lea.sflag [#allocation6], %s340_s20 }
  0x1e   : > { %v457_v5 = vmul.f32 %v3155_v2, %v3155_v2  ;;  %v458_v8 = vmul.f32 %v3167_v7, %v3167_v7  ;;  %v459_v16 = vmul.f32 %v3175_v10, %v3175_v10  ;;  %v3186_v17 = vld [vmem:[%s3149_s24 + $0x98] sm:$0xff]  ;;  %v3189_v18 = vld [vmem:[%s3149_s24 + $0x90] sm:$0xff]  ;;  %v3198_v23 = vld [vmem:[%s3149_s24 + $0x28] sm:$0xff]  ;;  %s2362_s22 = sshll.u32 %s341_s21, 4  ;;  %s4066_s22 = int_to_ptr.vmem [resolvable:$true] %s2362_s22 }
  0x1f   : > { %v538_v11 = vsel %vm368_vm0, %v473_v4, 0.0  ;;  %v541_v13 = vsel %vm368_vm0, %v474_v6, 0.0  ;;  %v499_v19 = vsel %vm368_vm0, %v460_v15, 0.0  ;;  %v476_v21 = vmul.f32 %v3186_v17, %v3186_v17  ;;  %v3201_v24 = vld [vmem:[%s3149_s24 + $0x20] sm:$0xff]  ;;  %v3210_v29 = vld [vmem:[%s3149_s24 + $0xa8] sm:$0xff]  ;;  %v3222_v35 = vld [vmem:[%s3149_s24 + $0x38] sm:$0xff] }
  0x20   : > { %v490_v12 = vsel %vm368_vm0, %v457_v5, 0.0  ;;  %539 = vadd.xlane.f32.xlu1 %v538_v11  ;;  %v493_v14 = vsel %vm368_vm0, %v458_v8, 0.0  ;;  %v496_v20 = vsel %vm368_vm0, %v459_v16, 0.0  ;;  %v475_v22 = vmul.f32 %v3189_v18, %v3189_v18  ;;  %v3213_v30 = vld [vmem:[%s3149_s24 + $0xa0] sm:$0xff]  ;;  %v3225_v36 = vld [vmem:[%s3149_s24 + $0x30] sm:$0xff]  ;;  %v3234_v41 = vld [vmem:[%s3149_s24 + $0xb8] sm:$0xff] }
  0x21   : > { %491 = vadd.xlane.f32.xlu0 %v490_v12  ;;  %v547_v25 = vsel %vm368_vm0, %v476_v21, 0.0  ;;  %v462_v27 = vmul.f32 %v3198_v23, %v3198_v23  ;;  %v461_v28 = vmul.f32 %v3201_v24, %v3201_v24  ;;  %v478_v33 = vmul.f32 %v3210_v29, %v3210_v29  ;;  %v3237_v42 = vld [vmem:[%s3149_s24 + $0xb0] sm:$0xff]  ;;  %v3246_v47 = vld [vmem:[%s3149_s24 + $0x48] sm:$0xff]  ;;  %v3249_v48 = vld [vmem:[%s3149_s24 + $0x40] sm:$0xff] }
  0x22   : > { %v544_v26 = vsel %vm368_vm0, %v475_v22, 0.0  ;;  %v477_v34 = vmul.f32 %v3213_v30, %v3213_v30  ;;  %v464_v39 = vmul.f32 %v3222_v35, %v3222_v35  ;;  %v463_v40 = vmul.f32 %v3225_v36, %v3225_v36  ;;  %v3258_v53 = vld [vmem:[%s3149_s24 + $0xc8] sm:$0xff]  ;;  %v3261_v54 = vld [vmem:[%s3149_s24 + $0xc0] sm:$0xff]  ;;  %v3270_v59 = vld [vmem:[%s3149_s24 + $0x58] sm:$0xff] }
  0x23   : > { %v505_v31 = vsel %vm368_vm0, %v462_v27, 0.0  ;;  %v502_v32 = vsel %vm368_vm0, %v461_v28, 0.0  ;;  %v553_v37 = vsel %vm368_vm0, %v478_v33, 0.0  ;;  %v480_v45 = vmul.f32 %v3234_v41, %v3234_v41  ;;  %v3273_v60 = vld [vmem:[%s3149_s24 + $0x50] sm:$0xff]  ;;  %v3282_v4 = vld [vmem:[%s3149_s24 + $0xd8] sm:$0xff]  ;;  %v3299_v15 = vld [vmem:[%s3149_s24 + $0x60] sm:$0xff] }
  0x24   : > { %542 = vadd.xlane.f32.xlu1 %v541_v13  ;;  %v550_v38 = vsel %vm368_vm0, %v477_v34, 0.0  ;;  %v511_v43 = vsel %vm368_vm0, %v464_v39, 0.0  ;;  %v508_v44 = vsel %vm368_vm0, %v463_v40, 0.0  ;;  %v479_v46 = vmul.f32 %v3237_v42, %v3237_v42  ;;  %v3285_v5 = vld [vmem:[%s3149_s24 + $0xd0] sm:$0xff]  ;;  %v3308_v22 = vld [vmem:[%s3149_s24 + $0xe8] sm:$0xff]  ;;  %v3333_v40 = vld [vmem:[%s3149_s24 + $0xf8] sm:$0xff] }
  0x25   : > { %494 = vadd.xlane.f32.xlu0 %v493_v14  ;;  %v559_v49 = vsel %vm368_vm0, %v480_v45, 0.0  ;;  %v466_v51 = vmul.f32 %v3246_v47, %v3246_v47  ;;  %v465_v52 = vmul.f32 %v3249_v48, %v3249_v48  ;;  %v482_v57 = vmul.f32 %v3258_v53, %v3258_v53  ;;  %v3296_v14 = vld [vmem:[%s3149_s24 + $0x68] sm:$0xff]  ;;  %v3323_v33 = vld [vmem:[%s3149_s24 + $0x70] sm:$0xff] }
  0x26   : > { %v556_v50 = vsel %vm368_vm0, %v479_v46, 0.0  ;;  %v481_v58 = vmul.f32 %v3261_v54, %v3261_v54  ;;  %v468_v63 = vmul.f32 %v3270_v59, %v3270_v59  ;;  %v467_v0 = vmul.f32 %v3273_v60, %v3273_v60 }
  0x27   : > { %v517_v55 = vsel %vm368_vm0, %v466_v51, 0.0  ;;  %v514_v56 = vsel %vm368_vm0, %v465_v52, 0.0  ;;  %v565_v61 = vsel %vm368_vm0, %v482_v57, 0.0  ;;  %v3031_v6 = vmov 0.0|0.0   ;;  %v3349_v51 = vld [vmem:[%s346_s28] sm:$0xff] }
  0x28   : > { %500 = vadd.xlane.f32.xlu1 %v499_v19  ;;  %v562_v62 = vsel %vm368_vm0, %v481_v58, 0.0  ;;  %2640 = vmatprep.subr.bf16.mxu0 %v3031_v6  ;;  %v523_v8 = vsel %vm368_vm0, %v468_v63, 0.0  ;;  %v520_v11 = vsel %vm368_vm0, %v467_v0, 0.0  ;;  %v484_v12 = vmul.f32 %v3282_v4, %v3282_v4 }
  0x29   : > { %497 = vadd.xlane.f32.xlu0 %v496_v20  ;;  %2672 = vmatprep.subr.bf16.mxu1 %v3031_v6  ;;  %v483_v13 = vmul.f32 %v3285_v5, %v3285_v5  ;;  %v470_v20 = vmul.f32 %v3296_v14, %v3296_v14  ;;  %v469_v21 = vmul.f32 %v3299_v15, %v3299_v15 }
  0x2a   : > { %v571_v16 = vsel %vm368_vm0, %v484_v12, 0.0  ;;  %v486_v28 = vmul.f32 %v3308_v22, %v3308_v22  ;;  %v471_v39 = vmul.f32 %v3323_v33, %v3323_v33  ;;  %v488_v46 = vmul.f32 %v3333_v40, %v3333_v40 }
  0x2b   : > { %v568_v19 = vsel %vm368_vm0, %v483_v13, 0.0  ;;  %v526_v27 = vsel %vm368_vm0, %v469_v21, 0.0  ;;  %v366_v57 = vmul.f32 %v3349_v51, %v3349_v51 }
  0x2c   : > { %548 = vadd.xlane.f32.xlu1 %v547_v25  ;;  %v3311_v25 = vld [vmem:[%s3149_s24 + $0xe0] sm:$0xff]  ;;  %v577_v34 = vsel %vm368_vm0, %v486_v28, 0.0  ;;  %v532_v45 = vsel %vm368_vm0, %v471_v39, 0.0  ;;  %v583_v52 = vsel %vm368_vm0, %v488_v46, 0.0 }
  0x2d   : > { %545 = vadd.xlane.f32.xlu0 %v544_v26  ;;  %v529_v26 = vsel %vm368_vm0, %v470_v20, 0.0 }
  0x30   : > { %506 = vadd.xlane.f32.xlu1 %v505_v31  ;;  %v485_v31 = vmul.f32 %v3311_v25, %v3311_v25 }
  0x31   : > { %503 = vadd.xlane.f32.xlu0 %v502_v32  ;;  %v3320_v32 = vld [vmem:[%s3149_s24 + $0x78] sm:$0xff] }
  0x34   : > { %554 = vadd.xlane.f32.xlu1 %v553_v37  ;;  %v574_v37 = vsel %vm368_vm0, %v485_v31, 0.0 }
  0x35   : > { %551 = vadd.xlane.f32.xlu0 %v550_v38  ;;  %v472_v38 = vmul.f32 %v3320_v32, %v3320_v32 }
  0x38   : > { %512 = vadd.xlane.f32.xlu1 %v511_v43  ;;  %v3336_v43 = vld [vmem:[%s3149_s24 + $0xf0] sm:$0xff] }
  0x39   : > { %509 = vadd.xlane.f32.xlu0 %v508_v44  ;;  %v535_v44 = vsel %vm368_vm0, %v472_v38, 0.0 }
  0x3c   : > { %560 = vadd.xlane.f32.xlu1 %v559_v49  ;;  %v487_v49 = vmul.f32 %v3336_v43, %v3336_v43 }
  0x3d   : > { %557 = vadd.xlane.f32.xlu0 %v556_v50  ;;  %v3347_v50 = vld [vmem:[%s346_s28 + $0x8] sm:$0xff]  ;;  %s2951_s28 = scalar_lea.vmem %s4066_s22, 16 }
  0x3e   : > { %p2952_p12 = scmp.ne.s32.totalorder %s4066_s22, %s2951_s28 }
  0x40   : > { %518 = vadd.xlane.f32.xlu1 %v517_v55  ;;  %v580_v55 = vsel %vm368_vm0, %v487_v49, 0.0  ;;  %p2953_p13 = pnand %p2952_p12, %p3127_p4 }
  0x41   : > { %515 = vadd.xlane.f32.xlu0 %v514_v56  ;;  %v367_v56 = vmul.f32 %v3347_v50, %v3347_v50 }
  0x42   : > { %p2954_p0 = pneg %p2953_p13 }
  0x43   : > { %v372_v58 = vsel %vm368_vm0, %v367_v56, 0.0 }
  0x44   : > { %566 = vadd.xlane.f32.xlu1 %v565_v61  ;;  %v369_v61 = vsel %vm368_vm0, %v366_v57, 0.0 }
  0x45   : > { %563 = vadd.xlane.f32.xlu0 %v562_v62  ;;  %v3033_v62 = vmov 0.0  }
  0x46   : > { %2581 = vmatprep.mubr.msk.f32.mxu0 %vm3032_vm1, %v3033_v62  ;;  %2616 = vmatprep.mubr.msk.f32.mxu1 %vm3032_vm1, %v3033_v62 }
  0x48   : > { %524 = vadd.xlane.f32.xlu1 %v523_v8 }
  0x49   : > { %521 = vadd.xlane.f32.xlu0 %v520_v11 }
  0x4c   : > { %572 = vadd.xlane.f32.xlu1 %v571_v16 }
  0x4d   : > { %569 = vadd.xlane.f32.xlu0 %v568_v19 }
  0x50   : > { %530 = vadd.xlane.f32.xlu1 %v529_v26 }
  0x51   : > { %527 = vadd.xlane.f32.xlu0 %v526_v27 }
  0x54   : > { %578 = vadd.xlane.f32.xlu1 %v577_v34 }
  0x55   : > { %575 = vadd.xlane.f32.xlu0 %v574_v37 }
  0x58   : > { %536 = vadd.xlane.f32.xlu1 %v535_v44 }
  0x59   : > { %533 = vadd.xlane.f32.xlu0 %v532_v45 }
  0x5c   : > { %584 = vadd.xlane.f32.xlu1 %v583_v52 }
  0x5d   : > { %581 = vadd.xlane.f32.xlu0 %v580_v55 }
  0x60   : > { %373 = vadd.xlane.f32.xlu1 %v372_v58 }
  0x61   : > { %370 = vadd.xlane.f32.xlu0 %v369_v61 }
  0xad   : > { %v540_v63 = vpop.xlane.xlu1 %539 }
  0xae   : > { %v492_v0 = vpop.xlane.xlu0 %491  ;;  %v602_v8 = vmax.f32 %v540_v63, 1e-24 }
  0xaf   : > { %v586_v11 = vmax.f32 %v492_v0, 1e-24 }
  0xb0   : > { %2775 = vrsqrt.f32 %v602_v8 }
  0xb1   : > { %v543_v12 = vpop.xlane.xlu1 %542  ;;  %2777 = vrsqrt.f32 %v586_v11 }
  0xb2   : > { %v495_v13 = vpop.xlane.xlu0 %494  ;;  %v603_v16 = vmax.f32 %v543_v12, 1e-24 }
  0xb3   : > { %v587_v19 = vmax.f32 %v495_v13, 1e-24 }
  0xb4   : > { %2779 = vrsqrt.f32 %v603_v16 }
  0xb5   : > { %2781 = vrsqrt.f32 %v587_v19  ;;  %v501_v20 = vpop.xlane.xlu1 %500 }
  0xb6   : > { %v498_v21 = vpop.xlane.xlu0 %497  ;;  %v589_v26 = vmax.f32 %v501_v20, 1e-24 }
  0xb7   : > { %v588_v27 = vmax.f32 %v498_v21, 1e-24 }
  0xb8   : > { %2783 = vrsqrt.f32 %v589_v26 }
  0xb9   : > { %2785 = vrsqrt.f32 %v588_v27  ;;  %v549_v28 = vpop.xlane.xlu1 %548 }
  0xba   : > { %v546_v31 = vpop.xlane.xlu0 %545  ;;  %v605_v34 = vmax.f32 %v549_v28, 1e-24  ;;  %v2776_v38 = vpop.eup %2775 }
  0xbb   : > { %v604_v37 = vmax.f32 %v546_v31, 1e-24  ;;  %v2778_v39 = vpop.eup %2777  ;;  %v666_v56 = vmul.f32 %v2776_v38, %v3152_v1 }
  0xbc   : > { %2787 = vrsqrt.f32 %v605_v34  ;;  %v650_v58 = vmul.f32 %v2778_v39, %v3155_v2 }
  0xbd   : > { %2789 = vrsqrt.f32 %v604_v37  ;;  %v507_v44 = vpop.xlane.xlu1 %506 }
  0xbe   : > { %v504_v45 = vpop.xlane.xlu0 %503  ;;  %v2780_v46 = vpop.eup %2779  ;;  %v591_v49 = vmax.f32 %v507_v44, 1e-24 }
  0xbf   : > { %v590_v52 = vmax.f32 %v504_v45, 1e-24  ;;  %v2782_v55 = vpop.eup %2781  ;;  %v667_v57 = vmul.f32 %v2780_v46, %v3158_v3 }
  0xc0   : > { %2791 = vrsqrt.f32 %v591_v49  ;;  %v651_v61 = vmul.f32 %v2782_v55, %v3167_v7 }
  0xc1   : > { %2793 = vrsqrt.f32 %v590_v52  ;;  %v555_v0 = vpop.xlane.xlu1 %554  ;;  %v2673_v11 = vpack.c.bf16 %v667_v57, %v666_v56 }
  0xc2   : > { %v552_v8 = vpop.xlane.xlu0 %551  ;;  %v2784_v12 = vpop.eup %2783  ;;  %v607_v13 = vmax.f32 %v555_v0, 1e-24  ;;  %v2641_v16 = vpack.c.bf16 %v651_v61, %v650_v58 }
  0xc3   : > { %v606_v1 = vmax.f32 %v552_v8, 1e-24  ;;  %v2786_v3 = vpop.eup %2785  ;;  %2675 = vmatpush3.bf16.xpose.msk.msra.mxu1 %vm3369_vm2, %v2673_v11  ;;  %v653_v27 = vmul.f32 %v2784_v12, %v3172_v9 }
  0xc4   : > { %2795 = vrsqrt.f32 %v607_v13  ;;  %2643 = vmatpush3.bf16.xpose.msk.msra.mxu0 %vm3369_vm2, %v2641_v16  ;;  %2676 = vmatprep.subr.bf16.mxu1 %v3031_v6  ;;  %v652_v26 = vmul.f32 %v2786_v3, %v3175_v10 }
  0xc5   : > { %2797 = vrsqrt.f32 %v606_v1  ;;  %v513_v2 = vpop.xlane.xlu1 %512  ;;  %2644 = vmatprep.subr.bf16.mxu0 %v3031_v6 }
  0xc6   : > { %v510_v7 = vpop.xlane.xlu0 %509  ;;  %v2788_v19 = vpop.eup %2787  ;;  %v593_v20 = vmax.f32 %v513_v2, 1e-24  ;;  %v2645_v46 = vpack.c.bf16 %v653_v27, %v652_v26 }
  0xc7   : > { %v592_v21 = vmax.f32 %v510_v7, 1e-24  ;;  %v2790_v28 = vpop.eup %2789  ;;  %v669_v31 = vmul.f32 %v2788_v19, %v3186_v17 }
  0xc8   : > { %2799 = vrsqrt.f32 %v593_v20  ;;  %v668_v34 = vmul.f32 %v2790_v28, %v3189_v18 }
  0xc9   : > { %2801 = vrsqrt.f32 %v592_v21  ;;  %v561_v37 = vpop.xlane.xlu1 %560 }
  0xca   : > { %v558_v38 = vpop.xlane.xlu0 %557  ;;  %v2792_v39 = vpop.eup %2791  ;;  %v609_v44 = vmax.f32 %v561_v37, 1e-24  ;;  %v2677_v49 = vpack.c.bf16 %v669_v31, %v668_v34 }
  0xcb   : > { %v608_v45 = vmax.f32 %v558_v38, 1e-24  ;;  %v2794_v52 = vpop.eup %2793  ;;  %v655_v57 = vmul.f32 %v2792_v39, %v3198_v23 }
  0xcc   : > { %2803 = vrsqrt.f32 %v609_v44  ;;  %2647 = vmatpush3.bf16.xpose.msk.msra.mxu0 %vm3369_vm2, %v2645_v46  ;;  %2679 = vmatpush3.bf16.xpose.msk.msra.mxu1 %vm3369_vm2, %v2677_v49  ;;  %v654_v56 = vmul.f32 %v2794_v52, %v3201_v24 }
  0xcd   : > { %2805 = vrsqrt.f32 %v608_v45  ;;  %v519_v9 = vpop.xlane.xlu1 %518  ;;  %2648 = vmatprep.subr.bf16.mxu0 %v3031_v6  ;;  %2680 = vmatprep.subr.bf16.mxu1 %v3031_v6 }
  0xce   : > { %v516_v10 = vpop.xlane.xlu0 %515  ;;  %v2796_v17 = vpop.eup %2795  ;;  %v595_v18 = vmax.f32 %v519_v9, 1e-24  ;;  %v2649_v16 = vpack.c.bf16 %v655_v57, %v654_v56 }
  0xcf   : > { %v594_v55 = vmax.f32 %v516_v10, 1e-24  ;;  %v2798_v58 = vpop.eup %2797  ;;  %v671_v61 = vmul.f32 %v2796_v17, %v3210_v29 }
  0xd0   : > { %2807 = vrsqrt.f32 %v595_v18  ;;  %v670_v0 = vmul.f32 %v2798_v58, %v3213_v30 }
  0xd1   : > { %2809 = vrsqrt.f32 %v594_v55  ;;  %v567_v8 = vpop.xlane.xlu1 %566 }
  0xd2   : > { %v564_v11 = vpop.xlane.xlu0 %563  ;;  %v2800_v12 = vpop.eup %2799  ;;  %v611_v13 = vmax.f32 %v567_v8, 1e-24  ;;  %v2681_v3 = vpack.c.bf16 %v671_v61, %v670_v0 }
  0xd3   : > { %v610_v1 = vmax.f32 %v564_v11, 1e-24  ;;  %v2802_v2 = vpop.eup %2801  ;;  %v657_v20 = vmul.f32 %v2800_v12, %v3222_v35 }
  0xd4   : > { %2811 = vrsqrt.f32 %v611_v13  ;;  %2651 = vmatpush3.bf16.xpose.msk.msra.mxu0 %vm3369_vm2, %v2649_v16  ;;  %2683 = vmatpush3.bf16.xpose.msk.msra.mxu1 %vm3369_vm2, %v2681_v3  ;;  %v656_v19 = vmul.f32 %v2802_v2, %v3225_v36 }
  0xd5   : > { %2813 = vrsqrt.f32 %v610_v1  ;;  %v525_v23 = vpop.xlane.xlu1 %524  ;;  %2652 = vmatprep.subr.bf16.mxu0 %v3031_v6  ;;  %2684 = vmatprep.subr.bf16.mxu1 %v3031_v6 }
  0xd6   : > { %v522_v24 = vpop.xlane.xlu0 %521  ;;  %v2804_v29 = vpop.eup %2803  ;;  %v597_v30 = vmax.f32 %v525_v23, 1e-24  ;;  %v2653_v39 = vpack.c.bf16 %v657_v20, %v656_v19 }
  0xd7   : > { %v596_v7 = vmax.f32 %v522_v24, 1e-24  ;;  %v2806_v21 = vpop.eup %2805  ;;  %v673_v26 = vmul.f32 %v2804_v29, %v3234_v41 }
  0xd8   : > { %2815 = vrsqrt.f32 %v597_v30  ;;  %v672_v27 = vmul.f32 %v2806_v21, %v3237_v42 }
  0xd9   : > { %2817 = vrsqrt.f32 %v596_v7  ;;  %v573_v28 = vpop.xlane.xlu1 %572 }
  0xda   : > { %v570_v31 = vpop.xlane.xlu0 %569  ;;  %v2808_v34 = vpop.eup %2807  ;;  %v613_v37 = vmax.f32 %v573_v28, 1e-24  ;;  %v2685_v44 = vpack.c.bf16 %v673_v26, %v672_v27 }
  0xdb   : > { %v612_v38 = vmax.f32 %v570_v31, 1e-24  ;;  %v2810_v45 = vpop.eup %2809  ;;  %v659_v52 = vmul.f32 %v2808_v34, %v3246_v47 }
  0xdc   : > { %2819 = vrsqrt.f32 %v613_v37  ;;  %2655 = vmatpush3.bf16.xpose.msk.msra.mxu0 %vm3369_vm2, %v2653_v39  ;;  %2687 = vmatpush3.bf16.xpose.msk.msra.mxu1 %vm3369_vm2, %v2685_v44  ;;  %v658_v49 = vmul.f32 %v2810_v45, %v3249_v48 }
  0xdd   : > { %2821 = vrsqrt.f32 %v612_v38  ;;  %v531_v35 = vpop.xlane.xlu1 %530  ;;  %2656 = vmatprep.subr.bf16.mxu0 %v3031_v6  ;;  %2688 = vmatprep.subr.bf16.mxu1 %v3031_v6 }
  0xde   : > { %v528_v36 = vpop.xlane.xlu0 %527  ;;  %v2812_v41 = vpop.eup %2811  ;;  %v599_v42 = vmax.f32 %v531_v35, 1e-24  ;;  %v2657_v61 = vpack.c.bf16 %v659_v52, %v658_v49 }
  0xdf   : > { %v598_v46 = vmax.f32 %v528_v36, 1e-24  ;;  %v2814_v9 = vpop.eup %2813  ;;  %v675_v10 = vmul.f32 %v2812_v41, %v3258_v53 }
  0xe0   : > { %2823 = vrsqrt.f32 %v599_v42  ;;  %v674_v17 = vmul.f32 %v2814_v9, %v3261_v54 }
  0xe1   : > { %2825 = vrsqrt.f32 %v598_v46  ;;  %v579_v18 = vpop.xlane.xlu1 %578 }
  0xe2   : > { %v576_v55 = vpop.xlane.xlu0 %575  ;;  %v2816_v56 = vpop.eup %2815  ;;  %v615_v57 = vmax.f32 %v579_v18, 1e-24  ;;  %v2689_v0 = vpack.c.bf16 %v675_v10, %v674_v17 }
  0xe3   : > { %v614_v58 = vmax.f32 %v576_v55, 1e-24  ;;  %v2818_v8 = vpop.eup %2817  ;;  %v661_v13 = vmul.f32 %v2816_v56, %v3270_v59 }
  0xe4   : > { %2827 = vrsqrt.f32 %v615_v57  ;;  %2659 = vmatpush3.bf16.xpose.msk.msra.mxu0 %vm3369_vm2, %v2657_v61  ;;  %2691 = vmatpush3.bf16.xpose.msk.msra.mxu1 %vm3369_vm2, %v2689_v0  ;;  %v660_v12 = vmul.f32 %v2818_v8, %v3273_v60 }
  0xe5   : > { %2829 = vrsqrt.f32 %v614_v58  ;;  %v537_v47 = vpop.xlane.xlu1 %536  ;;  %2660 = vmatprep.subr.bf16.mxu0 %v3031_v6  ;;  %2692 = vmatprep.subr.bf16.mxu1 %v3031_v6 }
  0xe6   : > { %v534_v48 = vpop.xlane.xlu0 %533  ;;  %v2820_v53 = vpop.eup %2819  ;;  %v601_v54 = vmax.f32 %v537_v47, 1e-24  ;;  %v2661_v7 = vpack.c.bf16 %v661_v13, %v660_v12 }
  0xe7   : > { %v600_v11 = vmax.f32 %v534_v48, 1e-24  ;;  %v2822_v1 = vpop.eup %2821  ;;  %v677_v16 = vmul.f32 %v2820_v53, %v3282_v4 }
  0xe8   : > { %2831 = vrsqrt.f32 %v601_v54  ;;  %v676_v3 = vmul.f32 %v2822_v1, %v3285_v5 }
  0xe9   : > { %2833 = vrsqrt.f32 %v600_v11  ;;  %v585_v2 = vpop.xlane.xlu1 %584 }
  0xea   : > { %v582_v23 = vpop.xlane.xlu0 %581  ;;  %v2824_v24 = vpop.eup %2823  ;;  %v617_v29 = vmax.f32 %v585_v2, 1e-24  ;;  %v2693_v19 = vpack.c.bf16 %v677_v16, %v676_v3 }
  0xeb   : > { %v616_v30 = vmax.f32 %v582_v23, 1e-24  ;;  %v2826_v20 = vpop.eup %2825  ;;  %v663_v27 = vmul.f32 %v2824_v24, %v3296_v14 }
  0xec   : > { %2835 = vrsqrt.f32 %v617_v29  ;;  %2663 = vmatpush3.bf16.xpose.msk.msra.mxu0 %vm3369_vm2, %v2661_v7  ;;  %2695 = vmatpush3.bf16.xpose.msk.msra.mxu1 %vm3369_vm2, %v2693_v19  ;;  %v662_v26 = vmul.f32 %v2826_v20, %v3299_v15 }
  0xed   : > { %2837 = vrsqrt.f32 %v616_v30  ;;  %v374_v59 = vpop.xlane.xlu1 %373  ;;  %2664 = vmatprep.subr.bf16.mxu0 %v3031_v6  ;;  %2696 = vmatprep.subr.bf16.mxu1 %v3031_v6 }
  0xee   : > { %v371_v60 = vpop.xlane.xlu0 %370  ;;  %v2828_v4 = vpop.eup %2827  ;;  %v376_v5 = vmax.f32 %v374_v59, 1e-24  ;;  %v2665_v38 = vpack.c.bf16 %v663_v27, %v662_v26 }
  0xef   : > { %v375_v21 = vmax.f32 %v371_v60, 1e-24  ;;  %v2830_v28 = vpop.eup %2829  ;;  %v679_v31 = vmul.f32 %v2828_v4, %v3308_v22 }
  0xf0   : > { %2839 = vrsqrt.f32 %v376_v5  ;;  %v678_v34 = vmul.f32 %v2830_v28, %v3311_v25 }
  0xf1   : > { %2841 = vrsqrt.f32 %v375_v21 }
  0xf2   : > { %v2832_v37 = vpop.eup %2831  ;;  %v2697_v39 = vpack.c.bf16 %v679_v31, %v678_v34 }
  0xf3   : > { %v2834_v44 = vpop.eup %2833  ;;  %v665_v22 = vmul.f32 %v2832_v37, %v3320_v32 }
  0xf4   : > { %2667 = vmatpush3.bf16.xpose.msk.msra.mxu0 %vm3369_vm2, %v2665_v38  ;;  %2699 = vmatpush3.bf16.xpose.msk.msra.mxu1 %vm3369_vm2, %v2697_v39  ;;  %v664_v15 = vmul.f32 %v2834_v44, %v3323_v33 }
  0xf5   : > { %2668 = vmatprep.subr.bf16.mxu0 %v3031_v6  ;;  %2700 = vmatprep.subr.bf16.mxu1 %v3031_v6 }
  0xf6   : > { %v2836_v14 = vpop.eup %2835  ;;  %v2669_v41 = vpack.c.bf16 %v665_v22, %v664_v15 }
  0xf7   : > { %v2838_v25 = vpop.eup %2837  ;;  %v681_v45 = vmul.f32 %v2836_v14, %v3333_v40  ;;  %v684_v40 = vlaneseq }
  0xf8   : > { %v680_v35 = vmul.f32 %v2838_v25, %v3336_v43 }
  0xf9   : > { %v685_v43 = vand.u32 127, %v684_v40 }
  0xfa   : > { %v2840_v36 = vpop.eup %2839  ;;  %v2701_v42 = vpack.c.bf16 %v681_v45, %v680_v35 }
  0xfb   : > { %v2842_v46 = vpop.eup %2841  ;;  %v380_v49 = vmul.f32 %v2840_v36, %v3347_v50  ;;  %vm689_vm3 = vcmp.lt.s32.totalorder %v685_v43, 8  ;;  %v3034_v50 = vmov -3.0  }
  0xfc   : > { %v379_v52 = vmul.f32 %v2842_v46, %v3349_v51  ;;  %2671 = vmatpush3.bf16.xpose.msk.msra.mxu0 %vm3369_vm2, %v2669_v41  ;;  %2703 = vmatpush3.bf16.xpose.msk.msra.mxu1 %vm3369_vm2, %v2701_v42  ;;  %v690_v51 = vsel %vm689_vm3, 0.0, %v3034_v50 }
  0xfd   : > { %382 = vst.msk [vmem:[#allocation3 + $0x8] sm:$0xff] %vm368_vm0, %v380_v49  ;;  %2704 = vmatprep.subr.bf16.mxu0 %v3031_v6  ;;  %2707 = vmatprep.subr.bf16.mxu1 %v3031_v6 }
  0xfe   : > { %381 = vst.msk [vmem:[#allocation3] sm:$0xff] %vm368_vm0, %v379_v52 }
 0x104   : > { %v683_v32 = vld [vmem:[#allocation3 + $0x8] sm:$0xff] }
 0x105   : > { %v682_v33 = vld [vmem:[#allocation3] sm:$0xff]  ;;  %2617 = vmatmul.mubr.msk.f32.vlgmr.msra.gmra.mrb[0].mxu1 %vm368_vm0, %v683_v32 }
 0x106   : > { %2582 = vmatmul.mubr.msk.f32.vlgmr.msra.gmra.mrb[0].mxu0 %vm368_vm0, %v682_v33  ;;  %2632 = vmatprep.mubr.msk.f32.mxu1 %vm3032_vm1, %v3033_v62 }
 0x107   : > { %2625 = vmatprep.mubr.msk.f32.mxu0 %vm3032_vm1, %v3033_v62 }
 0x1d8   : > { %v929_v6 = vpop.f32.mrb[0].mxu1 }
 0x1d9   : > { %v808_v63 = vpop.f32.mrb[0].mxu0  ;;  %v930_v9 = vadd.f32 %v929_v6, %v690_v51  ;;  %v2618_v10 = vpop.f32.mrb[1].mxu1 }
 0x1da   : > { %v809_v17 = vadd.f32 %v808_v63, %v690_v51  ;;  %v2583_v18 = vpop.f32.mrb[1].mxu0 }
 0x1db   : > { %v934_v55 = vmul.f32 10.0, %v930_v9  ;;  %v2490_v56 = vadd.f32 -0.45, %v930_v9  ;;  %v2492_v57 = vadd.f32 -1.0, %v930_v9  ;;  %v2488_v29 = vadd.f32 0.55, %v930_v9 }
 0x1dc   : > { %v933_v58 = vmul.f32 10.0, %v809_v17  ;;  %v2489_v61 = vadd.f32 -0.45, %v809_v17  ;;  %v2491_v0 = vadd.f32 -1.0, %v809_v17  ;;  %v2487_v30 = vadd.f32 0.55, %v809_v17 }
 0x1dd   : > { %v937_v8 = vmul.f32 1.442695, %v934_v55  ;;  %v1041_v47 = vmul.f32 %v2490_v56, %v2490_v56  ;;  %v1139_v48 = vmul.f32 %v2492_v57, %v2492_v57  ;;  %v944_v19 = vmul.f32 %v2488_v29, %v2488_v29 }
 0x1de   : > { %v935_v53 = vmul.f32 1.442695, %v933_v58  ;;  %v1040_v54 = vmul.f32 %v2489_v61, %v2489_v61  ;;  %v1138_v11 = vmul.f32 %v2491_v0, %v2491_v0  ;;  %v943_v59 = vmul.f32 %v2487_v30, %v2487_v30 }
 0x1df   : > { %2843 = vpow2.f32 %v937_v8  ;;  %v1043_v12 = vmul.f32 -50.0, %v1041_v47  ;;  %v1141_v13 = vmul.f32 -500000.0, %v1139_v48  ;;  %v946_v60 = vmul.f32 -50.0, %v944_v19 }
 0x1e0   : > { %2845 = vpow2.f32 %v935_v53  ;;  %v1042_v1 = vmul.f32 -50.0, %v1040_v54  ;;  %v1140_v16 = vmul.f32 -500000.0, %v1138_v11  ;;  %v945_v4 = vmul.f32 -50.0, %v943_v59 }
 0x1e1   : > { %v1046_v2 = vmul.f32 1.442695, %v1043_v12  ;;  %v1144_v23 = vmul.f32 1.442695, %v1141_v13  ;;  %v949_v28 = vmul.f32 1.442695, %v946_v60 }
 0x1e2   : > { %v1044_v3 = vmul.f32 1.442695, %v1042_v1  ;;  %v1142_v24 = vmul.f32 1.442695, %v1140_v16  ;;  %v947_v37 = vmul.f32 1.442695, %v945_v4 }
 0x1e4   : > { %2847 = vpow2.f32 %v1044_v3 }
 0x1e5   : > { %2849 = vpow2.f32 %v1046_v2 }
 0x1e6   : > { %2851 = vpow2.f32 %v1144_v23 }
 0x1e7   : > { %2853 = vpow2.f32 %v1142_v24 }
 0x1e9   : > { %v3459_v7 = vpop.eup %2843 }
 0x1ea   : > { %v3461_v20 = vpop.eup %2845  ;;  %2855 = vrcp.f32 %v3459_v7 }
 0x1eb   : > { %2857 = vrcp.f32 %v3461_v20 }
 0x1ec   : > { %2859 = vpow2.f32 %v949_v28 }
 0x1ed   : > { %2861 = vpow2.f32 %v947_v37 }
 0x1ee   : > { %v3465_v5 = vpop.eup %2847 }
 0x1ef   : > { %v3467_v21 = vpop.eup %2849  ;;  %v3471_v26 = vmul.f32 %v3465_v5, %v3461_v20 }
 0x1f0   : > { %v2852_v27 = vpop.eup %2851  ;;  %v3475_v31 = vmul.f32 %v3467_v21, %v3459_v7 }
 0x1f1   : > { %v2854_v34 = vpop.eup %2853  ;;  %1916 = vadd.xlane.f32.xlu1 %v2852_v27  ;;  %v1064_v39 = vmul.f32 %v3461_v20, %v3471_v26 }
 0x1f2   : > { %1914 = vadd.xlane.f32.xlu0 %v2854_v34  ;;  %v1065_v38 = vmul.f32 %v3459_v7, %v3475_v31 }
 0x1f3   : > { %v1073_v36 = vmul.f32 %v3461_v20, %v1064_v39 }
 0x1f4   : > { %v3481_v44 = vpop.eup %2855  ;;  %v1074_v45 = vmul.f32 %v3459_v7, %v1065_v38 }
 0x1f5   : > { %v3483_v14 = vpop.eup %2857  ;;  %v3487_v15 = vmul.f32 %v3481_v44, %v3467_v21  ;;  %1764 = vadd.xlane.f32.xlu1 %v1065_v38  ;;  %v1082_v32 = vmul.f32 %v3461_v20, %v1073_v36 }
 0x1f6   : > { %v3491_v22 = vmul.f32 %v3483_v14, %v3465_v5  ;;  %1762 = vadd.xlane.f32.xlu0 %v1064_v39  ;;  %v1083_v49 = vmul.f32 %v3459_v7, %v1074_v45  ;;  %v2860_v33 = vpop.eup %2859 }
 0x1f7   : > { %v1110_v25 = vmul.f32 %v3481_v44, %v3487_v15  ;;  %v2862_v40 = vpop.eup %2861  ;;  %v1004_v43 = vmul.f32 %v2860_v33, %v3481_v44  ;;  %v1091_v6 = vmul.f32 %v3461_v20, %v1082_v32  ;;  %v959_v63 = vmul.f32 %v2860_v33, %v3459_v7 }
 0x1f8   : > { %v1109_v35 = vmul.f32 %v3483_v14, %v3491_v22  ;;  %v1003_v50 = vmul.f32 %v2862_v40, %v3483_v14  ;;  %v1092_v51 = vmul.f32 %v3459_v7, %v1083_v49  ;;  %v958_v9 = vmul.f32 %v2862_v40, %v3461_v20 }
 0x1f9   : > { %v1119_v41 = vmul.f32 %v3481_v44, %v1110_v25  ;;  %1802 = vadd.xlane.f32.xlu1 %v1074_v45  ;;  %v968_v10 = vmul.f32 %v3459_v7, %v959_v63  ;;  %v1013_v0 = vmul.f32 %v3481_v44, %v1004_v43 }
 0x1fa   : > { %v1118_v42 = vmul.f32 %v3483_v14, %v1109_v35  ;;  %1800 = vadd.xlane.f32.xlu0 %v1073_v36  ;;  %v967_v17 = vmul.f32 %v3461_v20, %v958_v9  ;;  %v1012_v8 = vmul.f32 %v3483_v14, %v1003_v50 }
 0x1fb   : > { %v1128_v46 = vmul.f32 %v3481_v44, %v1119_v41  ;;  %v977_v18 = vmul.f32 %v3459_v7, %v968_v10  ;;  %v1022_v47 = vmul.f32 %v3481_v44, %v1013_v0 }
 0x1fc   : > { %v1127_v52 = vmul.f32 %v3483_v14, %v1118_v42  ;;  %v976_v55 = vmul.f32 %v3461_v20, %v967_v17  ;;  %v1021_v48 = vmul.f32 %v3483_v14, %v1012_v8 }
 0x1fd   : > { %1840 = vadd.xlane.f32.xlu1 %v1083_v49  ;;  %v986_v56 = vmul.f32 %v3459_v7, %v977_v18  ;;  %v1031_v53 = vmul.f32 %v3481_v44, %v1022_v47 }
 0x1fe   : > { %1838 = vadd.xlane.f32.xlu0 %v1082_v32  ;;  %v985_v57 = vmul.f32 %v3461_v20, %v976_v55  ;;  %v1030_v54 = vmul.f32 %v3483_v14, %v1021_v48 }
 0x1ff   : > { %v995_v58 = vmul.f32 %v3459_v7, %v986_v56 }
 0x200   : > { %v994_v61 = vmul.f32 %v3461_v20, %v985_v57 }
 0x201   : > { %1274 = vadd.xlane.f32.xlu1 %v1004_v43 }
 0x202   : > { %1272 = vadd.xlane.f32.xlu0 %v1003_v50 }
 0x205   : > { %1878 = vadd.xlane.f32.xlu1 %v1092_v51 }
 0x206   : > { %1876 = vadd.xlane.f32.xlu0 %v1091_v6 }
 0x209   : > { %1348 = vadd.xlane.f32.xlu1 %v959_v63 }
 0x20a   : > { %1346 = vadd.xlane.f32.xlu0 %v958_v9 }
 0x20d   : > { %1312 = vadd.xlane.f32.xlu1 %v2860_v33 }
 0x20e   : > { %1310 = vadd.xlane.f32.xlu0 %v2862_v40 }
 0x211   : > { %1386 = vadd.xlane.f32.xlu1 %v968_v10 }
 0x212   : > { %1384 = vadd.xlane.f32.xlu0 %v967_v17 }
 0x215   : > { %1424 = vadd.xlane.f32.xlu1 %v977_v18 }
 0x216   : > { %1422 = vadd.xlane.f32.xlu0 %v976_v55 }
 0x219   : > { %1462 = vadd.xlane.f32.xlu1 %v986_v56 }
 0x21a   : > { %1460 = vadd.xlane.f32.xlu0 %v985_v57 }
 0x21d   : > { %1500 = vadd.xlane.f32.xlu1 %v995_v58 }
 0x21e   : > { %1498 = vadd.xlane.f32.xlu0 %v994_v61 }
 0x221   : > { %1236 = vadd.xlane.f32.xlu1 %v1013_v0 }
 0x222   : > { %1234 = vadd.xlane.f32.xlu0 %v1012_v8 }
 0x225   : > { %1614 = vadd.xlane.f32.xlu1 %v1110_v25 }
 0x226   : > { %1612 = vadd.xlane.f32.xlu0 %v1109_v35 }
 0x229   : > { %1198 = vadd.xlane.f32.xlu1 %v1022_v47 }
 0x22a   : > { %1196 = vadd.xlane.f32.xlu0 %v1021_v48 }
 0x22d   : > { %1576 = vadd.xlane.f32.xlu1 %v1119_v41 }
 0x22e   : > { %1574 = vadd.xlane.f32.xlu0 %v1118_v42 }
 0x231   : > { %1160 = vadd.xlane.f32.xlu1 %v1031_v53 }
 0x232   : > { %1158 = vadd.xlane.f32.xlu0 %v1030_v54 }
 0x235   : > { %1652 = vadd.xlane.f32.xlu1 %v3487_v15 }
 0x236   : > { %1650 = vadd.xlane.f32.xlu0 %v3491_v22 }
 0x239   : > { %1538 = vadd.xlane.f32.xlu1 %v1128_v46 }
 0x23a   : > { %1536 = vadd.xlane.f32.xlu0 %v1127_v52 }
 0x23d   : > { %1726 = vadd.xlane.f32.xlu1 %v3475_v31 }
 0x23e   : > { %1724 = vadd.xlane.f32.xlu0 %v3471_v26 }
 0x241   : > { %1690 = vadd.xlane.f32.xlu1 %v3467_v21 }
 0x242   : > { %1688 = vadd.xlane.f32.xlu0 %v3465_v5 }
 0x27e   : > { %v3531_v11 = vpop.xlane.xlu1 %1916 }
 0x27f   : > { %v3533_v12 = vpop.xlane.xlu0 %1914  ;;  %v1927_v52 = vadd.f32 1.0, %v3531_v11  ;;  %v1930_v0 = vmul.f32 -0.5, %v3531_v11  ;;  %v1933_v8 = vand.u32 2147483647, %v3531_v11 }
 0x280   : > { %v1918_v51 = vadd.f32 1.0, %v3533_v12  ;;  %v1921_v47 = vmul.f32 -0.5, %v3533_v12  ;;  %v1924_v53 = vand.u32 2147483647, %v3533_v12 }
 0x281   : > { %vm3567_vm7 = vcmp.lt.f32.partialorder %v1933_v8, 0.0004427343 }
 0x282   : > { %v1765_v13 = vpop.xlane.xlu1 %1764  ;;  %vm3575_vm8 = vcmp.lt.f32.partialorder %v1924_v53, 0.0004427343 }
 0x283   : > { %v1763_v1 = vpop.xlane.xlu0 %1762  ;;  %v3535_v39 = vmul.f32 1.67017e-05, %v1765_v13 }
 0x284   : > { %v3537_v44 = vmul.f32 1.67017e-05, %v1763_v1 }
 0x285   : > { %v1777_v35 = vadd.f32 1.0, %v3535_v39  ;;  %v1780_v17 = vmul.f32 -0.5, %v3535_v39 }
 0x286   : > { %v1803_v16 = vpop.xlane.xlu1 %1802  ;;  %v1768_v41 = vadd.f32 1.0, %v3537_v44  ;;  %v1771_v56 = vmul.f32 -0.5, %v3537_v44 }
 0x287   : > { %v1801_v3 = vpop.xlane.xlu0 %1800  ;;  %v3541_v46 = vmul.f32 1.5229979e-08, %v1803_v16  ;;  %v1781_v54 = vadd.f32 1.0, %v1780_v17  ;;  %v1783_v16 = vand.u32 2147483647, %v3535_v39 }
 0x288   : > { %v3544_v40 = vmul.f32 1.5229979e-08, %v1801_v3  ;;  %v1772_v3 = vadd.f32 1.0, %v1771_v56 }
 0x289   : > { %v1815_v43 = vadd.f32 1.0, %v3541_v46  ;;  %vm1784_vm9 = vcmp.lt.f32.partialorder %v1783_v16, 0.0004427343 }
 0x28a   : > { %v1841_v2 = vpop.xlane.xlu1 %1840  ;;  %v1806_v9 = vadd.f32 1.0, %v3544_v40 }
 0x28b   : > { %v1839_v23 = vpop.xlane.xlu0 %1838  ;;  %v3550_v18 = vmul.f32 5.109089e-12, %v1841_v2  ;;  %v1774_v2 = vand.u32 2147483647, %v3537_v44 }
 0x28c   : > { %v3556_v58 = vmul.f32 5.109089e-12, %v1839_v23 }
 0x28d   : > { %v1853_v13 = vadd.f32 1.0, %v3550_v18  ;;  %vm1775_vm10 = vcmp.lt.f32.partialorder %v1774_v2, 0.0004427343 }
 0x28e   : > { %v1275_v24 = vpop.xlane.xlu1 %1274 }
 0x28f   : > { %v1277_v29 = vmul.f32 0.0024787523, %v1275_v24  ;;  %v1273_v7 = vpop.xlane.xlu0 %1272  ;;  %v1818_v24 = vmul.f32 -0.5, %v3541_v46 }
 0x290   : > { %v1276_v19 = vmul.f32 0.0024787523, %v1273_v7 }
 0x291   : > { %v1287_v30 = vadd.f32 1.0, %v1277_v29  ;;  %v1290_v20 = vmul.f32 -0.5, %v1277_v29  ;;  %v1293_v4 = vand.u32 2147483647, %v1277_v29 }
 0x292   : > { %v1278_v59 = vadd.f32 1.0, %v1276_v19  ;;  %v1281_v5 = vmul.f32 -0.5, %v1276_v19  ;;  %v1284_v34 = vand.u32 2147483647, %v1276_v19  ;;  %v1879_v55 = vpop.xlane.xlu1 %1878 }
 0x293   : > { %2863 = vlog2.f32 %v1287_v30  ;;  %v1291_v60 = vadd.f32 1.0, %v1290_v20  ;;  %vm1294_vm4 = vcmp.lt.f32.partialorder %v1293_v4, 0.0004427343  ;;  %v1877_v1 = vpop.xlane.xlu0 %1876  ;;  %v1782_v4 = vmul.f32 %v1781_v54, %v3535_v39 }
 0x294   : > { %2865 = vlog2.f32 %v1278_v59  ;;  %v1282_v28 = vadd.f32 1.0, %v1281_v5  ;;  %vm1285_vm5 = vcmp.lt.f32.partialorder %v1284_v34, 0.0004427343  ;;  %v1922_v59 = vadd.f32 1.0, %v1921_v47 }
 0x295   : > { %v1292_v27 = vmul.f32 %v1291_v60, %v1277_v29  ;;  %2867 = vlog2.f32 %v1777_v35  ;;  %v1844_v29 = vadd.f32 1.0, %v3556_v58  ;;  %v1809_v5 = vmul.f32 -0.5, %v3544_v40 }
 0x296   : > { %v1283_v22 = vmul.f32 %v1282_v28, %v1276_v19  ;;  %2869 = vlog2.f32 %v1768_v41  ;;  %v1349_v30 = vpop.xlane.xlu1 %1348  ;;  %v1931_v19 = vadd.f32 1.0, %v1930_v0  ;;  %v1773_v28 = vmul.f32 %v1772_v3, %v3537_v44 }
 0x297   : > { %2871 = vlog2.f32 %v1927_v52  ;;  %v1347_v39 = vpop.xlane.xlu0 %1346  ;;  %v3585_v44 = vmul.f32 148.41316, %v1349_v30  ;;  %v1923_v52 = vmul.f32 %v1922_v59, %v3533_v12  ;;  %v1847_v0 = vmul.f32 -0.5, %v3556_v58 }
 0x298   : > { %2873 = vlog2.f32 %v1815_v43  ;;  %v1859_v3 = vand.u32 2147483647, %v3550_v18 }
 0x299   : > { %2875 = vlog2.f32 %v1918_v51  ;;  %v3594_v51 = vmul.f32 148.41316, %v1347_v39  ;;  %v1361_v17 = vadd.f32 1.0, %v3585_v44 }
 0x29a   : > { %2877 = vlog2.f32 %v1806_v9  ;;  %vm1860_vm13 = vcmp.lt.f32.partialorder %v1859_v3, 0.0004427343 }
 0x29b   : > { %2879 = vlog2.f32 %v1853_v13 }
 0x29c   : > { %2881 = vlog2.f32 %v1844_v29  ;;  %v1848_v29 = vadd.f32 1.0, %v1847_v0 }
 0x29d   : > { %v2864_v21 = vpop.eup %2863 }
 0x29e   : > { %v1289_v26 = vmul.f32 0.6931472, %v2864_v21  ;;  %v2866_v38 = vpop.eup %2865  ;;  %v3573_v21 = vmul.f32 6.305117e-16, %v1879_v55  ;;  %v3600_v55 = vpop.xlane.xlu0 %1310 }
 0x29f   : > { %v1280_v15 = vmul.f32 0.6931472, %v2866_v38  ;;  %v2868_v61 = vpop.eup %2867  ;;  %v1819_v38 = vadd.f32 1.0, %v1818_v24 }
 0x2a0   : > { %v1295_v31 = vsel %vm1294_vm4, %v1292_v27, %v1289_v26  ;;  %v2870_v48 = vpop.eup %2869  ;;  %v1779_v23 = vmul.f32 0.6931472, %v2868_v61  ;;  %v1891_v41 = vadd.f32 1.0, %v3573_v21 }
 0x2a1   : > { %v1302_v37 = vrot.slane %v1295_v31, 4  ;;  %v1286_v45 = vsel %vm1285_vm5, %v1283_v22, %v1280_v15  ;;  %v2872_v7 = vpop.eup %2871  ;;  %v1770_v60 = vmul.f32 0.6931472, %v2870_v48  ;;  %v1821_v22 = vand.u32 2147483647, %v3541_v46 }
 0x2a2   : > { %v1296_v36 = vrot.slane %v1286_v45, 4  ;;  %v2874_v26 = vpop.eup %2873  ;;  %v1929_v34 = vmul.f32 0.6931472, %v2872_v7  ;;  %2883 = vlog2.f32 %v1891_v41  ;;  %v1352_v48 = vadd.f32 1.0, %v3594_v51  ;;  %v3612_v20 = vpop.xlane.xlu0 %1384 }
 0x2a3   : > { %v1303_v14 = vadd.f32 %v1302_v37, %v1295_v31  ;;  %v2876_v31 = vpop.eup %2875  ;;  %v1785_v37 = vsel %vm1784_vm9, %v1782_v4, %v1779_v23  ;;  %v1776_v15 = vsel %vm1775_vm10, %v1773_v28, %v1770_v60  ;;  %v1817_v35 = vmul.f32 0.6931472, %v2874_v26 }
 0x2a4   : > { %v1297_v49 = vadd.f32 %v1296_v36, %v1286_v45  ;;  %v2878_v45 = vpop.eup %2877  ;;  %v1810_v36 = vadd.f32 1.0, %v1809_v5  ;;  %v1786_v43 = vrot.slane %v1776_v15, 4  ;;  %vm1822_vm11 = vcmp.lt.f32.partialorder %v1821_v22, 0.0004427343 }
 0x2a5   : > { %v1304_v25 = vrot.slane %v1303_v14, 2  ;;  %v2880_v8 = vpop.eup %2879  ;;  %v1894_v5 = vmul.f32 -0.5, %v3573_v21  ;;  %vm2017_vm9 = vcmask 23552   ;;  %vm2019_vm10 = vcmask 31744  }
 0x2a6   : > { %v1298_v33 = vrot.slane %v1297_v49, 2  ;;  %v1811_v12 = vmul.f32 %v1810_v36, %v3544_v40  ;;  %v1787_v47 = vadd.f32 %v1786_v43, %v1776_v15  ;;  %v1855_v24 = vmul.f32 0.6931472, %v2880_v8 }
 0x2a7   : > { %v1305_v42 = vadd.f32 %v1304_v25, %v1303_v14  ;;  %v1932_v14 = vmul.f32 %v1931_v19, %v3531_v11  ;;  %v3582_v25 = vmul.f32 6.305117e-16, %v1877_v1  ;;  %v1812_v11 = vand.u32 2147483647, %v3544_v40  ;;  %v2882_v1 = vpop.eup %2881 }
 0x2a8   : > { %v1299_v50 = vadd.f32 %v1298_v33, %v1297_v49  ;;  %v1920_v49 = vmul.f32 0.6931472, %v2876_v31  ;;  %v1788_v30 = vrot.slane %v1787_v47, 2  ;;  %v1850_v19 = vand.u32 2147483647, %v3556_v58 }
 0x2a9   : > { %v1306_v32 = vrot.slane %v1305_v42, 1  ;;  %v1935_v33 = vsel %vm3567_vm7, %v1932_v14, %v1929_v34  ;;  %v1882_v9 = vadd.f32 1.0, %v3582_v25  ;;  %vm1813_vm12 = vcmp.lt.f32.partialorder %v1812_v11, 0.0004427343 }
 0x2aa   : > { %v1300_v63 = vrot.slane %v1299_v50, 1  ;;  %v1942_v56 = vrot.slane %v1935_v33, 4  ;;  %v1846_v4 = vmul.f32 0.6931472, %v2882_v1  ;;  %v3625_v14 = vadd.f32 %v1788_v30, %v1787_v47 }
 0x2ab   : > { %v1307_v6 = vadd.f32 %v1306_v32, %v1305_v42  ;;  %v3587_v42 = vpop.xlane.xlu1 %1312  ;;  %v1792_v32 = vrot.slane %v1785_v37, 4  ;;  %2885 = vlog2.f32 %v1882_v9  ;;  %vm1851_vm14 = vcmp.lt.f32.partialorder %v1850_v19, 0.0004427343 }
 0x2ac   : > { %v1301_v10 = vadd.f32 %v1300_v63, %v1299_v50  ;;  %v1820_v50 = vmul.f32 %v1819_v38, %v3541_v46  ;;  %v1856_v63 = vmul.f32 -0.5, %v3550_v18  ;;  %v1926_v46 = vsel %vm3575_vm8, %v1923_v52, %v1920_v49  ;;  %v2884_v39 = vpop.eup %2883 }
 0x2ad   : > { %v1793_v61 = vadd.f32 %v1792_v32, %v1785_v37  ;;  %v1936_v16 = vrot.slane %v1926_v46, 4  ;;  %2887 = vlog2.f32 %v1361_v17  ;;  %v3609_v2 = vadd.f32 %v1942_v56, %v1935_v33  ;;  %v3631_v32 = vpop.xlane.xlu0 %1422 }
 0x2ae   : > { %v3554_v57 = vsel %vm1950_vm6, %v1307_v6, %v1301_v10  ;;  %v1808_v6 = vmul.f32 0.6931472, %v2878_v45  ;;  %v1823_v10 = vsel %vm1822_vm11, %v1820_v50, %v1817_v35  ;;  %v1857_v13 = vadd.f32 1.0, %v1856_v63 }
 0x2af   : > { %v3606_v53 = vpop.xlane.xlu1 %1386  ;;  %v1830_v40 = vrot.slane %v1823_v10, 4  ;;  %v1794_v23 = vrot.slane %v1793_v61, 2  ;;  %2889 = vlog2.f32 %v1352_v48  ;;  %v3616_v26 = vadd.f32 %v1936_v16, %v1926_v46 }
 0x2b0   : > { %v1814_v54 = vsel %vm1813_vm12, %v1811_v12, %v1808_v6  ;;  %v1858_v60 = vmul.f32 %v1857_v13, %v3550_v18  ;;  %v1323_v27 = vadd.f32 1.0, %v3587_v42  ;;  %v1944_v31 = vrot.slane %v3609_v2, 2 }
 0x2b1   : > { %v1824_v7 = vrot.slane %v1814_v54, 4  ;;  %v1831_v59 = vadd.f32 %v1830_v40, %v1823_v10  ;;  %v3622_v34 = vadd.f32 %v1794_v23, %v1793_v61  ;;  %v1849_v38 = vmul.f32 %v1848_v29, %v3556_v58 }
 0x2b2   : > { %v1861_v37 = vsel %vm1860_vm13, %v1858_v60, %v1855_v24  ;;  %v1885_v15 = vmul.f32 -0.5, %v3582_v25  ;;  %v1895_v35 = vadd.f32 1.0, %v1894_v5  ;;  %v1364_v36 = vmul.f32 -0.5, %v3585_v44  ;;  %v3648_v24 = vpop.xlane.xlu0 %1460 }
 0x2b3   : > { %v3619_v28 = vpop.xlane.xlu1 %1424  ;;  %v1825_v18 = vadd.f32 %v1824_v7, %v1814_v54  ;;  %v1832_v22 = vrot.slane %v1831_v59, 2  ;;  %v1852_v45 = vsel %vm1851_vm14, %v1849_v38, %v1846_v4  ;;  %v1938_v41 = vrot.slane %v3616_v26, 2 }
 0x2b4   : > { %v1868_v49 = vrot.slane %v1861_v37, 4  ;;  %v1897_v52 = vand.u32 2147483647, %v3573_v21  ;;  %2891 = vlog2.f32 %v1323_v27  ;;  %v1796_v11 = vrot.slane %v3622_v34, 1 }
 0x2b5   : > { %v2886_v58 = vpop.eup %2885  ;;  %v1893_v33 = vmul.f32 0.6931472, %v2884_v39  ;;  %v1355_v43 = vmul.f32 -0.5, %v3594_v51  ;;  %v1314_v50 = vadd.f32 1.0, %v3600_v55  ;;  %v1790_v63 = vrot.slane %v3625_v14, 1 }
 0x2b6   : > { %v1826_v9 = vrot.slane %v1825_v18, 2  ;;  %v1862_v10 = vrot.slane %v1852_v45, 4  ;;  %v1886_v12 = vadd.f32 1.0, %v1885_v15  ;;  %v3639_v56 = vadd.f32 %v1832_v22, %v1831_v59 }
 0x2b7   : > { %v2888_v6 = vpop.eup %2887  ;;  %v3637_v17 = vpop.xlane.xlu1 %1462  ;;  %v1896_v46 = vmul.f32 %v1895_v35, %v3573_v21  ;;  %v1888_v61 = vand.u32 2147483647, %v3582_v25  ;;  %v1365_v0 = vadd.f32 1.0, %v1364_v36  ;;  %v1869_v47 = vadd.f32 %v1868_v49, %v1861_v37 }
 0x2b8   : > { %vm1898_vm15 = vcmp.lt.f32.partialorder %v1897_v52, 0.0004427343  ;;  %v1884_v48 = vmul.f32 0.6931472, %v2886_v58  ;;  %v1367_v40 = vand.u32 2147483647, %v3585_v44  ;;  %2893 = vlog2.f32 %v1314_v50 }
 0x2b9   : > { %v2890_v8 = vpop.eup %2889  ;;  %v1899_v54 = vsel %vm1898_vm15, %v1896_v46, %v1893_v33  ;;  %v1363_v13 = vmul.f32 0.6931472, %v2888_v6  ;;  %v1356_v1 = vadd.f32 1.0, %v1355_v43  ;;  %v3644_v16 = vadd.f32 %v1826_v9, %v1825_v18 }
 0x2ba   : > { %v1863_v3 = vadd.f32 %v1862_v10, %v1852_v45  ;;  %v1887_v23 = vmul.f32 %v1886_v12, %v3582_v25  ;;  %v1358_v21 = vand.u32 2147483647, %v3594_v51  ;;  %vm1889_vm0 = vcmp.lt.f32.partialorder %v1888_v61, 0.0004427343 }
 0x2bb   : > { %v1366_v29 = vmul.f32 %v1365_v0, %v3585_v44  ;;  %v1354_v30 = vmul.f32 0.6931472, %v2890_v8  ;;  %v1326_v7 = vmul.f32 -0.5, %v3587_v42  ;;  %v1906_v19 = vrot.slane %v1899_v54, 4  ;;  %v3655_v4 = vpop.xlane.xlu1 %1500 }
 0x2bc   : > { %v1890_v59 = vsel %vm1889_vm0, %v1887_v23, %v1884_v48  ;;  %vm1368_vm2 = vcmp.lt.f32.partialorder %v1367_v40, 0.0004427343  ;;  %v3653_v60 = vmul.f32 8103.084, %v3606_v53  ;;  %v1834_v25 = vrot.slane %v3639_v56, 1 }
 0x2bd   : > { %v1369_v5 = vsel %vm1368_vm2, %v1366_v29, %v1363_v13  ;;  %v1357_v27 = vmul.f32 %v1356_v1, %v3594_v51  ;;  %v3660_v37 = vmul.f32 8103.084, %v3612_v20  ;;  %v1870_v38 = vrot.slane %v1869_v47, 2  ;;  %v3668_v20 = vpop.xlane.xlu0 %1498 }
 0x2be   : > { %v2892_v44 = vpop.eup %2891  ;;  %v1864_v39 = vrot.slane %v1863_v3, 2  ;;  %vm1359_vm3 = vcmp.lt.f32.partialorder %v1358_v21, 0.0004427343  ;;  %v1317_v18 = vmul.f32 -0.5, %v3600_v55  ;;  %v1900_v15 = vrot.slane %v1890_v59, 4 }
 0x2bf   : > { %v1360_v22 = vsel %vm1359_vm3, %v1357_v27, %v1354_v30  ;;  %v1327_v53 = vadd.f32 1.0, %v1326_v7  ;;  %v1329_v45 = vand.u32 2147483647, %v3587_v42  ;;  %v1828_v35 = vrot.slane %v3644_v16, 1  ;;  %v1237_v12 = vpop.xlane.xlu1 %1236 }
 0x2c0   : > { %v3665_v36 = vadd.f32 %v1906_v19, %v1899_v54  ;;  %v1376_v49 = vrot.slane %v1369_v5, 4  ;;  %v1402_v51 = vmul.f32 -0.5, %v3653_v60  ;;  %v1325_v52 = vmul.f32 0.6931472, %v2892_v44 }
 0x2c1   : > { %v1320_v58 = vand.u32 2147483647, %v3600_v55  ;;  %v1399_v33 = vadd.f32 1.0, %v3653_v60  ;;  %v1393_v43 = vmul.f32 -0.5, %v3660_v37  ;;  %v3673_v50 = vadd.f32 %v1870_v38, %v1869_v47  ;;  %v1235_v29 = vpop.xlane.xlu0 %1234 }
 0x2c2   : > { %v1370_v6 = vrot.slane %v1360_v22, 4  ;;  %v1318_v9 = vadd.f32 1.0, %v1317_v18  ;;  %v3676_v10 = vmul.f32 162754.8, %v3619_v28  ;;  %v2894_v46 = vpop.eup %2893  ;;  %v1865_v61 = vadd.f32 %v1864_v39, %v1863_v3 }
 0x2c3   : > { %v1901_v0 = vadd.f32 %v1900_v15, %v1890_v59  ;;  %v1328_v8 = vmul.f32 %v1327_v53, %v3587_v42  ;;  %vm1330_vm4 = vcmp.lt.f32.partialorder %v1329_v45, 0.0004427343  ;;  %v1908_v48 = vrot.slane %v3665_v36, 2  ;;  %v3695_v38 = vpop.xlane.xlu1 %1614 }
 0x2c4   : > { %v1377_v40 = vadd.f32 %v1376_v49, %v1369_v5  ;;  %v1403_v54 = vadd.f32 1.0, %v1402_v51  ;;  %v1390_v13 = vadd.f32 1.0, %v3660_v37  ;;  %vm3681_vm5 = vcmp.lt.f32.partialorder %v1320_v58, 0.0004427343 }
 0x2c5   : > { %v1331_v47 = vsel %vm1330_vm4, %v1328_v8, %v1325_v52  ;;  %2895 = vlog2.f32 %v1399_v33  ;;  %v1394_v28 = vadd.f32 1.0, %v1393_v43  ;;  %v1371_v23 = vadd.f32 %v1370_v6, %v1360_v22 }
 0x2c6   : > { %v1316_v21 = vmul.f32 0.6931472, %v2894_v46  ;;  %v1319_v3 = vmul.f32 %v1318_v9, %v3600_v55  ;;  %v1437_v42 = vadd.f32 1.0, %v3676_v10  ;;  %v1902_v30 = vrot.slane %v1901_v0, 2 }
 0x2c7   : > { %v1405_v7 = vand.u32 2147483647, %v3653_v60  ;;  %v1440_v19 = vmul.f32 -0.5, %v3676_v10  ;;  %v3690_v59 = vmul.f32 162754.8, %v3631_v32  ;;  %v1378_v5 = vrot.slane %v1377_v40, 2 }
 0x2c8   : > { %v1338_v27 = vrot.slane %v1331_v47, 4  ;;  %v3693_v44 = vmul.f32 %v1403_v54, %v3653_v60  ;;  %2897 = vlog2.f32 %v1390_v13  ;;  %v3698_v55 = vmul.f32 %v1394_v28, %v3660_v37 }
 0x2c9   : > { %v1396_v39 = vand.u32 2147483647, %v3660_v37  ;;  %v3701_v18 = vmul.f32 2.2603294e-06, %v1237_v12  ;;  %v3703_v15 = vmul.f32 2.2603294e-06, %v1235_v29  ;;  %v1322_v32 = vsel %vm3681_vm5, %v1319_v3, %v1316_v21  ;;  %v3715_v12 = vpop.xlane.xlu0 %1612 }
 0x2ca   : > { %v1372_v22 = vrot.slane %v1371_v23, 2  ;;  %2899 = vlog2.f32 %v1437_v42  ;;  %v1443_v60 = vand.u32 2147483647, %v3676_v10  ;;  %vm2013_vm7 = vcmask 7168  }
 0x2cb   : > { %v1441_v53 = vadd.f32 1.0, %v1440_v19  ;;  %v1866_v45 = vrot.slane %v1865_v61, 1  ;;  %v1872_v49 = vrot.slane %v3673_v50, 1  ;;  %v1903_v51 = vadd.f32 %v1902_v30, %v1901_v0 }
 0x2cc   : > { %vm2015_vm8 = vcmask 15360   ;;  %v3709_v52 = vadd.f32 %v1378_v5, %v1377_v40  ;;  %v1339_v37 = vadd.f32 %v1338_v27, %v1331_v47  ;;  %v1428_v58 = vadd.f32 1.0, %v3690_v59  ;;  %v1199_v47 = vpop.xlane.xlu1 %1198 }
 0x2cd   : > { %v1431_v33 = vmul.f32 -0.5, %v3690_v59  ;;  %v1332_v43 = vrot.slane %v1322_v32, 4  ;;  %v1249_v6 = vadd.f32 1.0, %v3701_v18  ;;  %v1240_v9 = vadd.f32 1.0, %v3703_v15  ;;  %v1197_v29 = vpop.xlane.xlu0 %1196 }
 0x2ce   : > { %v1904_v46 = vrot.slane %v1903_v51, 1  ;;  %vm3717_vm11 = vcmp.lt.f32.partialorder %v1405_v7, 0.0004427343  ;;  %v1791_v8 = vadd.f32 %v1790_v63, %v3625_v14  ;;  %v1797_v40 = vadd.f32 %v1796_v11, %v3622_v34 }
 0x2cf   : > { %v1909_v54 = vadd.f32 %v1908_v48, %v3665_v36  ;;  %v1939_v13 = vadd.f32 %v1938_v41, %v3616_v26  ;;  %v2896_v1 = vpop.eup %2895  ;;  %v1829_v28 = vadd.f32 %v1828_v35, %v3644_v16  ;;  %v1835_v14 = vadd.f32 %v1834_v25, %v3639_v56 }
 0x2d0   : > { %v1867_v63 = vadd.f32 %v1866_v45, %v1865_v61  ;;  %v1873_v21 = vadd.f32 %v1872_v49, %v3673_v50  ;;  %v1905_v34 = vadd.f32 %v1904_v46, %v1903_v51  ;;  %v1945_v26 = vadd.f32 %v1944_v31, %v3609_v2  ;;  %v3758_v27 = vpop.xlane.xlu1 %1576 }
 0x2d1   : > { %v1910_v11 = vrot.slane %v1909_v54, 1  ;;  %v1940_v36 = vrot.slane %v1939_v13, 1  ;;  %v1380_v41 = vrot.slane %v3709_v52, 1  ;;  %v3742_v48 = vadd.f32 %v1372_v22, %v1371_v23  ;;  %v3778_v0 = vpop.xlane.xlu0 %1574 }
 0x2d2   : > { %v1340_v3 = vrot.slane %v1339_v37, 2  ;;  %v3745_v16 = vmul.f32 %v1441_v53, %v3676_v10  ;;  %v2898_v35 = vpop.eup %2897  ;;  %v1333_v56 = vadd.f32 %v1332_v43, %v1322_v32  ;;  %v1401_v25 = vmul.f32 0.6931472, %v2896_v1 }
 0x2d3   : > { %vm3747_vm12 = vcmp.lt.f32.partialorder %v1396_v39, 0.0004427343  ;;  %v3752_v61 = vmul.f32 1202604.3, %v3637_v17  ;;  %v1911_v42 = vadd.f32 %v1910_v11, %v1909_v54  ;;  %2901 = vlog2.f32 %v1249_v6 }
 0x2d4   : > { %v1941_v2 = vadd.f32 %v1940_v36, %v1939_v13  ;;  %v1946_v31 = vrot.slane %v1945_v26, 1  ;;  %v2049_v23 = vsel %vm1950_vm6, %v1835_v14, %v1829_v28  ;;  %v2900_v30 = vpop.eup %2899  ;;  %2903 = vlog2.f32 %v1240_v9  ;;  %v1161_v14 = vpop.xlane.xlu1 %1160 }
 0x2d5   : > { %v2045_v7 = vsel %vm1950_vm6, %v1797_v40, %v1791_v8  ;;  %v2053_v19 = vsel %vm1950_vm6, %v1873_v21, %v1867_v63  ;;  %v2057_v5 = vsel %vm1950_vm6, %v1911_v42, %v1905_v34  ;;  %v1341_v39 = vadd.f32 %v1340_v3, %v1339_v37 }
 0x2d6   : > { %v1432_v17 = vadd.f32 1.0, %v1431_v33  ;;  %v1947_v22 = vadd.f32 %v1946_v31, %v1945_v26  ;;  %v2063_v32 = vsel %vm2013_vm7, %v2045_v7, %v2049_v23  ;;  %v1334_v53 = vrot.slane %v1333_v56, 2 }
 0x2d7   : > { %v2064_v45 = vsel %vm2015_vm8, %v2063_v32, %v2053_v19  ;;  %v3762_v49 = vmul.f32 7.5825607e-10, %v1199_v47  ;;  %v3764_v51 = vmul.f32 7.5825607e-10, %v1197_v29  ;;  %v1407_v43 = vsel %vm3717_vm11, %v3693_v44, %v1401_v25 }
 0x2d8   : > { %v1392_v6 = vmul.f32 0.6931472, %v2898_v35  ;;  %v2061_v9 = vsel %vm1950_vm6, %v1947_v22, %v1941_v2  ;;  %v2065_v37 = vsel %vm2017_vm9, %v2064_v45, %v2057_v5  ;;  %v1475_v33 = vadd.f32 1.0, %v3752_v61  ;;  %v1159_v5 = vpop.xlane.xlu0 %1158 }
 0x2d9   : > { %v1478_v46 = vmul.f32 -0.5, %v3752_v61  ;;  %v2066_v8 = vsel %vm2019_vm10, %v2065_v37, %v2061_v9  ;;  %v1211_v40 = vadd.f32 1.0, %v3762_v49  ;;  %v1374_v54 = vrot.slane %v3742_v48, 1 }
 0x2da   : > { %2905 = vlog2.f32 %v1428_v58  ;;  %v1252_v13 = vmul.f32 -0.5, %v3701_v18  ;;  %2068 = vrot.lane.b32.xlu0 %v2066_v8, %s3035_s7  ;;  %v1202_v44 = vadd.f32 1.0, %v3764_v51  ;;  %v1342_v47 = vrot.slane %v1341_v39, 1  ;;  %s3038_s7 = smov [#allocation5]  }
 0x2db   : > { %v1414_v1 = vrot.slane %v1407_v43, 4  ;;  %v1434_v28 = vand.u32 2147483647, %v3690_v59  ;;  %2907 = vlog2.f32 %v1211_v40  ;;  %v3781_v63 = vadd.f32 %v1334_v53, %v1333_v56  ;;  %s2955_s10 = sshll.u32 %s3038_s7, 4  ;;  %s2956_s10 = int_to_ptr.vmem [resolvable:$false] %s2955_s10 }
 0x2dc   : > { %v1398_v58 = vsel %vm3747_vm12, %v3698_v55, %v1392_v6  ;;  %v1243_v21 = vmul.f32 -0.5, %v3703_v15  ;;  %2909 = vlog2.f32 %v1202_v44  ;;  %v3788_v34 = vmul.f32 %v1432_v17, %v3690_v59  ;;  %s2957_s13 = scalar_lea.vmem %s2956_s10, 32  ;;  %p2958_p1 = scmp.lt.s32.totalorder %s4066_s22, %s2956_s10 }
 0x2dd   : > { %2911 = vlog2.f32 %v1475_v33  ;;  %v1479_v11 = vadd.f32 1.0, %v1478_v46  ;;  %v3791_v36 = vmul.f32 1202604.3, %v3648_v24  ;;  %v2902_v26 = vpop.eup %2901  ;;  %v1481_v3 = vand.u32 2147483647, %v3752_v61  ;;  %p2959_p2 = scmp.lt.s32.totalorder %s2957_s13, %s2951_s28 }
 0x2de   : > { %v1253_v35 = vadd.f32 1.0, %v1252_v13  ;;  %v1214_v56 = vmul.f32 -0.5, %v3762_v49  ;;  %v3795_v25 = vmul.f32 9.357623e-14, %v1161_v14  ;;  %v2904_v55 = vpop.eup %2903  ;;  %v3797_v50 = vadd.f32 %v1342_v47, %v1341_v39 }
 0x2df   : > { %v1415_v42 = vadd.f32 %v1414_v1, %v1407_v43  ;;  %v1408_v2 = vrot.slane %v1398_v58, 4  ;;  %vm3801_vm13 = vcmp.lt.f32.partialorder %v1443_v60, 0.0004427343  ;;  %v1205_v24 = vmul.f32 -0.5, %v3764_v51  ;;  %p2960_p3 = por %p2959_p2, %p2958_p1 }
 0x2e0   : > { %v1336_v23 = vrot.slane %v3781_v63, 1  ;;  %v1439_v29 = vmul.f32 0.6931472, %v2900_v30  ;;  %v1255_v7 = vand.u32 2147483647, %v3701_v18  ;;  %v1244_v19 = vadd.f32 1.0, %v1243_v21 }
 0x2e1   : > { %v1466_v39 = vadd.f32 1.0, %v3791_v36  ;;  %v1251_v17 = vmul.f32 0.6931472, %v2902_v26  ;;  %v1246_v22 = vand.u32 2147483647, %v3703_v15  ;;  %v1173_v10 = vadd.f32 1.0, %v3795_v25  ;;  %p2961_p5 = pnand %p2960_p3, %p2954_p0 }
 0x2e2   : > { %v3812_v60 = vmul.f32 %v1479_v11, %v3752_v61  ;;  %v1254_v32 = vmul.f32 %v1253_v35, %v3701_v18  ;;  %v1242_v53 = vmul.f32 0.6931472, %v2904_v55  ;;  %v1215_v45 = vadd.f32 1.0, %v1214_v56 }
 0x2e3   : > { %v1217_v30 = vand.u32 2147483647, %v3762_v49  ;;  %v1206_v43 = vadd.f32 1.0, %v1205_v24  ;;  %2913 = vlog2.f32 %v1173_v10  ;;  %v3816_v6 = vmul.f32 9.357623e-14, %v1159_v5 }
 0x2e4   : > { %v2906_v9 = vpop.eup %2905  ;;  %v1416_v37 = vrot.slane %v1415_v42, 2  ;;  %vm1256_vm14 = vcmp.lt.f32.partialorder %v1255_v7, 0.0004427343  ;;  %v1245_v33 = vmul.f32 %v1244_v19, %v3703_v15  ;;  %v1208_v46 = vand.u32 2147483647, %v3764_v51 }
 0x2e5   : > { %v2908_v8 = vpop.eup %2907  ;;  %2915 = vlog2.f32 %v1466_v39  ;;  %v1257_v40 = vsel %vm1256_vm14, %v1254_v32, %v1251_v17  ;;  %vm1247_vm15 = vcmp.lt.f32.partialorder %v1246_v22, 0.0004427343  ;;  %v1164_v18 = vadd.f32 1.0, %v3816_v6 }
 0x2e6   : > { %v2910_v13 = vpop.eup %2909  ;;  %v1248_v44 = vsel %vm1247_vm15, %v1245_v33, %v1242_v53  ;;  %v1213_v47 = vmul.f32 0.6931472, %v2908_v8  ;;  %v1216_v1 = vmul.f32 %v1215_v45, %v3762_v49  ;;  %v1176_v14 = vmul.f32 -0.5, %v3795_v25 }
 0x2e7   : > { %v2912_v21 = vpop.eup %2911  ;;  %vm1218_vm0 = vcmp.lt.f32.partialorder %v1217_v30, 0.0004427343  ;;  %v1204_v11 = vmul.f32 0.6931472, %v2910_v13  ;;  %v1207_v15 = vmul.f32 %v1206_v43, %v3764_v51  ;;  %2917 = vlog2.f32 %v1164_v18 }
 0x2e8   : > { %v1409_v26 = vadd.f32 %v1408_v2, %v1398_v58  ;;  %v1445_v35 = vsel %vm3801_vm13, %v3745_v16, %v1439_v29  ;;  %v1219_v56 = vsel %vm1218_vm0, %v1216_v1, %v1213_v47  ;;  %vm1209_vm2 = vcmp.lt.f32.partialorder %v1208_v46, 0.0004427343 }
 0x2e9   : > { %v3828_v55 = vmul.f32 3269017.3, %v3655_v4  ;;  %v1264_v24 = vrot.slane %v1257_v40, 4  ;;  %v1226_v49 = vrot.slane %v1219_v56, 4  ;;  %v1210_v7 = vsel %vm1209_vm2, %v1207_v15, %v1204_v11 }
 0x2ea   : > { %v1258_v19 = vrot.slane %v1248_v44, 4  ;;  %v1220_v5 = vrot.slane %v1210_v7, 4  ;;  %v1177_v39 = vadd.f32 1.0, %v1176_v14  ;;  %v1167_v17 = vmul.f32 -0.5, %v3816_v6 }
 0x2eb   : > { %v3832_v51 = vadd.f32 %v1336_v23, %v3781_v63  ;;  %v1452_v58 = vrot.slane %v1445_v35, 4  ;;  %vm3836_vm3 = vcmp.lt.f32.partialorder %v1434_v28, 0.0004427343  ;;  %v3841_v4 = vmul.f32 3269017.3, %v3668_v20 }
 0x2ec   : > { %v1179_v2 = vand.u32 2147483647, %v3795_v25  ;;  %v3844_v31 = vadd.f32 %v1416_v37, %v1415_v42  ;;  %v1430_v29 = vmul.f32 0.6931472, %v2906_v9  ;;  %v1469_v22 = vmul.f32 -0.5, %v3791_v36  ;;  %v3880_v42 = vpop.xlane.xlu1 %1652 }
 0x2ed   : > { %v1472_v63 = vand.u32 2147483647, %v3791_v36  ;;  %v2914_v23 = vpop.eup %2913  ;;  %v1513_v10 = vadd.f32 1.0, %v3828_v55  ;;  %v1265_v59 = vadd.f32 %v1264_v24, %v1257_v40  ;;  %v1227_v28 = vadd.f32 %v1226_v49, %v1219_v56 }
 0x2ee   : > { %v1221_v32 = vadd.f32 %v1220_v5, %v1210_v7  ;;  %v1259_v53 = vadd.f32 %v1258_v19, %v1248_v44  ;;  %v1175_v45 = vmul.f32 0.6931472, %v2914_v23  ;;  %v1178_v20 = vmul.f32 %v1177_v39, %v3795_v25 }
 0x2ef   : > { %v1168_v30 = vadd.f32 1.0, %v1167_v17  ;;  %v2916_v43 = vpop.eup %2915  ;;  %v1410_v33 = vrot.slane %v1409_v26, 2  ;;  %vm3852_vm4 = vcmp.lt.f32.partialorder %v1481_v3, 0.0004427343  ;;  %v1504_v9 = vadd.f32 1.0, %v3841_v4 }
 0x2f0   : > { %vm1180_vm5 = vcmp.lt.f32.partialorder %v1179_v2, 0.0004427343  ;;  %v1170_v37 = vand.u32 2147483647, %v3816_v6  ;;  %v1418_v46 = vrot.slane %v3844_v31, 1  ;;  %v1453_v8 = vadd.f32 %v1452_v58, %v1445_v35 }
 0x2f1   : > { %v1470_v40 = vadd.f32 1.0, %v1469_v22  ;;  %v1181_v18 = vsel %vm1180_vm5, %v1178_v20, %v1175_v45  ;;  %v2918_v25 = vpop.eup %2917  ;;  %2919 = vlog2.f32 %v1513_v10  ;;  %v1228_v13 = vrot.slane %v1227_v28, 2 }
 0x2f2   : > { %v1222_v44 = vrot.slane %v1221_v32, 2  ;;  %v1188_v47 = vrot.slane %v1181_v18, 4  ;;  %v1266_v61 = vrot.slane %v1265_v59, 2  ;;  %v1260_v3 = vrot.slane %v1259_v53, 2 }
 0x2f3   : > { %v1166_v1 = vmul.f32 0.6931472, %v2918_v25  ;;  %v1169_v14 = vmul.f32 %v1168_v30, %v3816_v6  ;;  %v3860_v11 = vadd.f32 %v1410_v33, %v1409_v26  ;;  %2921 = vlog2.f32 %v1504_v9 }
 0x2f4   : > { %v1189_v15 = vadd.f32 %v1188_v47, %v1181_v18  ;;  %vm1171_vm11 = vcmp.lt.f32.partialorder %v1170_v37, 0.0004427343  ;;  %v1436_v35 = vsel %vm3836_vm3, %v3788_v34, %v1430_v29  ;;  %v1477_v56 = vmul.f32 0.6931472, %v2912_v21 }
 0x2f5   : > { %v1468_v24 = vmul.f32 0.6931472, %v2916_v43  ;;  %v1172_v49 = vsel %vm1171_vm11, %v1169_v14, %v1166_v1  ;;  %v1229_v7 = vadd.f32 %v1228_v13, %v1227_v28  ;;  %v1223_v19 = vadd.f32 %v1222_v44, %v1221_v32 }
 0x2f6   : > { %v1190_v5 = vrot.slane %v1189_v15, 2  ;;  %v1182_v39 = vrot.slane %v1172_v49, 4  ;;  %v1471_v17 = vmul.f32 %v1470_v40, %v3791_v36  ;;  %vm1473_vm12 = vcmp.lt.f32.partialorder %v1472_v63, 0.0004427343 }
 0x2f7   : > { %v1267_v6 = vadd.f32 %v1266_v61, %v1265_v59  ;;  %v1261_v26 = vadd.f32 %v1260_v3, %v1259_v53  ;;  %v1454_v58 = vrot.slane %v1453_v8, 2  ;;  %v1446_v2 = vrot.slane %v1436_v35, 4  ;;  %v3883_v61 = vpop.xlane.xlu0 %1650 }
 0x2f8   : > { %v1191_v22 = vadd.f32 %v1190_v5, %v1189_v15  ;;  %v1183_v23 = vadd.f32 %v1182_v39, %v1172_v49  ;;  %v1483_v34 = vsel %vm3852_vm4, %v3812_v60, %v1477_v56  ;;  %v1474_v21 = vsel %vm1473_vm12, %v1471_v17, %v1468_v24  ;;  %v1539_v17 = vpop.xlane.xlu1 %1538 }
 0x2f9   : > { %v1516_v16 = vmul.f32 -0.5, %v3828_v55  ;;  %v1519_v29 = vand.u32 2147483647, %v3828_v55  ;;  %v1230_v10 = vrot.slane %v1229_v7, 1  ;;  %v1224_v28 = vrot.slane %v1223_v19, 1 }
 0x2fa   : > { %v1192_v32 = vrot.slane %v1191_v22, 1  ;;  %v1184_v36 = vrot.slane %v1183_v23, 2  ;;  %v1507_v63 = vmul.f32 -0.5, %v3841_v4  ;;  %v1268_v59 = vrot.slane %v1267_v6, 1 }
 0x2fb   : > { %v1262_v53 = vrot.slane %v1261_v26, 1  ;;  %v3873_v45 = vmul.f32 1096.6332, %v3695_v38  ;;  %v2920_v20 = vpop.eup %2919  ;;  %v3875_v30 = vadd.f32 %v1454_v58, %v1453_v8  ;;  %v1490_v60 = vrot.slane %v1483_v34, 4 }
 0x2fc   : > { %v3878_v43 = vmul.f32 1096.6332, %v3715_v12  ;;  %v1185_v33 = vadd.f32 %v1184_v36, %v1183_v23  ;;  %v1447_v9 = vadd.f32 %v1446_v2, %v1436_v35  ;;  %v1484_v37 = vrot.slane %v1474_v21, 4 }
 0x2fd   : > { %v1517_v40 = vadd.f32 1.0, %v1516_v16  ;;  %v1510_v18 = vand.u32 2147483647, %v3841_v4  ;;  %v2922_v25 = vpop.eup %2921  ;;  %v1231_v13 = vadd.f32 %v1230_v10, %v1229_v7  ;;  %v1225_v44 = vadd.f32 %v1224_v28, %v1223_v19 }
 0x2fe   : > { %v1193_v38 = vadd.f32 %v1192_v32, %v1191_v22  ;;  %v1186_v47 = vrot.slane %v1185_v33, 1  ;;  %v1508_v8 = vadd.f32 1.0, %v1507_v63  ;;  %v1269_v3 = vadd.f32 %v1268_v59, %v1267_v6 }
 0x2ff   : > { %v1263_v1 = vadd.f32 %v1262_v53, %v1261_v26  ;;  %v1627_v12 = vadd.f32 1.0, %v3873_v45  ;;  %v1491_v14 = vadd.f32 %v1490_v60, %v1483_v34  ;;  %v1515_v15 = vmul.f32 0.6931472, %v2920_v20  ;;  %v1537_v34 = vpop.xlane.xlu0 %1536 }
 0x300   : > { %v1618_v35 = vadd.f32 1.0, %v3878_v43  ;;  %v1187_v56 = vadd.f32 %v1186_v47, %v1185_v33  ;;  %v1448_v24 = vrot.slane %v1447_v9, 2  ;;  %v1485_v49 = vadd.f32 %v1484_v37, %v1474_v21 }
 0x301   : > { %vm1520_vm13 = vcmp.lt.f32.partialorder %v1519_v29, 0.0004427343  ;;  %v1506_v5 = vmul.f32 0.6931472, %v2922_v25  ;;  %v1518_v7 = vmul.f32 %v1517_v40, %v3828_v55  ;;  %vm1511_vm14 = vcmp.lt.f32.partialorder %v1510_v18, 0.0004427343 }
 0x302   : > { %v1955_v19 = vsel %vm1950_vm6, %v1231_v13, %v1225_v44  ;;  %v1951_v39 = vsel %vm1950_vm6, %v1193_v38, %v1187_v56  ;;  %v1509_v6 = vmul.f32 %v1508_v8, %v3841_v4  ;;  %v1959_v26 = vsel %vm1950_vm6, %v1269_v3, %v1263_v1  ;;  %v1727_v8 = vpop.xlane.xlu1 %1726 }
 0x303   : > { %2923 = vlog2.f32 %v1627_v12  ;;  %v2014_v58 = vsel %vm2013_vm7, %v1951_v39, %v1955_v19  ;;  %v1492_v2 = vrot.slane %v1491_v14, 2  ;;  %v1521_v22 = vsel %vm1520_vm13, %v1518_v7, %v1515_v15 }
 0x304   : > { %2925 = vlog2.f32 %v1618_v35  ;;  %v2016_v23 = vsel %vm2015_vm8, %v2014_v58, %v1959_v26  ;;  %v1486_v55 = vrot.slane %v1485_v49, 2  ;;  %v1512_v21 = vsel %vm1511_vm14, %v1509_v6, %v1506_v5 }
 0x305   : > { %v2018_v16 = vsel %vm2017_vm9, %v2016_v23, %v3554_v57  ;;  %v3896_v29 = vmul.f32 22026.465, %v1539_v17  ;;  %v1381_v4 = vadd.f32 %v1380_v41, %v3709_v52  ;;  %v3902_v10 = vmul.f32 8103.084, %v3758_v27  ;;  %v2073_v57 = vld [vmem:[%s4118_s2] sm:$0xff]  ;;  %v2074_v52 = vld [vmem:[%s4118_s2 + $0x8] sm:$0xff] }
 0x306   : > { %v1375_v28 = vadd.f32 %v1374_v54, %v3742_v48  ;;  %v1412_v32 = vrot.slane %v3860_v11, 1  ;;  %v1528_v36 = vrot.slane %v1521_v22, 4  ;;  %v3908_v63 = vmul.f32 22026.465, %v1537_v34  ;;  %v3962_v34 = vpop.xlane.xlu1 %1690 }
 0x307   : > { %v1967_v41 = vsel %vm1950_vm6, %v3797_v50, %v3832_v51  ;;  %v1456_v27 = vrot.slane %v3875_v30, 1  ;;  %v1449_v48 = vadd.f32 %v1448_v24, %v1447_v9  ;;  %v1522_v54 = vrot.slane %v1512_v21, 4 }
 0x308   : > { %v1419_v59 = vadd.f32 %v1418_v46, %v3844_v31  ;;  %v1493_v53 = vadd.f32 %v1492_v2, %v1491_v14  ;;  %v1487_v20 = vadd.f32 %v1486_v55, %v1485_v49  ;;  %v1551_v60 = vadd.f32 1.0, %v3896_v29  ;;  %v1725_v14 = vpop.xlane.xlu0 %1724 }
 0x309   : > { %v1630_v33 = vmul.f32 -0.5, %v3873_v45  ;;  %v1589_v37 = vadd.f32 1.0, %v3902_v10  ;;  %v3927_v40 = vmul.f32 8103.084, %v3778_v0  ;;  %v2705_v50 = vpack.c.bf16 %v2074_v52, %v2073_v57 }
 0x30a   : > { %v1413_v51 = vadd.f32 %v1412_v32, %v3860_v11  ;;  %v1529_v9 = vadd.f32 %v1528_v36, %v1521_v22  ;;  %v1621_v18 = vmul.f32 -0.5, %v3878_v43  ;;  %v1542_v25 = vadd.f32 1.0, %v3908_v63  ;;  %v2075_v11 = vld [vmem:[%s4118_s2 + $0x10] sm:$0x1f] }
 0x30b   : > { %v1457_v31 = vadd.f32 %v1456_v27, %v3875_v30  ;;  %v1450_v46 = vrot.slane %v1449_v48, 1  ;;  %v1523_v13 = vadd.f32 %v1522_v54, %v1512_v21  ;;  %2706 = vmatpush3.bf16.msra.mxu0 %v2705_v50  ;;  %v3934_v44 = vsel %vm2019_vm10, %v2018_v16, %v1967_v41 }
 0x30c   : > { %v1494_v47 = vrot.slane %v1493_v53, 1  ;;  %v1488_v0 = vrot.slane %v1487_v20, 1  ;;  %2927 = vlog2.f32 %v1551_v60  ;;  %2623 = vmatprep.subr.mxu0 %v3033_v62  ;;  %vm2087_vm7 = vcmask 1044480   ;;  %v3967_v16 = vpop.xlane.xlu0 %1688 }
 0x30d   : > { %v2924_v38 = vpop.eup %2923  ;;  %v1631_v30 = vadd.f32 1.0, %v1630_v33  ;;  %2929 = vlog2.f32 %v1589_v37  ;;  %v1580_v1 = vadd.f32 1.0, %v3927_v40  ;;  %v3942_v12 = vmul.f32 54.59815, %v3880_v42 }
 0x30e   : > { %v2926_v3 = vpop.eup %2925  ;;  %v1530_v15 = vrot.slane %v1529_v9, 2  ;;  %v1622_v35 = vadd.f32 1.0, %v1621_v18  ;;  %v3945_v56 = vmul.f32 54.59815, %v3883_v61  ;;  %2931 = vlog2.f32 %v1542_v25 }
 0x30f   : > { %v1451_v24 = vadd.f32 %v1450_v46, %v1449_v48  ;;  %v1524_v49 = vrot.slane %v1523_v13, 2  ;;  %v1633_v5 = vand.u32 2147483647, %v3873_v45  ;;  %v1624_v7 = vand.u32 2147483647, %v3878_v43  ;;  %2624 = vmatpush3.msk.msra.mxu0 %vm2087_vm7, %v2075_v11 }
 0x310   : > { %v1495_v19 = vadd.f32 %v1494_v47, %v1493_v53  ;;  %v1489_v39 = vadd.f32 %v1488_v0, %v1487_v20  ;;  %v1629_v17 = vmul.f32 0.6931472, %v2924_v38  ;;  %v1620_v42 = vmul.f32 0.6931472, %v2926_v3 }
 0x311   : > { %v3951_v6 = vsel %vm1950_vm6, %v1381_v4, %v1375_v28  ;;  %v3954_v26 = vsel %vm1950_vm6, %v1419_v59, %v1413_v51  ;;  %2933 = vlog2.f32 %v1580_v1  ;;  %v1665_v61 = vadd.f32 1.0, %v3942_v12 }
 0x312   : > { %v3957_v58 = vadd.f32 %v1530_v15, %v1529_v9  ;;  %v1632_v2 = vmul.f32 %v1631_v30, %v3873_v45  ;;  %v1623_v22 = vmul.f32 %v1622_v35, %v3878_v43  ;;  %v1656_v23 = vadd.f32 1.0, %v3945_v56 }
 0x313   : > { %v3964_v55 = vadd.f32 %v1524_v49, %v1523_v13  ;;  %vm1634_vm8 = vcmp.lt.f32.partialorder %v1633_v5, 0.0004427343  ;;  %vm1625_vm9 = vcmp.lt.f32.partialorder %v1624_v7, 0.0004427343  ;;  %v1554_v21 = vmul.f32 -0.5, %v3896_v29 }
 0x314   : > { %v3970_v4 = vsel %vm1950_vm6, %v1457_v31, %v1451_v24  ;;  %v3973_v28 = vsel %vm1950_vm6, %v1495_v19, %v1489_v39  ;;  %v1635_v45 = vsel %vm1634_vm8, %v1632_v2, %v1629_v17  ;;  %v1626_v43 = vsel %vm1625_vm9, %v1623_v22, %v1620_v42 }
 0x315   : > { %v1592_v32 = vmul.f32 -0.5, %v3902_v10  ;;  %2935 = vlog2.f32 %v1665_v61  ;;  %v1545_v36 = vmul.f32 -0.5, %v3908_v63  ;;  %v1701_v57 = vadd.f32 1.0, %v3962_v34 }
 0x316   : > { %v2928_v52 = vpop.eup %2927  ;;  %v1532_v41 = vrot.slane %v3957_v58, 1  ;;  %2937 = vlog2.f32 %v1656_v23  ;;  %v3979_v27 = vmul.f32 0.006737947, %v1727_v8  ;;  %v1692_v48 = vadd.f32 1.0, %v3967_v16 }
 0x317   : > { %v2930_v54 = vpop.eup %2929  ;;  %v1526_v59 = vrot.slane %v3964_v55, 1  ;;  %v1642_v53 = vrot.slane %v1635_v45, 4  ;;  %v1555_v20 = vadd.f32 1.0, %v1554_v21  ;;  %v3983_v60 = vmul.f32 0.006737947, %v1725_v14 }
 0x318   : > { %v2932_v33 = vpop.eup %2931  ;;  %v1636_v37 = vrot.slane %v1626_v43, 4  ;;  %v1595_v50 = vand.u32 2147483647, %v3902_v10  ;;  %v1583_v51 = vmul.f32 -0.5, %v3927_v40  ;;  %v1557_v9 = vand.u32 2147483647, %v3896_v29 }
 0x319   : > { %v1593_v18 = vadd.f32 1.0, %v1592_v32  ;;  %v1553_v25 = vmul.f32 0.6931472, %v2928_v52  ;;  %v1546_v31 = vadd.f32 1.0, %v1545_v36  ;;  %2939 = vlog2.f32 %v1701_v57 }
 0x31a   : > { %v1668_v46 = vmul.f32 -0.5, %v3942_v12  ;;  %v1548_v13 = vand.u32 2147483647, %v3908_v63  ;;  %v1739_v38 = vadd.f32 1.0, %v3979_v27  ;;  %2941 = vlog2.f32 %v1692_v48 }
 0x31b   : > { %v2934_v47 = vpop.eup %2933  ;;  %v1591_v0 = vmul.f32 0.6931472, %v2930_v54  ;;  %v1556_v8 = vmul.f32 %v1555_v20, %v3896_v29  ;;  %v1544_v11 = vmul.f32 0.6931472, %v2932_v33  ;;  %v1730_v3 = vadd.f32 1.0, %v3983_v60 }
 0x31c   : > { %v1584_v30 = vadd.f32 1.0, %v1583_v51  ;;  %v1586_v1 = vand.u32 2147483647, %v3927_v40  ;;  %v1659_v14 = vmul.f32 -0.5, %v3945_v56  ;;  %vm1558_vm10 = vcmp.lt.f32.partialorder %v1557_v9, 0.0004427343 }
 0x31d   : > { %v1594_v15 = vmul.f32 %v1593_v18, %v3902_v10  ;;  %vm1596_vm15 = vcmp.lt.f32.partialorder %v1595_v50, 0.0004427343  ;;  %v1559_v35 = vsel %vm1558_vm10, %v1556_v8, %v1553_v25  ;;  %v1547_v24 = vmul.f32 %v1546_v31, %v3908_v63 }
 0x31e   : > { %v1582_v49 = vmul.f32 0.6931472, %v2934_v47  ;;  %v1669_v5 = vadd.f32 1.0, %v1668_v46  ;;  %vm1549_vm0 = vcmp.lt.f32.partialorder %v1548_v13, 0.0004427343  ;;  %2943 = vlog2.f32 %v1739_v38 }
 0x31f   : > { %v2936_v29 = vpop.eup %2935  ;;  %v1597_v7 = vsel %vm1596_vm15, %v1594_v15, %v1591_v0  ;;  %v1671_v19 = vand.u32 2147483647, %v3942_v12  ;;  %v1550_v39 = vsel %vm1549_vm0, %v1547_v24, %v1544_v11  ;;  %2945 = vlog2.f32 %v1730_v3 }
 0x320   : > { %v2938_v17 = vpop.eup %2937  ;;  %v1585_v42 = vmul.f32 %v1584_v30, %v3927_v40  ;;  %v1660_v61 = vadd.f32 1.0, %v1659_v14  ;;  %v1662_v10 = vand.u32 2147483647, %v3945_v56  ;;  %v1566_v2 = vrot.slane %v1559_v35, 4 }
 0x321   : > { %v4000_v22 = vadd.f32 %v1642_v53, %v1635_v45  ;;  %vm1587_vm2 = vcmp.lt.f32.partialorder %v1586_v1, 0.0004427343  ;;  %v1704_v63 = vmul.f32 -0.5, %v3962_v34  ;;  %v1695_v23 = vmul.f32 -0.5, %v3967_v16 }
 0x322   : > { %v4004_v21 = vadd.f32 %v1636_v37, %v1626_v43  ;;  %v1604_v32 = vrot.slane %v1597_v7, 4  ;;  %v1588_v36 = vsel %vm1587_vm2, %v1585_v42, %v1582_v49  ;;  %v1560_v57 = vrot.slane %v1550_v39, 4 }
 0x323   : > { %v2940_v52 = vpop.eup %2939  ;;  %v1667_v48 = vmul.f32 0.6931472, %v2936_v29  ;;  %v1670_v40 = vmul.f32 %v1669_v5, %v3942_v12  ;;  %vm1672_vm3 = vcmp.lt.f32.partialorder %v1671_v19, 0.0004427343  ;;  %v1658_v54 = vmul.f32 0.6931472, %v2938_v17 }
 0x324   : > { %v2942_v20 = vpop.eup %2941  ;;  %v1661_v45 = vmul.f32 %v1660_v61, %v3945_v56  ;;  %vm1663_vm4 = vcmp.lt.f32.partialorder %v1662_v10, 0.0004427343  ;;  %v1567_v53 = vadd.f32 %v1566_v2, %v1559_v35  ;;  %v1742_v33 = vmul.f32 -0.5, %v3979_v27 }
 0x325   : > { %v1598_v50 = vrot.slane %v1588_v36, 4  ;;  %v1733_v43 = vmul.f32 -0.5, %v3983_v60  ;;  %v1705_v37 = vadd.f32 1.0, %v1704_v63  ;;  %v1696_v51 = vadd.f32 1.0, %v1695_v23 }
 0x326   : > { %v1605_v9 = vadd.f32 %v1604_v32, %v1597_v7  ;;  %v1561_v18 = vadd.f32 %v1560_v57, %v1550_v39  ;;  %v1707_v25 = vand.u32 2147483647, %v3962_v34  ;;  %v1698_v12 = vand.u32 2147483647, %v3967_v16 }
 0x327   : > { %v1673_v31 = vsel %vm1672_vm3, %v1670_v40, %v1667_v48  ;;  %v1664_v46 = vsel %vm1663_vm4, %v1661_v45, %v1658_v54  ;;  %v1703_v13 = vmul.f32 0.6931472, %v2940_v52  ;;  %v1694_v38 = vmul.f32 0.6931472, %v2942_v20 }
 0x328   : > { %v2944_v56 = vpop.eup %2943  ;;  %v1568_v47 = vrot.slane %v1567_v53, 2  ;;  %v1743_v0 = vadd.f32 1.0, %v1742_v33  ;;  %v1745_v8 = vand.u32 2147483647, %v3979_v27  ;;  %vm2021_vm5 = vcmask 39936  }
 0x329   : > { %v2946_v11 = vpop.eup %2945  ;;  %v1734_v3 = vadd.f32 1.0, %v1733_v43  ;;  %v1736_v30 = vand.u32 2147483647, %v3983_v60  ;;  %v1706_v1 = vmul.f32 %v1705_v37, %v3962_v34  ;;  %v1697_v14 = vmul.f32 %v1696_v51, %v3967_v16 }
 0x32a   : > { %v1599_v15 = vadd.f32 %v1598_v50, %v1588_v36  ;;  %v1562_v35 = vrot.slane %v1561_v18, 2  ;;  %vm1708_vm11 = vcmp.lt.f32.partialorder %v1707_v25, 0.0004427343  ;;  %vm1699_vm12 = vcmp.lt.f32.partialorder %v1698_v12, 0.0004427343 }
 0x32b   : > { %v1709_v24 = vsel %vm1708_vm11, %v1706_v1, %v1703_v13  ;;  %v1700_v49 = vsel %vm1699_vm12, %v1697_v14, %v1694_v38  ;;  %v2022_v5 = vsel %vm2021_vm5, %v3934_v44, %v3951_v6  ;;  %vm2023_vm13 = vcmask 48128  }
 0x32c   : > { %v1680_v29 = vrot.slane %v1673_v31, 4  ;;  %v1674_v7 = vrot.slane %v1664_v46, 4  ;;  %v1741_v19 = vmul.f32 0.6931472, %v2944_v56  ;;  %v1732_v39 = vmul.f32 0.6931472, %v2946_v11 }
 0x32d   : > { %v1569_v17 = vadd.f32 %v1568_v47, %v1567_v53  ;;  %v1744_v34 = vmul.f32 %v1743_v0, %v3979_v27  ;;  %v1735_v16 = vmul.f32 %v1734_v3, %v3983_v60  ;;  %vm2025_vm14 = vcmask 56320  }
 0x32e   : > { %v1563_v42 = vadd.f32 %v1562_v35, %v1561_v18  ;;  %v1716_v61 = vrot.slane %v1709_v24, 4  ;;  %v1710_v10 = vrot.slane %v1700_v49, 4  ;;  %v2024_v2 = vsel %vm2023_vm13, %v2022_v5, %v3954_v26 }
 0x32f   : > { %v1606_v63 = vrot.slane %v1605_v9, 2  ;;  %v1600_v23 = vrot.slane %v1599_v15, 2  ;;  %vm1746_vm8 = vcmp.lt.f32.partialorder %v1745_v8, 0.0004427343  ;;  %vm1737_vm9 = vcmp.lt.f32.partialorder %v1736_v30, 0.0004427343 }
 0x330   : > { %v1644_v44 = vrot.slane %v4000_v22, 2  ;;  %v1638_v6 = vrot.slane %v4004_v21, 2  ;;  %v1747_v32 = vsel %vm1746_vm8, %v1744_v34, %v1741_v19  ;;  %v1738_v36 = vsel %vm1737_vm9, %v1735_v16, %v1732_v39 }
 0x331   : > { %v1681_v57 = vadd.f32 %v1680_v29, %v1673_v31  ;;  %v1675_v27 = vadd.f32 %v1674_v7, %v1664_v46  ;;  %v1570_v52 = vrot.slane %v1569_v17, 1  ;;  %v2026_v60 = vsel %vm2025_vm14, %v2024_v2, %v3970_v4 }
 0x332   : > { %v1564_v48 = vrot.slane %v1563_v42, 1  ;;  %v1717_v40 = vadd.f32 %v1716_v61, %v1709_v24  ;;  %v1711_v54 = vadd.f32 %v1710_v10, %v1700_v49  ;;  %vm2027_vm10 = vcmask 64512  }
 0x333   : > { %v1607_v26 = vadd.f32 %v1606_v63, %v1605_v9  ;;  %v1601_v20 = vadd.f32 %v1600_v23, %v1599_v15  ;;  %v1754_v45 = vrot.slane %v1747_v32, 4  ;;  %v1748_v53 = vrot.slane %v1738_v36, 4 }
 0x334   : > { %v1533_v33 = vadd.f32 %v1532_v41, %v3957_v58  ;;  %v1527_v50 = vadd.f32 %v1526_v59, %v3964_v55  ;;  %v1645_v43 = vadd.f32 %v1644_v44, %v4000_v22  ;;  %v1639_v4 = vadd.f32 %v1638_v6, %v4004_v21 }
 0x335   : > { %v1682_v37 = vrot.slane %v1681_v57, 2  ;;  %v1676_v51 = vrot.slane %v1675_v27, 2  ;;  %v1571_v18 = vadd.f32 %v1570_v52, %v1569_v17  ;;  %v2028_v9 = vsel %vm2027_vm10, %v2026_v60, %v3973_v28 }
 0x336   : > { %v1565_v25 = vadd.f32 %v1564_v48, %v1563_v42  ;;  %v1718_v12 = vrot.slane %v1717_v40, 2  ;;  %v1712_v31 = vrot.slane %v1711_v54, 2  ;;  %vm2029_vm15 = vcmask 72704  }
 0x337   : > { %v1608_v46 = vrot.slane %v1607_v26, 1  ;;  %v1602_v13 = vrot.slane %v1601_v20, 1  ;;  %v1755_v58 = vadd.f32 %v1754_v45, %v1747_v32  ;;  %v1749_v41 = vadd.f32 %v1748_v53, %v1738_v36 }
 0x338   : > { %v1646_v38 = vrot.slane %v1645_v43, 1  ;;  %v1987_v55 = vsel %vm1950_vm6, %v1533_v33, %v1527_v50  ;;  %v1640_v59 = vrot.slane %v1639_v4, 1  ;;  %v1683_v22 = vadd.f32 %v1682_v37, %v1681_v57 }
 0x339   : > { %v1677_v56 = vadd.f32 %v1676_v51, %v1675_v27  ;;  %v2030_v21 = vsel %vm2029_vm15, %v2028_v9, %v1987_v55  ;;  %v1719_v47 = vadd.f32 %v1718_v12, %v1717_v40  ;;  %v1713_v0 = vadd.f32 %v1712_v31, %v1711_v54  ;;  %v2162_v40 = vld [vmem:[%s4120_s4] sm:$0xff]  ;;  %v2163_v54 = vld [vmem:[%s4120_s4 + $0x8] sm:$0x3] }
 0x33a   : > { %v1991_v8 = vsel %vm1950_vm6, %v1571_v18, %v1565_v25  ;;  %vm2031_vm0 = vcmask 80896   ;;  %v1609_v28 = vadd.f32 %v1608_v46, %v1607_v26  ;;  %v1603_v11 = vadd.f32 %v1602_v13, %v1601_v20  ;;  %v2493_v20 = vld [vmem:[%s4119_s3] ss:$0 sm:$0xff] }
 0x33b   : > { %v1756_v3 = vrot.slane %v1755_v58, 2  ;;  %v1750_v30 = vrot.slane %v1749_v41, 2  ;;  %v1684_v1 = vrot.slane %v1683_v22, 1  ;;  %v1678_v14 = vrot.slane %v1677_v56, 1 }
 0x33c   : > { %v2032_v15 = vsel %vm2031_vm0, %v2030_v21, %v1991_v8  ;;  %vm2033_vm2 = vcmask 89088   ;;  %v1647_v35 = vadd.f32 %v1646_v38, %v1645_v43  ;;  %v1641_v24 = vadd.f32 %v1640_v59, %v1639_v4  ;;  %v2249_v43 = vld [vmem:[%s4122_s6] sm:$0x1f] }
 0x33d   : > { %v1720_v49 = vrot.slane %v1719_v47, 1  ;;  %v1714_v5 = vrot.slane %v1713_v0, 1  ;;  %v1751_v29 = vadd.f32 %v1750_v30, %v1749_v41  ;;  %v1757_v7 = vadd.f32 %v1756_v3, %v1755_v58  ;;  %v2496_v4 = vld [vmem:[%s4121_s5] ss:$0 sm:$0xff] }
 0x33e   : > { %v1995_v19 = vsel %vm1950_vm6, %v1609_v28, %v1603_v11  ;;  %vm2035_vm3 = vcmask 97280   ;;  %v1679_v17 = vadd.f32 %v1678_v14, %v1677_v56  ;;  %v1685_v34 = vadd.f32 %v1684_v1, %v1683_v22 }
 0x33f   : > { %v2034_v39 = vsel %vm2033_vm2, %v2032_v15, %v1995_v19  ;;  %v1715_v16 = vadd.f32 %v1714_v5, %v1713_v0  ;;  %v1721_v42 = vadd.f32 %v1720_v49, %v1719_v47  ;;  %v1999_v61 = vsel %vm1950_vm6, %v1647_v35, %v1641_v24 }
 0x340   : > { %v1752_v10 = vrot.slane %v1751_v29, 1  ;;  %v1758_v2 = vrot.slane %v1757_v7, 1  ;;  %v2036_v63 = vsel %vm2035_vm3, %v2034_v39, %v1999_v61  ;;  %vm2037_vm4 = vcmask 105472  }
 0x341   : > { %v2003_v23 = vsel %vm1950_vm6, %v1685_v34, %v1679_v17  ;;  %v2007_v44 = vsel %vm1950_vm6, %v1721_v42, %v1715_v16  ;;  %vm2039_vm11 = vcmask 113664   ;;  %vm2041_vm12 = vcmask 121856  }
 0x342   : > { %v2038_v6 = vsel %vm2037_vm4, %v2036_v63, %v2003_v23  ;;  %v1753_v32 = vadd.f32 %v1752_v10, %v1751_v29  ;;  %v1759_v36 = vadd.f32 %v1758_v2, %v1757_v7  ;;  %vm2071_vm13 = vcmask 130048  }
 0x343   : > { %v2040_v57 = vsel %vm2039_vm11, %v2038_v6, %v2007_v44  ;;  %vm2083_vm14 = vcmask 171008   ;;  %vm2174_vm8 = vcmask 1041408   ;;  %v2708_v26 = vpack.c.bf16 %v2163_v54, %v2162_v40 }
 0x344   : > { %v2011_v27 = vsel %vm1950_vm6, %v1759_v36, %v1753_v32  ;;  %vm3036_vm9 = vmmov 1   ;;  %v3037_v25 = vmov 0  }
 0x345   : > { %v2042_v52 = vsel %vm2041_vm12, %v2040_v57, %v2011_v27  ;;  %vm2709_vm10 = vmpackc.low %vm2174_vm8, %vm3036_vm9  ;;  %2773 = vset.pattern.permute.xlu1 %v3037_v25  ;;  %2774 = vset.pattern.permute.xlu0 %v3037_v25 }
 0x346   : > { %2710 = vmatpush3.bf16.msk.msra.mxu1 %vm2709_vm10, %v2708_v26 }
 0x347   : > { %2635 = vmatprep.subr.mxu1 %v3033_v62 }
 0x34c   : > { %v2069_v60 = vpop.permute.xlu0 %2068 }
 0x34d   : > { %v2072_v48 = vsel %vm2071_vm13, %v2042_v52, %v2069_v60 }
 0x34e   : > { %2626 = vmatmul.mubr.msk.f32.vlgmr.msra.gmra.mrb[2].mxu0 %vm2083_vm14, %v2072_v48 }
 0x421   : > { %v2157_v45 = vpop.f32.mrb[2].mxu0 }
 0x422   : > { %v2158_v53 = vadd.f32 %v2493_v20, %v2157_v45  ;;  %v2627_v33 = vpop.f32.mrb[3].mxu0 }
 0x424   : > { %v2161_v50 = vmax.f32 %v2158_v53, 0.0 }
 0x426   : > { %2633 = vmatmul.mubr.msk.f32.vlgmr.msra.gmra.mrb[2].mxu1 %vm2031_vm0, %v2161_v50 }
 0x427   : > { %2637 = vmatprep.mubr.msk.f32.mxu1 %vm3032_vm1, %v3033_v62  ;;  %2636 = vmatpush3.msk.msra.mxu1 %vm2087_vm7, %v2249_v43  ;;  %v2499_v62 = vld [vmem:[#allocation4] ss:$0 sm:$0xff] }
 0x4f9   : > { %v2244_v37 = vpop.f32.mrb[2].mxu1 }
 0x4fa   : > { %v2245_v51 = vadd.f32 %v2496_v4, %v2244_v37  ;;  %v2634_v18 = vpop.f32.mrb[3].mxu1 }
 0x4fc   : > { %v2248_v9 = vmax.f32 %v2245_v51, 0.0 }
 0x4fe   : > { %2638 = vmatmul.mubr.msk.f32.vlgmr.msra.gmra.mrb[4].mxu1 %vm2021_vm5, %v2248_v9 }
 0x5d1   : > { %v2329_v12 = vpop.f32.mrb[4].mxu1 }
 0x5d2   : > { %v2330_v31 = vadd.f32 %v2499_v62, %v2329_v12  ;;  %v2639_v46 = vpop.f32.mrb[5].mxu1 }
 0x5d4   : > { %v2334_v13 = vrot.slane %v2330_v31, 1 }
 0x5d6   : > { %v2336_v58 = vsub.f32 %v2330_v31, %v2334_v13 }
 0x5d8   : > { %v2337_v41 = vsub.f32 0.0, %v2336_v58 }
 0x5da   : > { %v2338_v38 = vmul.f32 1.442695, %v2337_v41 }
 0x5dc   : > { %2947 = vpow2.f32 %v2338_v38 }
 0x5e6   : > { %v2948_v55 = vpop.eup %2947 }
 0x5e7   : > { %v2340_v59 = vadd.f32 1.0, %v2948_v55 }
 0x5e9   : > { %2949 = vrcp.f32 %v2340_v59 }
 0x5f3   : > { %v2950_v22 = vpop.eup %2949 }
 0x5f4   : > { %2345 = vperm.xlu1 %2773, %v2950_v22  }
 0x673   : > { %v2346_v56 = vpop.permute.xlu1 %2345 }
 0x674   : > { %2348 = vst [vmem:[%s341_s21] sm:$0x1] %v2346_v56 }
 0x675   : > { %2964 = shalt.err (!%p2961_p5)
}
 0x676   : > { %s2965_s15 = scalar_lea.hbm %s4071_s26, 16  ;;  %s2969_s21 = scalar_lea.hbm %s4124_s8, 32 }
 0x677   : > { %p2966_p6 = scmp.ne.s32.totalorder %s4071_s26, %s2965_s15  ;;  %p2970_p10 = scmp.lt.u32.totalorder %s4071_s26, %s4124_s8 }
 0x678   : > { %p2971_p11 = scmp.lt.u32.totalorder %s2969_s21, %s2965_s15  ;;  %p2973_p13 = scmp.lt.u32.totalorder %s2965_s15, %s4071_s26 }
 0x679   : > { %p2967_p7 = pnand %p2966_p6, %p3127_p4 }
 0x67a   : > { %p2972_p12 = por %p2971_p11, %p2970_p10 }
 0x67b   : > { %p2968_p9 = pneg %p2967_p7 }
 0x67c   : > { %p2974_p0 = por %p2973_p13, %p2972_p12 }
 0x67e   : > { %p2975_p1 = pnand %p2974_p0, %p2968_p9 }
 0x680   : > { %2978 = shalt.err (!%p2975_p1)
}
 0x681   : > { %2711 = dma.vmem_to_hbm [thread:$0]  (%p3127_p4), %s4066_s22, 16, %s4071_s26, %s2350_s27  }
 0x682 PF: > { %p2717_p2 = scmp.ge.s32.totalorder %s3029_s12, 2  ;;  %s2374_s25 = sand.u32 1, %s3009_s29  }
 0x683   : > { %s2375_s28 = scalar_lea.sflag [#allocation6], %s2374_s25 }
 0x684   : > { %p2714_p3 = pnand %p2717_p2, %p3134_p8 }
 0x686   : > { %3004 = dma.done.wait (!%p2714_p3), %s2375_s28, 16  }
 0x687   : > { %3006 = vsyncadd (!%p2714_p3), %s2375_s28, 4294967280  ;;  %s23_s12 = sadd.s32 1, %s3029_s12   ;;  %s4145_s29 = smov %s3013_s30 }
 0x688   : > { %p20_p5 = scmp.ge.s32.totalorder %s23_s12, 4   ;;  %s4146_s30 = smov %s3017_s9 }
 0x689   : > { %s4147_s9 = smov %s3140_s19  ;;  %s4148_s10 = smov %s3025_s11 }
 0x68a   : > { %s4149_s11 = smov %s4151_s14  ;;  %22 = sbr.rel (!%p20_p5) target bundleno = 7 (0x7), region = 118 }
 0x691   :  { %2379 = vsyncpa [#allocation6], 1 }
 0x692   :  { %2381 = vsyncpa [#allocation6 + $0x1], 1 }

</bundles_post_ra>
